<compile_context>
chip_gen: v5e
topology: v5e:2x2
jax: 0.10.0
libtpu: 0.0.40
codegen_flags: <defaults>
</compile_context>

<pallas_src>
import jax
import jax.numpy as jnp
from jax import lax
from jax.experimental import pallas as pl
from jax.experimental.pallas import tpu as pltpu

_VMEM = pl.BlockSpec(memory_space=pltpu.MemorySpace.VMEM)


# ---------------------------------------------------------------------------
# Pallas kernels
# ---------------------------------------------------------------------------
def _conv_relu_pool_kernel(p_ref, w_ref, b_ref, m_ref, o_ref):
    """im2col-matmul + bias + ReLU + 2x2 max-pool, fully fused.

    p_ref: (4*R, K) bf16  -- rows = 4 pool-window positions x R pooled locations
    w_ref: (K, Cout) bf16
    b_ref: (1, Cout) f32
    m_ref: (4*R, 1) f32   -- 1.0 for valid window positions, 0.0 for pool padding
    o_ref: (R, Cout) bf16 -- pooled output
    """
    z = jnp.dot(p_ref[...], w_ref[...], preferred_element_type=jnp.float32)
    z = jnp.maximum(z + b_ref[...], 0.0) * m_ref[...]   # ReLU, then zero padded taps
    r = o_ref.shape[0]
    pooled = jnp.maximum(jnp.maximum(z[:r], z[r:2 * r]),
                         jnp.maximum(z[2 * r:3 * r], z[3 * r:]))
    o_ref[...] = pooled.astype(o_ref.dtype)


def _fc_softmax_kernel(x_ref, w1_ref, b1_ref, w2_ref, b2_ref, o_ref):
    """fc1 + ReLU + fc2 + softmax, fully fused (weights stay VMEM-resident)."""
    h = jnp.dot(x_ref[...], w1_ref[...], preferred_element_type=jnp.float32)
    h = jnp.maximum(h + b1_ref[...], 0.0)
    z = jnp.dot(h.astype(w2_ref.dtype), w2_ref[...],
                preferred_element_type=jnp.float32)
    z = z + b2_ref[...]
    z = z - jnp.max(z, axis=-1, keepdims=True)
    e = jnp.exp(z)
    inv = pl.reciprocal(jnp.sum(e, axis=-1, keepdims=True), approx=True)
    o_ref[...] = e * inv


# ---------------------------------------------------------------------------
# Layer wrappers (im2col construction is plain-JAX glue fused under jit)
# ---------------------------------------------------------------------------
def conv_relu_pool(x_nhwc, w_flat, b_row):
    """Conv2d(5x5, stride 1, pad 1) + ReLU + MaxPool2d(2, stride 2, pad 1)."""
    B, H, W, Cin = x_nhwc.shape
    kh = kw = 5
    assert H % 2 == 0 and W % 2 == 0
    Hp, Wp = H // 2, W // 2              # conv: H-2 ; pool(pad=1, k=2, s=2): H/2
    K = kh * kw * Cin
    Cout = w_flat.shape[1]
    R = B * Hp * Wp

    # Patches for the *extended* conv-output grid (conv rows -1 .. H-3), built
    # from a zero-padded input; feature order is (u, v, c) to match w_flat.
    xpp = jnp.pad(x_nhwc, ((0, 0), (2, 2), (2, 2), (0, 0)))
    cols = [xpp[:, u:u + 2 * Hp, v:v + 2 * Wp, :]
            for u in range(kh) for v in range(kw)]
    p_ext = jnp.stack(cols, axis=3).reshape(B, 2 * Hp, 2 * Wp, K)

    # Four pool-window position slabs, stacked along the row axis, plus their
    # validity masks (window taps that fall outside the real conv output).
    po = jnp.arange(Hp)
    pw = jnp.arange(Wp)
    slabs, masks = [], []
    for di in (0, 1):
        rv = (po >= 1) if di == 0 else (po <= Hp - 2)
        for dj in (0, 1):
            cv = (pw >= 1) if dj == 0 else (pw <= Wp - 2)
            slabs.append(p_ext[:, di::2, dj::2, :].reshape(R, K))
            m = (rv[:, None] & cv[None, :]).astype(jnp.float32)
            masks.append(jnp.broadcast_to(m[None], (B, Hp, Wp)).reshape(R, 1))
    patches = jnp.concatenate(slabs, axis=0).astype(w_flat.dtype)   # (4R, K)
    mask = jnp.concatenate(masks, axis=0)                           # (4R, 1)

    out = pl.pallas_call(
        _conv_relu_pool_kernel,
        out_shape=jax.ShapeDtypeStruct((R, Cout), jnp.bfloat16),
        in_specs=[_VMEM, _VMEM, _VMEM, _VMEM],
        out_specs=_VMEM,
    )(patches, w_flat, b_row, mask)
    return out.reshape(B, Hp, Wp, Cout)


def fc_softmax(x_flat, w1, b1, w2, b2):
    B = x_flat.shape[0]
    n_cls = w2.shape[1]
    return pl.pallas_call(
        _fc_softmax_kernel,
        out_shape=jax.ShapeDtypeStruct((B, n_cls), jnp.float32),
        in_specs=[_VMEM, _VMEM, _VMEM, _VMEM, _VMEM],
        out_specs=_VMEM,
    )(x_flat.astype(w1.dtype), w1, b1, w2, b2)


# ---------------------------------------------------------------------------
# CNN forward (matches the PyTorch module)
# ---------------------------------------------------------------------------
@jax.jit
def cnn_forward(x_nchw, p):
    x = jnp.transpose(x_nchw, (0, 2, 3, 1)).astype(jnp.bfloat16)   # NCHW -> NHWC
    x = conv_relu_pool(x, p["wc1"], p["bc1"])                      # (B, 8, 8, 32)
    x = conv_relu_pool(x, p["wc2"], p["bc2"])                      # (B, 4, 4, 64)
    # NHWC flatten; w_fc1 columns were pre-permuted so this equals torch's
    # channel-major (NCHW) flatten -> no per-forward activation transpose.
    x = x.reshape(x.shape[0], -1)
    return fc_softmax(x, p["wf1"], p["bf1"], p["wf2"], p["bf2"])


# ---------------------------------------------------------------------------
# Parameters
# ---------------------------------------------------------------------------
def init_params(key, channels, num_fnn):
    def uniform(k, shape, fan_in):
        bound = 1.0 / jnp.sqrt(jnp.float32(fan_in))
        return jax.random.uniform(k, shape, jnp.float32, -bound, bound)

    ks = jax.random.split(key, 8)
    return {
        "w1": uniform(ks[0], (32, channels, 5, 5), channels * 25),
        "b1": uniform(ks[1], (32,), channels * 25),
        "w2": uniform(ks[2], (64, 32, 5, 5), 32 * 25),
        "b2": uniform(ks[3], (64,), 32 * 25),
        "w_fc1": uniform(ks[4], (512, num_fnn), num_fnn),
        "b_fc1": uniform(ks[5], (512,), num_fnn),
        "w_fc2": uniform(ks[6], (10, 512), 512),
        "b_fc2": uniform(ks[7], (10,), 512),
    }


def prepare_params(params, final_hw):
    """One-time prep: flatten/permute/cast weights for the fused kernels."""
    Hp2, Wp2 = final_hw
    C2 = params["w2"].shape[0]

    def conv_flat(w):   # (Cout, Cin, kh, kw) -> (kh*kw*Cin, Cout), order (u,v,c)
        return jnp.transpose(w, (2, 3, 1, 0)).reshape(-1, w.shape[0])

    # Permute fc1 columns from NCHW-flatten order to NHWC-flatten order.
    wf1 = params["w_fc1"]
    wf1 = wf1.reshape(-1, C2, Hp2, Wp2).transpose(0, 2, 3, 1).reshape(wf1.shape[0], -1)

    return {
        "wc1": conv_flat(params["w1"]).astype(jnp.bfloat16),
        "bc1": params["b1"].reshape(1, -1).astype(jnp.float32),
        "wc2": conv_flat(params["w2"]).astype(jnp.bfloat16),
        "bc2": params["b2"].reshape(1, -1).astype(jnp.float32),
        "wf1": wf1.T.astype(jnp.bfloat16),                    # (num_fnn, 512)
        "bf1": params["b_fc1"].reshape(1, -1).astype(jnp.float32),
        "wf2": params["w_fc2"].T.astype(jnp.bfloat16),        # (512, 10)
        "bf2": params["b_fc2"].reshape(1, -1).astype(jnp.float32),
    }


# ---------------------------------------------------------------------------
# Pure-JAX f32 reference for correctness checking
# ---------------------------------------------------------------------------
def ref_forward(x_nchw, params):
    x = jnp.transpose(x_nchw, (0, 2, 3, 1))

    def conv(x, w, b):
        y = lax.conv_general_dilated(
            x, jnp.transpose(w, (2, 3, 1, 0)), (1, 1), ((1, 1), (1, 1)),
            dimension_numbers=("NHWC", "HWIO", "NHWC"))
        return jax.nn.relu(y + b)

    def pool(x):
        return lax.reduce_window(x, -jnp.inf, lax.max, (1, 2, 2, 1),
                                 (1, 2, 2, 1),
                                 ((0, 0), (1, 1), (1, 1), (0, 0)))

    x = pool(conv(x, params["w1"], params["b1"]))
    x = pool(conv(x, params["w2"], params["b2"]))
    x = jnp.transpose(x, (0, 3, 1, 2)).reshape(x.shape[0], -1)   # NCHW flatten
    x = jax.nn.relu(x @ params["w_fc1"].T + params["b_fc1"])
    x = x @ params["w_fc2"].T + params["b_fc2"]
    return jax.nn.softmax(x, axis=1)


if __name__ == "__main__":
    B, C, H, W = 2, 4, 16, 16
    # shape trace: conv1 -> 14x14x32, pool1 -> 8x8x32, conv2 -> 6x6x64,
    # pool2 -> 4x4x64, flatten -> 1024  => num_fnn = 1024
    num_fnn = 64 * 4 * 4

    key = jax.random.PRNGKey(0)
    kx, kp = jax.random.split(key)
    x = jax.random.normal(kx, (B, C, H, W), jnp.float32)
    params = init_params(kp, C, num_fnn)
    prep = prepare_params(params, (4, 4))

    out = jax.block_until_ready(cnn_forward(x, prep))
    assert out.shape == (B, 10), out.shape

    ref = jax.block_until_ready(ref_forward(x, params))
    # bf16 matmul operands -> looser tolerance vs the f32 reference.
    assert jnp.allclose(out, ref, atol=1e-2), "mismatch vs reference"
    assert jnp.allclose(jnp.sum(out, axis=1), 1.0, atol=5e-3), "softmax rows != 1"

    print("KERNEL_OK")
</pallas_src>

<mosaic_0001>
module attributes {stable_mosaic.version = 11 : i64} {
  func.func @_conv_relu_pool_kernel(%arg0: memref<512x100xbf16, #tpu.memory_space<vmem>>, %arg1: memref<100x32xbf16, #tpu.memory_space<vmem>>, %arg2: memref<1x32xf32, #tpu.memory_space<vmem>>, %arg3: memref<512x1xf32, #tpu.memory_space<vmem>>, %arg4: memref<128x32xbf16, #tpu.memory_space<vmem>>) attributes {dimension_semantics = [], scalar_prefetch = 0 : i64, scratch_operands = 0 : i64, tpu.core_type = #tpu.core_type<tc>} {
    %c0 = arith.constant 0 : index
    %c0_0 = arith.constant 0 : index
    %0 = vector.load %arg0[%c0, %c0_0] : memref<512x100xbf16, #tpu.memory_space<vmem>>, vector<512x100xbf16>
    %c0_1 = arith.constant 0 : index
    %c0_2 = arith.constant 0 : index
    %1 = vector.load %arg1[%c0_1, %c0_2] : memref<100x32xbf16, #tpu.memory_space<vmem>>, vector<100x32xbf16>
    %cst = arith.constant dense<0.000000e+00> : vector<512x32xf32>
    %2 = tpu.matmul %0, %1, %cst {dimension_numbers = #tpu.dot_dimension_numbers<[1], [0], [0], [1], [0, 0, 1, 1], [], []>} : vector<512x100xbf16>, vector<100x32xbf16>, vector<512x32xf32> -> vector<512x32xf32>
    %c0_3 = arith.constant 0 : index
    %c0_4 = arith.constant 0 : index
    %3 = vector.load %arg2[%c0_3, %c0_4] : memref<1x32xf32, #tpu.memory_space<vmem>>, vector<1x32xf32>
    %4 = vector.broadcast %3 : vector<1x32xf32> to vector<512x32xf32>
    %5 = arith.addf %2, %4 : vector<512x32xf32>
    %cst_5 = arith.constant 0.000000e+00 : f32
    %6 = vector.broadcast %cst_5 : f32 to vector<512x32xf32>
    %7 = arith.maximumf %5, %6 : vector<512x32xf32>
    %c0_6 = arith.constant 0 : index
    %c0_7 = arith.constant 0 : index
    %8 = vector.load %arg3[%c0_6, %c0_7] : memref<512x1xf32, #tpu.memory_space<vmem>>, vector<512x1xf32>
    %9 = vector.broadcast %8 : vector<512x1xf32> to vector<512x32xf32>
    %10 = arith.mulf %7, %9 : vector<512x32xf32>
    %11 = vector.extract_strided_slice %10 {offsets = [0, 0], sizes = [128, 32], strides = [1, 1]} : vector<512x32xf32> to vector<128x32xf32>
    %12 = vector.extract_strided_slice %10 {offsets = [128, 0], sizes = [128, 32], strides = [1, 1]} : vector<512x32xf32> to vector<128x32xf32>
    %13 = arith.maximumf %11, %12 : vector<128x32xf32>
    %14 = vector.extract_strided_slice %10 {offsets = [256, 0], sizes = [128, 32], strides = [1, 1]} : vector<512x32xf32> to vector<128x32xf32>
    %15 = vector.extract_strided_slice %10 {offsets = [384, 0], sizes = [128, 32], strides = [1, 1]} : vector<512x32xf32> to vector<128x32xf32>
    %16 = arith.maximumf %14, %15 : vector<128x32xf32>
    %17 = arith.maximumf %13, %16 : vector<128x32xf32>
    %18 = arith.truncf %17 : vector<128x32xf32> to vector<128x32xbf16>
    %c0_8 = arith.constant 0 : index
    %c0_9 = arith.constant 0 : index
    %19 = vector.load %arg4[%c0_8, %c0_9] : memref<128x32xbf16, #tpu.memory_space<vmem>>, vector<128x32xbf16>
    tpu.vector_store %arg4[%c0_8, %c0_9], %18 {strides = array<i32>} : memref<128x32xbf16, #tpu.memory_space<vmem>>, vector<128x32xbf16>,
    return
  }
}

module attributes {stable_mosaic.version = 11 : i64} {
  func.func @_conv_relu_pool_kernel(%arg0: memref<128x800xbf16, #tpu.memory_space<vmem>>, %arg1: memref<800x64xbf16, #tpu.memory_space<vmem>>, %arg2: memref<1x64xf32, #tpu.memory_space<vmem>>, %arg3: memref<128x1xf32, #tpu.memory_space<vmem>>, %arg4: memref<32x64xbf16, #tpu.memory_space<vmem>>) attributes {dimension_semantics = [], scalar_prefetch = 0 : i64, scratch_operands = 0 : i64, tpu.core_type = #tpu.core_type<tc>} {
    %c0 = arith.constant 0 : index
    %c0_0 = arith.constant 0 : index
    %0 = vector.load %arg0[%c0, %c0_0] : memref<128x800xbf16, #tpu.memory_space<vmem>>, vector<128x800xbf16>
    %c0_1 = arith.constant 0 : index
    %c0_2 = arith.constant 0 : index
    %1 = vector.load %arg1[%c0_1, %c0_2] : memref<800x64xbf16, #tpu.memory_space<vmem>>, vector<800x64xbf16>
    %cst = arith.constant dense<0.000000e+00> : vector<128x64xf32>
    %2 = tpu.matmul %0, %1, %cst {dimension_numbers = #tpu.dot_dimension_numbers<[1], [0], [0], [1], [0, 0, 1, 1], [], []>} : vector<128x800xbf16>, vector<800x64xbf16>, vector<128x64xf32> -> vector<128x64xf32>
    %c0_3 = arith.constant 0 : index
    %c0_4 = arith.constant 0 : index
    %3 = vector.load %arg2[%c0_3, %c0_4] : memref<1x64xf32, #tpu.memory_space<vmem>>, vector<1x64xf32>
    %4 = vector.broadcast %3 : vector<1x64xf32> to vector<128x64xf32>
    %5 = arith.addf %2, %4 : vector<128x64xf32>
    %cst_5 = arith.constant 0.000000e+00 : f32
    %6 = vector.broadcast %cst_5 : f32 to vector<128x64xf32>
    %7 = arith.maximumf %5, %6 : vector<128x64xf32>
    %c0_6 = arith.constant 0 : index
    %c0_7 = arith.constant 0 : index
    %8 = vector.load %arg3[%c0_6, %c0_7] : memref<128x1xf32, #tpu.memory_space<vmem>>, vector<128x1xf32>
    %9 = vector.broadcast %8 : vector<128x1xf32> to vector<128x64xf32>
    %10 = arith.mulf %7, %9 : vector<128x64xf32>
    %11 = vector.extract_strided_slice %10 {offsets = [0, 0], sizes = [32, 64], strides = [1, 1]} : vector<128x64xf32> to vector<32x64xf32>
    %12 = vector.extract_strided_slice %10 {offsets = [32, 0], sizes = [32, 64], strides = [1, 1]} : vector<128x64xf32> to vector<32x64xf32>
    %13 = arith.maximumf %11, %12 : vector<32x64xf32>
    %14 = vector.extract_strided_slice %10 {offsets = [64, 0], sizes = [32, 64], strides = [1, 1]} : vector<128x64xf32> to vector<32x64xf32>
    %15 = vector.extract_strided_slice %10 {offsets = [96, 0], sizes = [32, 64], strides = [1, 1]} : vector<128x64xf32> to vector<32x64xf32>
    %16 = arith.maximumf %14, %15 : vector<32x64xf32>
    %17 = arith.maximumf %13, %16 : vector<32x64xf32>
    %18 = arith.truncf %17 : vector<32x64xf32> to vector<32x64xbf16>
    %c0_8 = arith.constant 0 : index
    %c0_9 = arith.constant 0 : index
    %19 = vector.load %arg4[%c0_8, %c0_9] : memref<32x64xbf16, #tpu.memory_space<vmem>>, vector<32x64xbf16>
    tpu.vector_store %arg4[%c0_8, %c0_9], %18 {strides = array<i32>} : memref<32x64xbf16, #tpu.memory_space<vmem>>, vector<32x64xbf16>,
    return
  }
}

module attributes {stable_mosaic.version = 11 : i64} {
  func.func @_fc_softmax_kernel(%arg0: memref<2x1024xbf16, #tpu.memory_space<vmem>>, %arg1: memref<1024x512xbf16, #tpu.memory_space<vmem>>, %arg2: memref<1x512xf32, #tpu.memory_space<vmem>>, %arg3: memref<512x10xbf16, #tpu.memory_space<vmem>>, %arg4: memref<1x10xf32, #tpu.memory_space<vmem>>, %arg5: memref<2x10xf32, #tpu.memory_space<vmem>>) attributes {dimension_semantics = [], scalar_prefetch = 0 : i64, scratch_operands = 0 : i64, tpu.core_type = #tpu.core_type<tc>} {
    %c0 = arith.constant 0 : index
    %c0_0 = arith.constant 0 : index
    %0 = vector.load %arg0[%c0, %c0_0] : memref<2x1024xbf16, #tpu.memory_space<vmem>>, vector<2x1024xbf16>
    %c0_1 = arith.constant 0 : index
    %c0_2 = arith.constant 0 : index
    %1 = vector.load %arg1[%c0_1, %c0_2] : memref<1024x512xbf16, #tpu.memory_space<vmem>>, vector<1024x512xbf16>
    %cst = arith.constant dense<0.000000e+00> : vector<2x512xf32>
    %2 = tpu.matmul %0, %1, %cst {dimension_numbers = #tpu.dot_dimension_numbers<[1], [0], [0], [1], [0, 0, 1, 1], [], []>} : vector<2x1024xbf16>, vector<1024x512xbf16>, vector<2x512xf32> -> vector<2x512xf32>
    %c0_3 = arith.constant 0 : index
    %c0_4 = arith.constant 0 : index
    %3 = vector.load %arg2[%c0_3, %c0_4] : memref<1x512xf32, #tpu.memory_space<vmem>>, vector<1x512xf32>
    %4 = vector.broadcast %3 : vector<1x512xf32> to vector<2x512xf32>
    %5 = arith.addf %2, %4 : vector<2x512xf32>
    %cst_5 = arith.constant 0.000000e+00 : f32
    %6 = vector.broadcast %cst_5 : f32 to vector<2x512xf32>
    %7 = arith.maximumf %5, %6 : vector<2x512xf32>
    %8 = arith.truncf %7 : vector<2x512xf32> to vector<2x512xbf16>
    %c0_6 = arith.constant 0 : index
    %c0_7 = arith.constant 0 : index
    %9 = vector.load %arg3[%c0_6, %c0_7] : memref<512x10xbf16, #tpu.memory_space<vmem>>, vector<512x10xbf16>
    %cst_8 = arith.constant dense<0.000000e+00> : vector<2x10xf32>
    %10 = tpu.matmul %8, %9, %cst_8 {dimension_numbers = #tpu.dot_dimension_numbers<[1], [0], [0], [1], [0, 0, 1, 1], [], []>} : vector<2x512xbf16>, vector<512x10xbf16>, vector<2x10xf32> -> vector<2x10xf32>
    %c0_9 = arith.constant 0 : index
    %c0_10 = arith.constant 0 : index
    %11 = vector.load %arg4[%c0_9, %c0_10] : memref<1x10xf32, #tpu.memory_space<vmem>>, vector<1x10xf32>
    %12 = vector.broadcast %11 : vector<1x10xf32> to vector<2x10xf32>
    %13 = arith.addf %10, %12 : vector<2x10xf32>
    %cst_11 = arith.constant dense<0xFF800000> : vector<2xf32>
    %14 = vector.multi_reduction <maximumf>, %13, %cst_11 [1] : vector<2x10xf32> to vector<2xf32>
    %15 = vector.shape_cast %14 : vector<2xf32> to vector<2x1xf32>
    %16 = vector.broadcast %15 : vector<2x1xf32> to vector<2x10xf32>
    %17 = arith.subf %13, %16 : vector<2x10xf32>
    %18 = math.exp %17 : vector<2x10xf32>
    %cst_12 = arith.constant dense<0.000000e+00> : vector<2xf32>
    %19 = vector.multi_reduction <add>, %18, %cst_12 [1] : vector<2x10xf32> to vector<2xf32>
    %20 = vector.shape_cast %19 : vector<2xf32> to vector<2x1xf32>
    %21 = tpu.reciprocal %20 {approx = true} : vector<2x1xf32> -> vector<2x1xf32>
    %22 = vector.broadcast %21 : vector<2x1xf32> to vector<2x10xf32>
    %23 = arith.mulf %18, %22 : vector<2x10xf32>
    %c0_13 = arith.constant 0 : index
    %c0_14 = arith.constant 0 : index
    %24 = vector.load %arg5[%c0_13, %c0_14] : memref<2x10xf32, #tpu.memory_space<vmem>>, vector<2x10xf32>
    tpu.vector_store %arg5[%c0_13, %c0_14], %23 {strides = array<i32>} : memref<2x10xf32, #tpu.memory_space<vmem>>, vector<2x10xf32>,
    return
  }
}

</mosaic_0001>

<bundles_post_ra>
// kernel: cnn_forward.3
= control target key start
LH: loop header
LB: loop body
LE: loop exit
PB: predicated region body
PF: predicated region fallthrough
CT: control target
= control target key end

     0   :  { %v1413_v0 = vmov 0   ;;  %vm395_vm0 = vcmask 1041408   ;;  %vm298_vm1 = vcmask 818176   ;;  %vm1144_vm2 = vcmask 257024   ;;  %s2165_s3 = inlined_call_operand.vmem [shape: f32[512,1], index: 3, kind: input, shape index: {}]   ;;  %s2166_s1 = inlined_call_operand.vmem [shape: bf16[100,32], index: 1, kind: input, shape index: {}]   ;;  %s2167_s0 = inlined_call_operand.vmem [shape: bf16[512,100], index: 0, kind: input, shape index: {}]   ;;  %s2168_s2 = inlined_call_operand.vmem [shape: f32[1,32], index: 2, kind: input, shape index: {}]   ;;  %s2169_s4 = inlined_call_operand.vmem [shape: bf16[128,32], index: 4, kind: output, shape index: {}]  }
   0x1   :  { %1411 = vset.pattern.permute.xlu2 %v1413_v0  ;;  %1410 = vset.pattern.permute.xlu1 %v1413_v0  ;;  %v636_v1 = vld [vmem:[%s2165_s3 + $0x20] sm:$0xff]  ;;  %v634_v2 = vld [vmem:[%s2165_s3 + $0x10] sm:$0xff]  ;;  %v637_v8 = vld [vmem:[%s2165_s3 + $0x28] sm:$0xff] }
   0x2   :  { %v632_v3 = vld [vmem:[%s2165_s3] sm:$0xff]  ;;  %1409 = vset.pattern.permute.xlu0 %v1413_v0  ;;  %718 = vperm.xlu2 %1411, %v636_v1   ;;  %v94_v4 = vld [vmem:[%s2166_s1 + $0x30] sm:$0x3]  ;;  %v635_v9 = vld [vmem:[%s2165_s3 + $0x18] sm:$0xff] }
   0x3   :  { %708 = vperm.xlu1 %1410, %v634_v2   ;;  %698 = vperm.xlu0 %1409, %v632_v3   ;;  %v284_v5 = vunpack.c.l.b16 %v94_v4  ;;  %v633_v10 = vld [vmem:[%s2165_s3 + $0x8] sm:$0xff]  ;;  %v1385_v12 = vld [vmem:[%s2166_s1 + $0x20] sm:$0xff]  ;;  %v639_v14 = vld [vmem:[%s2165_s3 + $0x38] sm:$0xff] }
   0x4   :  { %v1386_v11 = vld [vmem:[%s2166_s1 + $0x28] sm:$0xff]  ;;  %v640_v13 = vld [vmem:[%s2165_s3 + $0x40] sm:$0xff]  ;;  %v638_v15 = vld [vmem:[%s2165_s3 + $0x30] sm:$0xff] }
   0x5   :  { %v291_v6 = vpack.c.b16 %v284_v5, %v284_v5  ;;  %v1384_v16 = vld [vmem:[%s2166_s1 + $0x18] sm:$0xff]  ;;  %v1383_v17 = vld [vmem:[%s2166_s1 + $0x10] sm:$0xff]  ;;  %v641_v20 = vld [vmem:[%s2165_s3 + $0x48] sm:$0xff] }
   0x6   :  { %v643_v18 = vld [vmem:[%s2165_s3 + $0x58] sm:$0xff]  ;;  %v642_v19 = vld [vmem:[%s2165_s3 + $0x50] sm:$0xff]  ;;  %v1382_v21 = vld [vmem:[%s2166_s1 + $0x8] sm:$0xff] }
   0x7   :  { %v397_v7 = vsel %vm395_vm0, %v291_v6, 0  ;;  %v1381_v22 = vld [vmem:[%s2166_s1] sm:$0xff]  ;;  %v646_v23 = vld [vmem:[%s2165_s3 + $0x70] sm:$0xff]  ;;  %v645_v24 = vld [vmem:[%s2165_s3 + $0x68] sm:$0xff] }
   0x8   :  { %400 = vmatpush.bf16.msra.mxu0 %v397_v7  ;;  %1387 = vmatpush.bf16.msra.mxu1 %v397_v7  ;;  %v644_v25 = vld [vmem:[%s2165_s3 + $0x60] sm:$0xff]  ;;  %v649_v30 = vld [vmem:[%s2165_s3 + $0x88] sm:$0xff]  ;;  %v647_v32 = vld [vmem:[%s2165_s3 + $0x78] sm:$0xff] }
   0x9   :  { %1388 = vmatpush.bf16.msra.mxu2 %v397_v7  ;;  %1389 = vmatpush.bf16.msra.mxu3 %v397_v7  ;;  %v1349_v26 = vld [vmem:[%s2167_s0] sm:$0xff]  ;;  %v651_v34 = vld [vmem:[%s2165_s3 + $0x98] sm:$0xff]  ;;  %v650_v35 = vld [vmem:[%s2165_s3 + $0x90] sm:$0xff] }
   0xa   :  { %723 = vperm.xlu2 %1411, %v637_v8   ;;  %v1357_v27 = vld [vmem:[%s2167_s0 + $0x40] sm:$0xff]  ;;  %v1350_v36 = vld [vmem:[%s2167_s0 + $0x8] sm:$0xff]  ;;  %v655_v40 = vld [vmem:[%s2165_s3 + $0xb8] sm:$0xff] }
   0xb   :  { %713 = vperm.xlu1 %1410, %v635_v9   ;;  %703 = vperm.xlu0 %1409, %v633_v10   ;;  %v1365_v28 = vld [vmem:[%s2167_s0 + $0x80] sm:$0xff]  ;;  %v1358_v37 = vld [vmem:[%s2167_s0 + $0x48] sm:$0xff]  ;;  %v654_v41 = vld [vmem:[%s2165_s3 + $0xb0] sm:$0xff] }
   0xc   :  { %401 = vmatpush.bf16.msra.mxu0 %v1386_v11  ;;  %1390 = vmatpush.bf16.msra.mxu1 %v1386_v11  ;;  %v1373_v29 = vld [vmem:[%s2167_s0 + $0xc0] sm:$0xff]  ;;  %v1366_v38 = vld [vmem:[%s2167_s0 + $0x88] sm:$0xff]  ;;  %v658_v43 = vld [vmem:[%s2165_s3 + $0xd0] sm:$0xff] }
   0xd   :  { %1391 = vmatpush.bf16.msra.mxu2 %v1386_v11  ;;  %1392 = vmatpush.bf16.msra.mxu3 %v1386_v11  ;;  %v648_v31 = vld [vmem:[%s2165_s3 + $0x80] sm:$0xff]  ;;  %v1374_v39 = vld [vmem:[%s2167_s0 + $0xc8] sm:$0xff]  ;;  %v1351_v46 = vld [vmem:[%s2167_s0 + $0x10] sm:$0xff] }
   0xe   :  { %v652_v33 = vld [vmem:[%s2165_s3 + $0xa0] sm:$0xff]  ;;  %v653_v42 = vld [vmem:[%s2165_s3 + $0xa8] sm:$0xff]  ;;  %v1359_v47 = vld [vmem:[%s2167_s0 + $0x50] sm:$0xff] }
   0xf   :  { %v657_v44 = vld [vmem:[%s2165_s3 + $0xc8] sm:$0xff]  ;;  %v656_v45 = vld [vmem:[%s2165_s3 + $0xc0] sm:$0xff]  ;;  %v1367_v48 = vld [vmem:[%s2167_s0 + $0x90] sm:$0xff] }
  0x10   :  { %402 = vmatpush.bf16.msra.mxu0 %v1385_v12  ;;  %1393 = vmatpush.bf16.msra.mxu1 %v1385_v12  ;;  %v1375_v49 = vld [vmem:[%s2167_s0 + $0xd0] sm:$0xff]  ;;  %v661_v50 = vld [vmem:[%s2165_s3 + $0xe8] sm:$0xff]  ;;  %v660_v51 = vld [vmem:[%s2165_s3 + $0xe0] sm:$0xff] }
  0x11   :  { %1394 = vmatpush.bf16.msra.mxu2 %v1385_v12  ;;  %1395 = vmatpush.bf16.msra.mxu3 %v1385_v12  ;;  %v659_v52 = vld [vmem:[%s2165_s3 + $0xd8] sm:$0xff]  ;;  %v664_v53 = vld [vmem:[%s2165_s3 + $0x100] sm:$0xff]  ;;  %v662_v55 = vld [vmem:[%s2165_s3 + $0xf0] sm:$0xff] }
  0x12   :  { %738 = vperm.xlu2 %1411, %v640_v13   ;;  %v663_v54 = vld [vmem:[%s2165_s3 + $0xf8] sm:$0xff]  ;;  %v666_v61 = vld [vmem:[%s2165_s3 + $0x110] sm:$0xff]  ;;  %v665_v62 = vld [vmem:[%s2165_s3 + $0x108] sm:$0xff] }
  0x13   :  { %733 = vperm.xlu1 %1410, %v639_v14   ;;  %728 = vperm.xlu0 %1409, %v638_v15   ;;  %v1352_v56 = vld [vmem:[%s2167_s0 + $0x18] sm:$0xff]  ;;  %v670_v0 = vld [vmem:[%s2165_s3 + $0x130] sm:$0xff]  ;;  %v669_v1 = vld [vmem:[%s2165_s3 + $0x128] sm:$0xff] }
  0x14   :  { %403 = vmatpush.bf16.msra.mxu0 %v1384_v16  ;;  %1396 = vmatpush.bf16.msra.mxu1 %v1384_v16  ;;  %v1360_v57 = vld [vmem:[%s2167_s0 + $0x58] sm:$0xff]  ;;  %v668_v2 = vld [vmem:[%s2165_s3 + $0x120] sm:$0xff]  ;;  %v673_v8 = vld [vmem:[%s2165_s3 + $0x148] sm:$0xff] }
  0x15   :  { %1397 = vmatpush.bf16.msra.mxu2 %v1384_v16  ;;  %1398 = vmatpush.bf16.msra.mxu3 %v1384_v16  ;;  %v1368_v58 = vld [vmem:[%s2167_s0 + $0x98] sm:$0xff]  ;;  %v1353_v3 = vld [vmem:[%s2167_s0 + $0x20] sm:$0xff]  ;;  %v674_v14 = vld [vmem:[%s2165_s3 + $0x150] sm:$0xff] }
  0x16   :  { %v1376_v59 = vld [vmem:[%s2167_s0 + $0xd8] sm:$0xff]  ;;  %v1361_v4 = vld [vmem:[%s2167_s0 + $0x60] sm:$0xff]  ;;  %v1354_v15 = vld [vmem:[%s2167_s0 + $0x28] sm:$0xff] }
  0x17   :  { %v667_v60 = vld [vmem:[%s2165_s3 + $0x118] sm:$0xff]  ;;  %v1369_v5 = vld [vmem:[%s2167_s0 + $0xa0] sm:$0xff]  ;;  %v1362_v16 = vld [vmem:[%s2167_s0 + $0x68] sm:$0xff] }
  0x18   :  { %404 = vmatpush.bf16.msra.mxu0 %v1383_v17  ;;  %1399 = vmatpush.bf16.msra.mxu1 %v1383_v17  ;;  %v1377_v6 = vld [vmem:[%s2167_s0 + $0xe0] sm:$0xff]  ;;  %v671_v10 = vld [vmem:[%s2165_s3 + $0x138] sm:$0xff] }
  0x19   :  { %1400 = vmatpush.bf16.msra.mxu2 %v1383_v17  ;;  %1401 = vmatpush.bf16.msra.mxu3 %v1383_v17  ;;  %v672_v9 = vld [vmem:[%s2165_s3 + $0x140] sm:$0xff]  ;;  %v675_v13 = vld [vmem:[%s2165_s3 + $0x158] sm:$0xff]  ;;  %v1370_v17 = vld [vmem:[%s2167_s0 + $0xa8] sm:$0xff] }
  0x1a   :  { %753 = vperm.xlu2 %1411, %v643_v18   ;;  %v676_v12 = vld [vmem:[%s2165_s3 + $0x160] sm:$0xff]  ;;  %v1378_v18 = vld [vmem:[%s2167_s0 + $0xe8] sm:$0xff] }
  0x1b   :  { %748 = vperm.xlu1 %1410, %v642_v19   ;;  %743 = vperm.xlu0 %1409, %v641_v20  }
  0x1c   :  { %405 = vmatpush.bf16.msra.mxu0 %v1382_v21  ;;  %1402 = vmatpush.bf16.msra.mxu1 %v1382_v21 }
  0x1d   :  { %1403 = vmatpush.bf16.msra.mxu2 %v1382_v21  ;;  %1404 = vmatpush.bf16.msra.mxu3 %v1382_v21 }
  0x20   :  { %406 = vmatpush.bf16.msra.mxu0 %v1381_v22  ;;  %1405 = vmatpush.bf16.msra.mxu1 %v1381_v22 }
  0x21   :  { %1406 = vmatpush.bf16.msra.mxu2 %v1381_v22  ;;  %1407 = vmatpush.bf16.msra.mxu3 %v1381_v22  ;;  %v679_v22 = vld [vmem:[%s2165_s3 + $0x178] sm:$0xff] }
  0x22   :  { %768 = vperm.xlu2 %1411, %v646_v23   ;;  %v678_v23 = vld [vmem:[%s2165_s3 + $0x170] sm:$0xff] }
  0x23   :  { %763 = vperm.xlu1 %1410, %v645_v24   ;;  %758 = vperm.xlu0 %1409, %v644_v25   ;;  %v677_v24 = vld [vmem:[%s2165_s3 + $0x168] sm:$0xff] }
  0x24   :  { %1317 = vmatmul.msk.bf16.vlgmr.msra.gmra.mxu0 %vm298_vm1, %v1349_v26  ;;  %1325 = vmatmul.msk.bf16.vlgmr.msra.gmra.mxu1 %vm298_vm1, %v1357_v27 }
  0x25   :  { %1333 = vmatmul.msk.bf16.vlgmr.msra.gmra.mxu2 %vm298_vm1, %v1365_v28  ;;  %1341 = vmatmul.msk.bf16.vlgmr.msra.gmra.mxu3 %vm298_vm1, %v1373_v29  ;;  %v682_v28 = vld [vmem:[%s2165_s3 + $0x190] sm:$0xff]  ;;  %v681_v29 = vld [vmem:[%s2165_s3 + $0x188] sm:$0xff] }
  0x2a   :  { %783 = vperm.xlu2 %1411, %v649_v30   ;;  %v680_v30 = vld [vmem:[%s2165_s3 + $0x180] sm:$0xff] }
  0x2b   :  { %778 = vperm.xlu1 %1410, %v648_v31   ;;  %773 = vperm.xlu0 %1409, %v647_v32   ;;  %v1355_v31 = vld [vmem:[%s2167_s0 + $0x30] sm:$0xff] }
  0x2c   :  { %v1363_v32 = vld [vmem:[%s2167_s0 + $0x70] sm:$0xff] }
  0x32   :  { %798 = vperm.xlu2 %1411, %v652_v33   ;;  %v1371_v33 = vld [vmem:[%s2167_s0 + $0xb0] sm:$0xff] }
  0x33   :  { %793 = vperm.xlu1 %1410, %v651_v34   ;;  %788 = vperm.xlu0 %1409, %v650_v35   ;;  %v1379_v34 = vld [vmem:[%s2167_s0 + $0xf0] sm:$0xff] }
  0x34   :  { %1318 = vmatmul.msk.bf16.gmra.mxu0 %vm298_vm1, %v1350_v36  ;;  %1326 = vmatmul.msk.bf16.gmra.mxu1 %vm298_vm1, %v1358_v37 }
  0x35   :  { %1334 = vmatmul.msk.bf16.gmra.mxu2 %vm298_vm1, %v1366_v38  ;;  %1342 = vmatmul.msk.bf16.gmra.mxu3 %vm298_vm1, %v1374_v39  ;;  %v685_v38 = vld [vmem:[%s2165_s3 + $0x1a8] sm:$0xff]  ;;  %v684_v39 = vld [vmem:[%s2165_s3 + $0x1a0] sm:$0xff] }
  0x3a   :  { %813 = vperm.xlu2 %1411, %v655_v40   ;;  %v683_v40 = vld [vmem:[%s2165_s3 + $0x198] sm:$0xff] }
  0x3b   :  { %808 = vperm.xlu1 %1410, %v654_v41   ;;  %803 = vperm.xlu0 %1409, %v653_v42  }
  0x42   :  { %828 = vperm.xlu2 %1411, %v658_v43  }
  0x43   :  { %823 = vperm.xlu1 %1410, %v657_v44   ;;  %818 = vperm.xlu0 %1409, %v656_v45   ;;  %v688_v44 = vld [vmem:[%s2165_s3 + $0x1c0] sm:$0xff]  ;;  %v687_v45 = vld [vmem:[%s2165_s3 + $0x1b8] sm:$0xff] }
  0x44   :  { %1319 = vmatmul.msk.bf16.gmra.mxu0 %vm298_vm1, %v1351_v46  ;;  %1327 = vmatmul.msk.bf16.gmra.mxu1 %vm298_vm1, %v1359_v47  ;;  %v686_v46 = vld [vmem:[%s2165_s3 + $0x1b0] sm:$0xff]  ;;  %v1356_v47 = vld [vmem:[%s2167_s0 + $0x38] sm:$0xff] }
  0x45   :  { %1335 = vmatmul.msk.bf16.gmra.mxu2 %vm298_vm1, %v1367_v48  ;;  %1343 = vmatmul.msk.bf16.gmra.mxu3 %vm298_vm1, %v1375_v49  ;;  %v1364_v48 = vld [vmem:[%s2167_s0 + $0x78] sm:$0xff] }
  0x46   :  { %v1372_v49 = vld [vmem:[%s2167_s0 + $0xb8] sm:$0xff] }
  0x4a   :  { %843 = vperm.xlu2 %1411, %v661_v50   ;;  %v1380_v50 = vld [vmem:[%s2167_s0 + $0xf8] sm:$0xff] }
  0x4b   :  { %838 = vperm.xlu1 %1410, %v660_v51   ;;  %833 = vperm.xlu0 %1409, %v659_v52  }
  0x52   :  { %858 = vperm.xlu2 %1411, %v664_v53  }
  0x53   :  { %853 = vperm.xlu1 %1410, %v663_v54   ;;  %848 = vperm.xlu0 %1409, %v662_v55   ;;  %v691_v54 = vld [vmem:[%s2165_s3 + $0x1d8] sm:$0xff]  ;;  %v690_v55 = vld [vmem:[%s2165_s3 + $0x1d0] sm:$0xff] }
  0x54   :  { %1320 = vmatmul.msk.bf16.gmra.mxu0 %vm298_vm1, %v1352_v56  ;;  %1328 = vmatmul.msk.bf16.gmra.mxu1 %vm298_vm1, %v1360_v57  ;;  %v689_v56 = vld [vmem:[%s2165_s3 + $0x1c8] sm:$0xff] }
  0x55   :  { %1336 = vmatmul.msk.bf16.gmra.mxu2 %vm298_vm1, %v1368_v58  ;;  %1344 = vmatmul.msk.bf16.gmra.mxu3 %vm298_vm1, %v1376_v59 }
  0x5a   :  { %873 = vperm.xlu2 %1411, %v667_v60   ;;  %v1811_v60 = vld [vmem:[%s2168_s2] ss:$0 sm:$0xff] }
  0x5b   :  { %868 = vperm.xlu1 %1410, %v666_v61   ;;  %863 = vperm.xlu0 %1409, %v665_v62   ;;  %v694_v61 = vld [vmem:[%s2165_s3 + $0x1f0] sm:$0xff]  ;;  %v693_v62 = vld [vmem:[%s2165_s3 + $0x1e8] sm:$0xff] }
  0x5c   :  { %v1632_v63 = vpop.permute.xlu2 %718 }
  0x62   :  { %888 = vperm.xlu2 %1411, %v670_v0   ;;  %v692_v0 = vld [vmem:[%s2165_s3 + $0x1e0] sm:$0xff] }
  0x63   :  { %883 = vperm.xlu1 %1410, %v669_v1   ;;  %878 = vperm.xlu0 %1409, %v668_v2  }
  0x64   :  { %1321 = vmatmul.msk.bf16.gmra.mxu0 %vm298_vm1, %v1353_v3  ;;  %1329 = vmatmul.msk.bf16.gmra.mxu1 %vm298_vm1, %v1361_v4  ;;  %v1657_v7 = vpop.permute.xlu2 %723 }
  0x65   :  { %1337 = vmatmul.msk.bf16.gmra.mxu2 %vm298_vm1, %v1369_v5  ;;  %1345 = vmatmul.msk.bf16.gmra.mxu3 %vm298_vm1, %v1377_v6 }
  0x6a   :  { %903 = vperm.xlu2 %1411, %v673_v8  }
  0x6b   :  { %898 = vperm.xlu1 %1410, %v672_v9   ;;  %893 = vperm.xlu0 %1409, %v671_v10  }
  0x6c   :  { %v1670_v11 = vpop.permute.xlu2 %738 }
  0x72   :  { %918 = vperm.xlu2 %1411, %v676_v12  }
  0x73   :  { %913 = vperm.xlu1 %1410, %v675_v13   ;;  %908 = vperm.xlu0 %1409, %v674_v14  }
  0x74   :  { %1322 = vmatmul.msk.bf16.gmra.mxu0 %vm298_vm1, %v1354_v15  ;;  %1330 = vmatmul.msk.bf16.gmra.mxu1 %vm298_vm1, %v1362_v16  ;;  %v1695_v19 = vpop.permute.xlu2 %753 }
  0x75   :  { %2171 = vst [vmem:[#allocation2_spill] sm:$0xff] %v1695_v19  ;;  %1338 = vmatmul.msk.bf16.gmra.mxu2 %vm298_vm1, %v1370_v17  ;;  %1346 = vmatmul.msk.bf16.gmra.mxu3 %vm298_vm1, %v1378_v18  ;;  %v1699_v20 = vpop.permute.xlu1 %708  ;;  %v1701_v21 = vpop.permute.xlu0 %698  ;;  %v695_v17 = vld [vmem:[%s2165_s3 + $0x1f8] sm:$0xff] }
  0x7a   :  { %933 = vperm.xlu2 %1411, %v679_v22  }
  0x7b   :  { %928 = vperm.xlu1 %1410, %v678_v23   ;;  %923 = vperm.xlu0 %1409, %v677_v24  }
  0x7c   :  { %v1712_v25 = vpop.permute.xlu2 %768 }
  0x7d   :  { %2172 = vst [vmem:[#allocation3_spill] sm:$0xff] %v1712_v25  ;;  %v1714_v26 = vpop.permute.xlu1 %713  ;;  %v1716_v27 = vpop.permute.xlu0 %703 }
  0x82   :  { %948 = vperm.xlu2 %1411, %v682_v28  }
  0x83   :  { %943 = vperm.xlu1 %1410, %v681_v29   ;;  %938 = vperm.xlu0 %1409, %v680_v30  }
  0x84   :  { %1323 = vmatmul.msk.bf16.gmra.mxu0 %vm298_vm1, %v1355_v31  ;;  %1331 = vmatmul.msk.bf16.gmra.mxu1 %vm298_vm1, %v1363_v32  ;;  %v1741_v35 = vpop.permute.xlu2 %783 }
  0x85   :  { %1339 = vmatmul.msk.bf16.gmra.mxu2 %vm298_vm1, %v1371_v33  ;;  %1347 = vmatmul.msk.bf16.gmra.mxu3 %vm298_vm1, %v1379_v34  ;;  %v1745_v36 = vpop.permute.xlu1 %733  ;;  %v1747_v37 = vpop.permute.xlu0 %728 }
  0x8a   :  { %963 = vperm.xlu2 %1411, %v685_v38  }
  0x8b   :  { %958 = vperm.xlu1 %1410, %v684_v39   ;;  %953 = vperm.xlu0 %1409, %v683_v40  }
  0x8c   :  { %v1758_v41 = vpop.permute.xlu2 %798 }
  0x8d   :  { %v1760_v42 = vpop.permute.xlu1 %748  ;;  %v1762_v43 = vpop.permute.xlu0 %743 }
  0x8e   :  { %2173 = vst [vmem:[#allocation4_spill] sm:$0xff] %v1760_v42 }
  0x8f   :  { %2174 = vst [vmem:[#allocation5_spill] sm:$0xff] %v1762_v43 }
  0x92   :  { %978 = vperm.xlu2 %1411, %v688_v44  }
  0x93   :  { %973 = vperm.xlu1 %1410, %v687_v45   ;;  %968 = vperm.xlu0 %1409, %v686_v46  }
  0x94   :  { %1324 = vmatmul.msk.bf16.gmra.mxu0 %vm298_vm1, %v1356_v47  ;;  %1332 = vmatmul.msk.bf16.gmra.mxu1 %vm298_vm1, %v1364_v48  ;;  %v1787_v51 = vpop.permute.xlu2 %813 }
  0x95   :  { %1340 = vmatmul.msk.bf16.gmra.mxu2 %vm298_vm1, %v1372_v49  ;;  %1348 = vmatmul.msk.bf16.gmra.mxu3 %vm298_vm1, %v1380_v50  ;;  %v1791_v52 = vpop.permute.xlu1 %763  ;;  %v1793_v53 = vpop.permute.xlu0 %758 }
  0x96   :  { %2175 = vst [vmem:[#allocation6_spill] sm:$0xff] %v1791_v52 }
  0x97   :  { %2176 = vst [vmem:[#allocation7_spill] sm:$0xff] %v1793_v53 }
  0x9a   :  { %993 = vperm.xlu2 %1411, %v691_v54  }
  0x9b   :  { %988 = vperm.xlu1 %1410, %v690_v55   ;;  %983 = vperm.xlu0 %1409, %v689_v56  }
  0x9c   :  { %v1804_v57 = vpop.permute.xlu2 %828 }
  0x9d   :  { %2177 = vst [vmem:[#allocation8_spill] sm:$0xff] %v1804_v57  ;;  %v779_v58 = vpop.permute.xlu1 %778  ;;  %v1806_v59 = vpop.permute.xlu0 %773 }
  0x9e   :  { %2178 = vst [vmem:[#allocation9_spill] sm:$0xff] %v1806_v59 }
  0xa1   :  { %v408_v1 = vpop.f32.mrf.mxu0  ;;  %v448_v2 = vpop.f32.mrf.mxu1 }
  0xa2   :  { %v409_v3 = vadd.f32 %v1811_v60, %v408_v1  ;;  %v449_v4 = vadd.f32 %v1811_v60, %v448_v2  ;;  %1008 = vperm.xlu2 %1411, %v694_v61  }
  0xa3   :  { %1003 = vperm.xlu1 %1410, %v693_v62   ;;  %998 = vperm.xlu0 %1409, %v692_v0  }
  0xa4   :  { %v568_v5 = vmax.f32 %v409_v3, 0.0  ;;  %v584_v6 = vmax.f32 %v449_v4, 0.0  ;;  %v1824_v8 = vpop.permute.xlu2 %843 }
  0xa5   :  { %2179 = vst [vmem:[#allocation10_spill] sm:$0xff] %v1824_v8  ;;  %v794_v9 = vpop.permute.xlu1 %793  ;;  %v1826_v10 = vpop.permute.xlu0 %788 }
  0xa6   :  { %v1829_v12 = vmul.f32 %v1701_v21, %v568_v5  ;;  %v1831_v13 = vmul.f32 %v779_v58, %v584_v6 }
  0xa8   :  { %v488_v15 = vpop.f32.mrf.mxu2  ;;  %v1835_v16 = vpop.f32.mrf.mxu3 }
  0xa9   :  { %v489_v18 = vadd.f32 %v1811_v60, %v488_v15  ;;  %v410_v22 = vpop.f32.mrf.mxu0  ;;  %v450_v23 = vpop.f32.mrf.mxu1 }
  0xaa   :  { %v411_v24 = vadd.f32 %v1811_v60, %v410_v22  ;;  %v451_v21 = vadd.f32 %v1811_v60, %v450_v23 }
  0xab   :  { %v600_v28 = vmax.f32 %v489_v18, 0.0  ;;  %1013 = vperm.xlu0 %1409, %v695_v17  }
  0xac   :  { %v569_v29 = vmax.f32 %v411_v24, 0.0  ;;  %v585_v30 = vmax.f32 %v451_v21, 0.0  ;;  %v859_v31 = vpop.permute.xlu2 %858 }
  0xad   :  { %v1843_v32 = vmul.f32 %v859_v31, %v600_v28  ;;  %v1845_v33 = vpop.permute.xlu1 %808  ;;  %v1847_v34 = vpop.permute.xlu0 %803 }
  0xae   :  { %v1850_v38 = vmul.f32 %v1716_v27, %v569_v29  ;;  %v1853_v39 = vmul.f32 %v1741_v35, %v585_v30 }
  0xb0   :  { %v1857_v44 = vpop.f32.mrf.mxu2  ;;  %v1859_v45 = vpop.f32.mrf.mxu3 }
  0xb1   :  { %v413_v46 = vpop.f32.mrf.mxu0  ;;  %v453_v47 = vpop.f32.mrf.mxu1 }
  0xb4   :  { %v1861_v48 = vpop.permute.xlu2 %873 }
  0xb5   :  { %v1863_v49 = vpop.permute.xlu1 %823  ;;  %v1865_v50 = vpop.permute.xlu0 %818 }
  0xb6   :  { %2180 = vst [vmem:[#allocation11_spill] sm:$0xff] %v1863_v49 }
  0xb8   :  { %v493_v27 = vpop.f32.mrf.mxu2  ;;  %v533_v54 = vpop.f32.mrf.mxu3 }
  0xb9   :  { %v415_v55 = vpop.f32.mrf.mxu0  ;;  %v455_v35 = vpop.f32.mrf.mxu1  ;;  %v534_v25 = vadd.f32 %v1811_v60, %v533_v54 }
  0xba   :  { %v416_v56 = vadd.f32 %v1811_v60, %v415_v55  ;;  %v456_v58 = vadd.f32 %v1811_v60, %v455_v35 }
  0xbc   :  { %v571_v61 = vmax.f32 %v416_v56, 0.0  ;;  %v587_v62 = vmax.f32 %v456_v58, 0.0  ;;  %v1869_v0 = vpop.permute.xlu2 %888 }
  0xbd   :  { %v1871_v1 = vpop.permute.xlu1 %838  ;;  %v1873_v2 = vpop.permute.xlu0 %833 }
  0xbe   :  { %2181 = vst [vmem:[#allocation12_spill] sm:$0xff] %v1871_v1  ;;  %v1876_v3 = vmul.f32 %v1714_v26, %v571_v61  ;;  %v1878_v4 = vmul.f32 %v794_v9, %v587_v62  ;;  %v414_v61 = vadd.f32 %v1811_v60, %v413_v46  ;;  %v454_v62 = vadd.f32 %v1811_v60, %v453_v47 }
  0xbf   :  { %2182 = vst [vmem:[#allocation13_spill] sm:$0xff] %v1873_v2 }
  0xc0   :  { %2183 = vst [vmem:[#allocation14_spill] sm:$0xff] %v1878_v4  ;;  %v1882_v6 = vpop.f32.mrf.mxu2  ;;  %v1884_v15 = vpop.f32.mrf.mxu3  ;;  %v586_v59 = vmax.f32 %v454_v62, 0.0 }
  0xc1   :  { %v1886_v17 = vpop.f32.mrf.mxu0  ;;  %v1888_v18 = vpop.f32.mrf.mxu1 }
  0xc4   :  { %v1890_v22 = vpop.permute.xlu2 %903 }
  0xc5   :  { %2184 = vst [vmem:[#allocation15_spill] sm:$0xff] %v1890_v22  ;;  %v1892_v23 = vpop.permute.xlu1 %853  ;;  %v1894_v24 = vpop.permute.xlu0 %848 }
  0xc6   :  { %2185 = vst [vmem:[#allocation16_spill] sm:$0xff] %v1892_v23  ;;  %v570_v23 = vmax.f32 %v414_v61, 0.0  ;;  %v1034_v61 = vmul.f32 %v1826_v10, %v586_v59 }
  0xc7   :  { %2186 = vst [vmem:[#allocation17_spill] sm:$0xff] %v1894_v24  ;;  %v494_v24 = vadd.f32 %v1811_v60, %v493_v27  ;;  %v618_v27 = vmax.f32 %v534_v25, 0.0 }
  0xc8   :  { %v1896_v26 = vpop.f32.mrf.mxu2  ;;  %v1898_v9 = vpop.f32.mrf.mxu3  ;;  %v1018_v1 = vmul.f32 %v1699_v20, %v570_v23 }
  0xc9   :  { %v420_v21 = vpop.f32.mrf.mxu0  ;;  %v460_v28 = vpop.f32.mrf.mxu1  ;;  %v602_v62 = vmax.f32 %v494_v24, 0.0 }
  0xca   :  { %v421_v47 = vadd.f32 %v1811_v60, %v420_v21  ;;  %v1082_v2 = vmax.f32 %v1018_v1, %v1034_v61 }
  0xcc   :  { %v1900_v29 = vpop.permute.xlu2 %918  ;;  %v573_v49 = vmax.f32 %v421_v47, 0.0 }
  0xcd   :  { %2187 = vst [vmem:[#allocation18_spill] sm:$0xff] %v1900_v29  ;;  %v869_v30 = vpop.permute.xlu1 %868  ;;  %v1902_v31 = vpop.permute.xlu0 %863 }
  0xce   :  { %v1050_v54 = vmul.f32 %v869_v30, %v602_v62 }
  0xd0   :  { %v500_v55 = vpop.f32.mrf.mxu2  ;;  %v540_v35 = vpop.f32.mrf.mxu3 }
  0xd1   :  { %v1904_v56 = vpop.f32.mrf.mxu0  ;;  %v1906_v58 = vpop.f32.mrf.mxu1  ;;  %v501_v19 = vadd.f32 %v1811_v60, %v500_v55  ;;  %v541_v21 = vadd.f32 %v1811_v60, %v540_v35 }
  0xd3   :  { %v605_v1 = vmax.f32 %v501_v19, 0.0  ;;  %v621_v24 = vmax.f32 %v541_v21, 0.0 }
  0xd4   :  { %v1910_v5 = vpop.permute.xlu2 %933 }
  0xd5   :  { %2188 = vst [vmem:[#allocation19_spill] sm:$0xff] %v1910_v5  ;;  %v884_v14 = vpop.permute.xlu1 %883  ;;  %v1912_v40 = vpop.permute.xlu0 %878  ;;  %v461_v5 = vadd.f32 %v1811_v60, %v460_v28 }
  0xd6   :  { %v1053_v35 = vmul.f32 %v884_v14, %v605_v1 }
  0xd7   :  { %v589_v43 = vmax.f32 %v461_v5, 0.0 }
  0xd8   :  { %v1916_v29 = vpop.f32.mrf.mxu2  ;;  %v1918_v8 = vpop.f32.mrf.mxu3 }
  0xd9   :  { %v1920_v52 = vpop.f32.mrf.mxu0  ;;  %v1922_v46 = vpop.f32.mrf.mxu1  ;;  %v1037_v23 = vmul.f32 %v1847_v34, %v589_v43 }
  0xdc   :  { %v949_v53 = vpop.permute.xlu2 %948 }
  0xdd   :  { %v1066_v22 = vmul.f32 %v949_v53, %v618_v27  ;;  %v899_v57 = vpop.permute.xlu1 %898  ;;  %v1928_v42 = vpop.permute.xlu0 %893  ;;  %v1021_v53 = vmul.f32 %v1657_v7, %v573_v49 }
  0xdf   :  { %v1098_v28 = vmax.f32 %v1050_v54, %v1066_v22  ;;  %v1085_v34 = vmax.f32 %v1021_v53, %v1037_v23 }
  0xe0   :  { %v1932_v4 = vpop.f32.mrf.mxu2  ;;  %v1934_v20 = vpop.f32.mrf.mxu3 }
  0xe1   :  { %v1114_v59 = vmax.f32 %v1082_v2, %v1098_v28  ;;  %v428_v25 = vpop.f32.mrf.mxu0  ;;  %v468_v10 = vpop.f32.mrf.mxu1 }
  0xe2   :  { %v429_v5 = vadd.f32 %v1811_v60, %v428_v25  ;;  %v469_v55 = vadd.f32 %v1811_v60, %v468_v10 }
  0xe3   :  { %v1130_v30 = vpack.c.bf16 %v1114_v59, %v1114_v59 }
  0xe4   :  { %v964_v22 = vpop.permute.xlu2 %963  ;;  %v576_v43 = vmax.f32 %v429_v5, 0.0  ;;  %v592_v49 = vmax.f32 %v469_v55, 0.0 }
  0xe5   :  { %1147 = vst.msk [vmem:[%s2169_s4 + $0x8] sm:$0xf] %vm1144_vm2, %v1130_v30  ;;  %v1069_v2 = vmul.f32 %v964_v22, %v621_v24  ;;  %v1944_v47 = vpop.permute.xlu1 %913  ;;  %v1946_v7 = vpop.permute.xlu0 %908 }
  0xe6   :  { %v1024_v59 = vmul.f32 %v1670_v11, %v576_v43  ;;  %v1040_v25 = vmul.f32 %v1865_v50, %v592_v49  ;;  %v496_v11 = vadd.f32 %v1811_v60, %v1882_v6  ;;  %v531_v43 = vadd.f32 %v1811_v60, %v1859_v45 }
  0xe7   :  { %v1101_v19 = vmax.f32 %v1053_v35, %v1069_v2  ;;  %v529_v35 = vadd.f32 %v1811_v60, %v1835_v16  ;;  %v491_v2 = vadd.f32 %v1811_v60, %v1857_v44  ;;  %v459_v6 = vadd.f32 %v1811_v60, %v1888_v18 }
  0xe8   :  { %v508_v61 = vpop.f32.mrf.mxu2  ;;  %v548_v62 = vpop.f32.mrf.mxu3  ;;  %v1088_v22 = vmax.f32 %v1024_v59, %v1040_v25  ;;  %v464_v16 = vadd.f32 %v1811_v60, %v1906_v58  ;;  %v466_v18 = vadd.f32 %v1811_v60, %v1922_v46  ;;  %v617_v59 = vmax.f32 %v531_v43, 0.0 }
  0xe9   :  { %v1117_v27 = vmax.f32 %v1085_v34, %v1101_v19  ;;  %v509_v54 = vadd.f32 %v1811_v60, %v508_v61  ;;  %v549_v14 = vadd.f32 %v1811_v60, %v548_v62  ;;  %v1950_v21 = vpop.f32.mrf.mxu0  ;;  %v1952_v28 = vpop.f32.mrf.mxu1  ;;  %v424_v19 = vadd.f32 %v1811_v60, %v1904_v56 }
  0xea   :  { %v603_v62 = vmax.f32 %v496_v11, 0.0  ;;  %v616_v56 = vmax.f32 %v529_v35, 0.0  ;;  %v588_v25 = vmax.f32 %v459_v6, 0.0 }
  0xeb   :  { %v1133_v10 = vpack.c.bf16 %v1117_v27, %v1117_v27  ;;  %v608_v5 = vmax.f32 %v509_v54, 0.0  ;;  %v624_v53 = vmax.f32 %v549_v14, 0.0  ;;  %v426_v27 = vadd.f32 %v1811_v60, %v1920_v52 }
  0xec   :  { %v979_v23 = vpop.permute.xlu2 %978  ;;  %v601_v14 = vmax.f32 %v491_v2, 0.0  ;;  %v1051_v11 = vmul.f32 %v1861_v48, %v603_v62  ;;  %v539_v2 = vadd.f32 %v1811_v60, %v1898_v9  ;;  %v2021_v9 = vadd.f32 %v1811_v60, %v1918_v8 }
  0xed   :  { %1150 = vst.msk [vmem:[%s2169_s4 + $0x14] sm:$0xf] %vm1144_vm2, %v1133_v10  ;;  %v1056_v1 = vmul.f32 %v899_v57, %v608_v5  ;;  %v1072_v24 = vmul.f32 %v979_v23, %v624_v53  ;;  %v1960_v30 = vpop.permute.xlu1 %928  ;;  %v1962_v55 = vpop.permute.xlu0 %923  ;;  %v419_v57 = vadd.f32 %v1811_v60, %v1886_v17  ;;  %v536_v17 = vadd.f32 %v1811_v60, %v1884_v15 }
  0xee   :  { %v499_v10 = vadd.f32 %v1811_v60, %v1896_v26  ;;  %v574_v5 = vmax.f32 %v424_v19, 0.0  ;;  %v590_v53 = vmax.f32 %v464_v16, 0.0  ;;  %v1049_v46 = vmul.f32 %v1902_v31, %v601_v14 }
  0xef   :  { %v1104_v50 = vmax.f32 %v1056_v1, %v1072_v24  ;;  %v572_v58 = vmax.f32 %v419_v57, 0.0  ;;  %v504_v23 = vadd.f32 %v1811_v60, %v1916_v29  ;;  %v575_v26 = vmax.f32 %v426_v27, 0.0 }
  0xf0   :  { %v1974_v34 = vpop.f32.mrf.mxu2  ;;  %v1976_v49 = vpop.f32.mrf.mxu3  ;;  %v1036_v29 = vmul.f32 %v1758_v41, %v588_v25  ;;  %v604_v19 = vmax.f32 %v499_v10, 0.0  ;;  %v2014_v48 = vmul.f32 %v1747_v37, %v574_v5  ;;  %v2017_v16 = vmul.f32 %v1845_v33, %v590_v53 }
  0xf1   :  { %v1120_v44 = vmax.f32 %v1088_v22, %v1104_v50  ;;  %v1984_v61 = vpop.f32.mrf.mxu0  ;;  %v1986_v45 = vpop.f32.mrf.mxu1  ;;  %v619_v22 = vmax.f32 %v536_v17, 0.0  ;;  %v591_v50 = vmax.f32 %v466_v18, 0.0  ;;  %v1020_v35 = vmul.f32 %v1632_v63, %v572_v58 }
  0xf2   :  { %v606_v17 = vmax.f32 %v504_v23, 0.0  ;;  %v2190_v41 = vmax.f32 %v1829_v12, %v1831_v13  ;;  %v2030_v37 = vmul.f32 %v1745_v36, %v575_v26  ;;  %v620_v8 = vmax.f32 %v539_v2, 0.0 }
  0xf3   :  { %v1136_v54 = vpack.c.bf16 %v1120_v44, %v1120_v44  ;;  %v2033_v33 = vmul.f32 %v1787_v51, %v591_v50  ;;  %v1084_v14 = vmax.f32 %v1020_v35, %v1036_v29  ;;  %v1052_v12 = vmul.f32 %v1912_v40, %v604_v19  ;;  %v2193_v19 = vld [vmem:[#allocation2_spill] sm:$0xff] }
  0xf4   :  { %v546_v36 = vadd.f32 %v1811_v60, %v1934_v20  ;;  %v431_v51 = vadd.f32 %v1811_v60, %v1950_v21  ;;  %v1086_v58 = vmax.f32 %v2014_v48, %v2017_v16  ;;  %v622_v25 = vmax.f32 %v2021_v9, 0.0 }
  0xf5   :  { %1153 = vst.msk [vmem:[%s2169_s4 + $0x20] sm:$0xf] %vm1144_vm2, %v1136_v54  ;;  %v944_v52 = vpop.permute.xlu1 %943  ;;  %v939_v15 = vpop.permute.xlu0 %938  ;;  %v1054_v10 = vmul.f32 %v1869_v0, %v606_v17  ;;  %v1087_v20 = vmax.f32 %v2030_v37, %v2033_v33  ;;  %v434_v2 = vadd.f32 %v1811_v60, %v1984_v61  ;;  %v551_v33 = vadd.f32 %v1811_v60, %v1976_v49 }
  0xf6   :  { %v1065_v1 = vmul.f32 %v944_v52, %v617_v59  ;;  %v1064_v24 = vmul.f32 %v939_v15, %v616_v56  ;;  %v506_v56 = vadd.f32 %v1811_v60, %v1932_v4  ;;  %v471_v52 = vadd.f32 %v1811_v60, %v1952_v28  ;;  %v2191_v28 = vld [vmem:[#allocation14_spill] sm:$0xff] }
  0xf7   :  { %v577_v0 = vmax.f32 %v431_v51, 0.0 }
  0xf8   :  { %v1097_v43 = vmax.f32 %v1049_v46, %v1065_v1  ;;  %v1096_v57 = vmax.f32 %v1843_v32, %v1064_v24  ;;  %v2008_v6 = vpop.f32.mrf.mxu2  ;;  %v2010_v31 = vpop.f32.mrf.mxu3  ;;  %v2189_v32 = vmax.f32 %v1850_v38, %v1853_v39  ;;  %v607_v53 = vmax.f32 %v506_v56, 0.0  ;;  %v2195_v56 = vld [vmem:[#allocation5_spill] sm:$0xff] }
  0xf9   :  { %v435_v63 = vpop.f32.mrf.mxu0  ;;  %v475_v44 = vpop.f32.mrf.mxu1  ;;  %v623_v24 = vmax.f32 %v546_v36, 0.0  ;;  %v2196_v36 = vld [vmem:[#allocation11_spill] sm:$0xff] }
  0xfa   :  { %v1113_v62 = vmax.f32 %v2189_v32, %v1097_v43  ;;  %v1112_v27 = vmax.f32 %v2190_v41, %v1096_v57  ;;  %v436_v18 = vadd.f32 %v1811_v60, %v435_v63  ;;  %v476_v54 = vadd.f32 %v1811_v60, %v475_v44  ;;  %v2194_v44 = vld [vmem:[#allocation13_spill] sm:$0xff] }
  0xfb   :  { %v474_v43 = vadd.f32 %v1811_v60, %v1986_v45  ;;  %v593_v41 = vmax.f32 %v471_v52, 0.0  ;;  %v511_v45 = vadd.f32 %v1811_v60, %v1974_v34 }
  0xfc   :  { %v1129_v38 = vpack.c.bf16 %v1113_v62, %v1113_v62  ;;  %v1128_v39 = vpack.c.bf16 %v1112_v27, %v1112_v27  ;;  %v579_v21 = vmax.f32 %v436_v18, 0.0  ;;  %v595_v5 = vmax.f32 %v476_v54, 0.0  ;;  %v994_v27 = vpop.permute.xlu2 %993 }
  0xfd   :  { %v959_v13 = vpop.permute.xlu1 %958  ;;  %v954_v59 = vpop.permute.xlu0 %953  ;;  %v1055_v62 = vmul.f32 %v1928_v42, %v607_v53  ;;  %v514_v42 = vadd.f32 %v1811_v60, %v2008_v6  ;;  %v594_v49 = vmax.f32 %v474_v43, 0.0  ;;  %v1041_v51 = vmul.f32 %v2196_v36, %v593_v41 }
  0xfe   :  { %1146 = vst.msk [vmem:[%s2169_s4 + $0x4] sm:$0xf] %vm1144_vm2, %v1129_v38  ;;  %v1068_v4 = vmul.f32 %v959_v13, %v620_v8  ;;  %v1067_v40 = vmul.f32 %v954_v59, %v619_v22  ;;  %v1027_v63 = vmul.f32 %v2193_v19, %v579_v21  ;;  %v1043_v17 = vmul.f32 %v2194_v44, %v595_v5 }
  0xff   :  { %1145 = vst.msk [vmem:[%s2169_s4] sm:$0xf] %vm1144_vm2, %v1128_v39  ;;  %v2078_v38 = vmul.f32 %v2195_v56, %v577_v0  ;;  %v554_v6 = vadd.f32 %v1811_v60, %v2010_v31  ;;  %v609_v21 = vmax.f32 %v511_v45, 0.0  ;;  %v2197_v31 = vld [vmem:[#allocation4_spill] sm:$0xff]  ;;  %v2200_v45 = vld [vmem:[#allocation7_spill] sm:$0xff] }
 0x100   :  { %v1100_v15 = vmax.f32 %v1052_v12, %v1068_v4  ;;  %v1099_v46 = vmax.f32 %v1051_v11, %v1067_v40  ;;  %v515_v23 = vpop.f32.mrf.mxu2  ;;  %v555_v1 = vpop.f32.mrf.mxu3  ;;  %v2192_v11 = vmax.f32 %v1876_v3, %v2191_v28  ;;  %v1091_v12 = vmax.f32 %v1027_v63, %v1043_v17 }
 0x101   :  { %v516_v22 = vadd.f32 %v1811_v60, %v515_v23  ;;  %v556_v26 = vadd.f32 %v1811_v60, %v555_v1  ;;  %v438_v50 = vpop.f32.mrf.mxu0  ;;  %v478_v35 = vpop.f32.mrf.mxu1  ;;  %v626_v43 = vmax.f32 %v554_v6, 0.0  ;;  %v1089_v17 = vmax.f32 %v2078_v38, %v1041_v51  ;;  %v2201_v38 = vld [vmem:[#allocation12_spill] sm:$0xff]  ;;  %v2203_v6 = vld [vmem:[#allocation10_spill] sm:$0xff] }
 0x102   :  { %v1116_v57 = vmax.f32 %v1084_v14, %v1100_v15  ;;  %v1115_v29 = vmax.f32 %v2192_v11, %v1099_v46  ;;  %v578_v14 = vmax.f32 %v434_v2, 0.0  ;;  %v439_v53 = vadd.f32 %v1811_v60, %v438_v50  ;;  %v2199_v11 = vld [vmem:[#allocation15_spill] sm:$0xff] }
 0x103   :  { %v611_v9 = vmax.f32 %v516_v22, 0.0  ;;  %v627_v32 = vmax.f32 %v556_v26, 0.0  ;;  %v610_v46 = vmax.f32 %v514_v42, 0.0  ;;  %v479_v23 = vadd.f32 %v1811_v60, %v478_v35 }
 0x104   :  { %v1132_v37 = vpack.c.bf16 %v1116_v57, %v1116_v57  ;;  %v1131_v61 = vpack.c.bf16 %v1115_v29, %v1115_v29  ;;  %v1026_v0 = vmul.f32 %v2197_v31, %v578_v14  ;;  %v1057_v29 = vmul.f32 %v2199_v11, %v609_v21  ;;  %v2204_v21 = vld [vmem:[#allocation18_spill] sm:$0xff] }
 0x105   :  { %v1059_v3 = vmul.f32 %v1944_v47, %v611_v9  ;;  %v1075_v18 = vmul.f32 %v994_v27, %v627_v32  ;;  %v974_v54 = vpop.permute.xlu1 %973  ;;  %v969_v8 = vpop.permute.xlu0 %968  ;;  %v580_v48 = vmax.f32 %v439_v53, 0.0  ;;  %v1058_v35 = vmul.f32 %v1946_v7, %v610_v46 }
 0x106   :  { %1149 = vst.msk [vmem:[%s2169_s4 + $0x10] sm:$0xf] %vm1144_vm2, %v1132_v37  ;;  %v1071_v34 = vmul.f32 %v974_v54, %v623_v24  ;;  %v1070_v39 = vmul.f32 %v969_v8, %v622_v25  ;;  %v625_v25 = vmax.f32 %v551_v33, 0.0  ;;  %v596_v19 = vmax.f32 %v479_v23, 0.0 }
 0x107   :  { %1148 = vst.msk [vmem:[%s2169_s4 + $0xc] sm:$0xf] %vm1144_vm2, %v1131_v61  ;;  %v1107_v47 = vmax.f32 %v1059_v3, %v1075_v18  ;;  %v1028_v33 = vmul.f32 %v2200_v45, %v580_v48 }
 0x108   :  { %v1103_v13 = vmax.f32 %v1055_v62, %v1071_v34  ;;  %v1102_v59 = vmax.f32 %v1054_v10, %v1070_v39  ;;  %v518_v4 = vpop.f32.mrf.mxu2  ;;  %v558_v40 = vpop.f32.mrf.mxu3  ;;  %v2198_v10 = vld [vmem:[#allocation8_spill] sm:$0xff]  ;;  %v1044_v42 = vmul.f32 %v2201_v38, %v596_v19 }
 0x109   :  { %v1123_v5 = vmax.f32 %v1091_v12, %v1107_v47  ;;  %v440_v52 = vpop.f32.mrf.mxu0  ;;  %v480_v15 = vpop.f32.mrf.mxu1  ;;  %v1042_v22 = vmul.f32 %v2198_v10, %v594_v49  ;;  %v519_v16 = vadd.f32 %v1811_v60, %v518_v4  ;;  %v559_v9 = vadd.f32 %v1811_v60, %v558_v40  ;;  %v2202_v12 = vld [vmem:[#allocation6_spill] sm:$0xff] }
 0x10a   :  { %v1119_v1 = vmax.f32 %v1087_v20, %v1103_v13  ;;  %v1118_v24 = vmax.f32 %v1086_v58, %v1102_v59  ;;  %v441_v2 = vadd.f32 %v1811_v60, %v440_v52  ;;  %v481_v28 = vadd.f32 %v1811_v60, %v480_v15 }
 0x10b   :  { %v1139_v26 = vpack.c.bf16 %v1123_v5, %v1123_v5  ;;  %v1090_v62 = vmax.f32 %v1026_v0, %v1042_v22  ;;  %v612_v3 = vmax.f32 %v519_v16, 0.0  ;;  %v628_v49 = vmax.f32 %v559_v9, 0.0  ;;  %v2206_v16 = vld [vmem:[#allocation17_spill] sm:$0xff] }
 0x10c   :  { %v1135_v57 = vpack.c.bf16 %v1119_v1, %v1119_v1  ;;  %v1134_v50 = vpack.c.bf16 %v1118_v24, %v1118_v24  ;;  %v581_v32 = vmax.f32 %v441_v2, 0.0  ;;  %v597_v7 = vmax.f32 %v481_v28, 0.0 }
 0x10d   :  { %1156 = vst.msk [vmem:[%s2169_s4 + $0x2c] sm:$0xf] %vm1144_vm2, %v1139_v26  ;;  %v989_v58 = vpop.permute.xlu1 %988  ;;  %v984_v20 = vpop.permute.xlu0 %983  ;;  %v1092_v24 = vmax.f32 %v1028_v33, %v1044_v42 }
 0x10e   :  { %1152 = vst.msk [vmem:[%s2169_s4 + $0x1c] sm:$0xf] %vm1144_vm2, %v1135_v57  ;;  %v1074_v63 = vmul.f32 %v989_v58, %v626_v43  ;;  %v1073_v44 = vmul.f32 %v984_v20, %v625_v25  ;;  %v1029_v47 = vmul.f32 %v2202_v12, %v581_v32  ;;  %v1045_v13 = vmul.f32 %v2203_v6, %v597_v7 }
 0x10f   :  { %1151 = vst.msk [vmem:[%s2169_s4 + $0x18] sm:$0xf] %vm1144_vm2, %v1134_v50  ;;  %v1060_v25 = vmul.f32 %v2204_v21, %v612_v3  ;;  %v2205_v50 = vld [vmem:[#allocation3_spill] sm:$0xff]  ;;  %v2207_v3 = vld [vmem:[#allocation9_spill] sm:$0xff] }
 0x110   :  { %v1106_v41 = vmax.f32 %v1058_v35, %v1074_v63  ;;  %v1105_v27 = vmax.f32 %v1057_v29, %v1073_v44  ;;  %v520_v37 = vpop.f32.mrf.mxu2  ;;  %v560_v61 = vpop.f32.mrf.mxu3  ;;  %v1093_v31 = vmax.f32 %v1029_v47, %v1045_v13 }
 0x111   :  { %v521_v18 = vadd.f32 %v1811_v60, %v520_v37  ;;  %v561_v54 = vadd.f32 %v1811_v60, %v560_v61  ;;  %v443_v8 = vpop.f32.mrf.mxu0  ;;  %v483_v56 = vpop.f32.mrf.mxu1 }
 0x112   :  { %v1122_v34 = vmax.f32 %v1090_v62, %v1106_v41  ;;  %v1121_v39 = vmax.f32 %v1089_v17, %v1105_v27  ;;  %v444_v14 = vadd.f32 %v1811_v60, %v443_v8  ;;  %v484_v51 = vadd.f32 %v1811_v60, %v483_v56  ;;  %v1009_v63 = vpop.permute.xlu2 %1008  ;;  %v2208_v8 = vld [vmem:[#allocation16_spill] sm:$0xff] }
 0x113   :  { %v613_v36 = vmax.f32 %v521_v18, 0.0  ;;  %v629_v40 = vmax.f32 %v561_v54, 0.0 }
 0x114   :  { %v1138_v59 = vpack.c.bf16 %v1122_v34, %v1122_v34  ;;  %v1137_v4 = vpack.c.bf16 %v1121_v39, %v1121_v39  ;;  %v582_v15 = vmax.f32 %v444_v14, 0.0  ;;  %v598_v1 = vmax.f32 %v484_v51, 0.0  ;;  %v2209_v39 = vld [vmem:[#allocation19_spill] sm:$0xff] }
 0x115   :  { %v1004_v5 = vpop.permute.xlu1 %1003  ;;  %v999_v53 = vpop.permute.xlu0 %998  ;;  %v1061_v52 = vmul.f32 %v1962_v55, %v613_v36 }
 0x116   :  { %1155 = vst.msk [vmem:[%s2169_s4 + $0x28] sm:$0xf] %vm1144_vm2, %v1138_v59  ;;  %v1077_v46 = vmul.f32 %v1004_v5, %v629_v40  ;;  %v1076_v23 = vmul.f32 %v999_v53, %v628_v49  ;;  %v1030_v28 = vmul.f32 %v2205_v50, %v582_v15  ;;  %v1046_v58 = vmul.f32 %v2206_v16, %v598_v1 }
 0x117   :  { %1154 = vst.msk [vmem:[%s2169_s4 + $0x24] sm:$0xf] %vm1144_vm2, %v1137_v4 }
 0x118   :  { %v1109_v0 = vmax.f32 %v1061_v52, %v1077_v46  ;;  %v1108_v10 = vmax.f32 %v1060_v25, %v1076_v23  ;;  %v523_v22 = vpop.f32.mrf.mxu2  ;;  %v563_v26 = vpop.f32.mrf.mxu3  ;;  %v1094_v7 = vmax.f32 %v1030_v28, %v1046_v58 }
 0x119   :  { %v524_v2 = vadd.f32 %v1811_v60, %v523_v22  ;;  %v564_v43 = vadd.f32 %v1811_v60, %v563_v26  ;;  %v445_v55 = vpop.f32.mrf.mxu0  ;;  %v485_v57 = vpop.f32.mrf.mxu1 }
 0x11a   :  { %v1125_v11 = vmax.f32 %v1093_v31, %v1109_v0  ;;  %v1124_v29 = vmax.f32 %v1092_v24, %v1108_v10  ;;  %v446_v48 = vadd.f32 %v1811_v60, %v445_v55  ;;  %v486_v19 = vadd.f32 %v1811_v60, %v485_v57 }
 0x11b   :  { %v614_v20 = vmax.f32 %v524_v2, 0.0  ;;  %v630_v35 = vmax.f32 %v564_v43, 0.0 }
 0x11c   :  { %v1141_v44 = vpack.c.bf16 %v1125_v11, %v1125_v11  ;;  %v1140_v17 = vpack.c.bf16 %v1124_v29, %v1124_v29  ;;  %v583_v62 = vmax.f32 %v446_v48, 0.0  ;;  %v599_v27 = vmax.f32 %v486_v19, 0.0 }
 0x11d   :  { %v1062_v9 = vmul.f32 %v1960_v30, %v614_v20  ;;  %v1078_v32 = vmul.f32 %v1009_v63, %v630_v35  ;;  %v1014_v34 = vpop.permute.xlu0 %1013 }
 0x11e   :  { %1158 = vst.msk [vmem:[%s2169_s4 + $0x34] sm:$0xf] %vm1144_vm2, %v1141_v44  ;;  %v1031_v18 = vmul.f32 %v2207_v3, %v583_v62  ;;  %v1047_v56 = vmul.f32 %v2208_v8, %v599_v27 }
 0x11f   :  { %1157 = vst.msk [vmem:[%s2169_s4 + $0x30] sm:$0xf] %vm1144_vm2, %v1140_v17  ;;  %v1110_v41 = vmax.f32 %v1062_v9, %v1078_v32 }
 0x120   :  { %v525_v37 = vpop.f32.mrf.mxu2  ;;  %v565_v61 = vpop.f32.mrf.mxu3  ;;  %v1095_v12 = vmax.f32 %v1031_v18, %v1047_v56 }
 0x121   :  { %v1126_v45 = vmax.f32 %v1094_v7, %v1110_v41  ;;  %v526_v30 = vadd.f32 %v1811_v60, %v525_v37  ;;  %v566_v33 = vadd.f32 %v1811_v60, %v565_v61 }
 0x123   :  { %v1142_v54 = vpack.c.bf16 %v1126_v45, %v1126_v45  ;;  %v615_v38 = vmax.f32 %v526_v30, 0.0  ;;  %v631_v42 = vmax.f32 %v566_v33, 0.0 }
 0x125   :  { %1159 = vst.msk [vmem:[%s2169_s4 + $0x38] sm:$0xf] %vm1144_vm2, %v1142_v54  ;;  %v1063_v14 = vmul.f32 %v2209_v39, %v615_v38  ;;  %v1079_v49 = vmul.f32 %v1014_v34, %v631_v42 }
 0x127   :  { %v1111_v47 = vmax.f32 %v1063_v14, %v1079_v49 }
 0x129   :  { %v1127_v36 = vmax.f32 %v1095_v12, %v1111_v47 }
 0x12b   :  { %v1143_v60 = vpack.c.bf16 %v1127_v36, %v1127_v36 }
 0x12d   :  { %1160 = vst.msk [vmem:[%s2169_s4 + $0x3c] sm:$0xf] %vm1144_vm2, %v1143_v60 }

// kernel: cnn_forward.4
= control target key start
LH: loop header
LB: loop body
LE: loop exit
PB: predicated region body
PF: predicated region fallthrough
CT: control target
= control target key end

     0   :  { %vm766_vm0 = vcmask 261120   ;;  %vm1278_vm1 = vcmask 519168   ;;  %s2622_s1 = inlined_call_operand.vmem [shape: bf16[800,64], index: 1, kind: input, shape index: {}]   ;;  %s2623_s2 = inlined_call_operand.vmem [shape: f32[1,64], index: 2, kind: input, shape index: {}]   ;;  %s2624_s0 = inlined_call_operand.vmem [shape: bf16[128,800], index: 0, kind: input, shape index: {}]   ;;  %s2625_s3 = inlined_call_operand.vmem [shape: f32[128,1], index: 3, kind: input, shape index: {}]   ;;  %s2626_s4 = inlined_call_operand.vmem [shape: bf16[32,64], index: 4, kind: output, shape index: {}]  }
   0x1   :  { %v1782_v0 = vld [vmem:[%s2622_s1 + $0x38] sm:$0xff]  ;;  %v1781_v3 = vld [vmem:[%s2622_s1 + $0x30] sm:$0xff]  ;;  %v1780_v6 = vld [vmem:[%s2622_s1 + $0x28] sm:$0xff] }
   0x2   :  { %v1886_v1 = vld [vmem:[%s2622_s1 + $0xb8] sm:$0xff]  ;;  %791 = vmatpush.bf16.msra.mxu0 %v1782_v0  ;;  %1825 = vmatpush.bf16.msra.mxu3 %v1782_v0  ;;  %v1901_v4 = vld [vmem:[%s2622_s1 + $0xb0] sm:$0xff]  ;;  %v1916_v7 = vld [vmem:[%s2622_s1 + $0xa8] sm:$0xff] }
   0x3   :  { %v1891_v2 = vld [vmem:[%s2622_s1 + $0x78] sm:$0xff]  ;;  %1841 = vmatpush.bf16.msra.mxu2 %v1886_v1  ;;  %v1906_v5 = vld [vmem:[%s2622_s1 + $0x70] sm:$0xff]  ;;  %v1921_v8 = vld [vmem:[%s2622_s1 + $0x68] sm:$0xff] }
   0x4   :  { %1833 = vmatpush.bf16.msra.mxu1 %v1891_v2  ;;  %v1779_v9 = vld [vmem:[%s2622_s1 + $0x20] sm:$0xff]  ;;  %v1778_v12 = vld [vmem:[%s2622_s1 + $0x18] sm:$0xff]  ;;  %v1777_v15 = vld [vmem:[%s2622_s1 + $0x10] sm:$0xff] }
   0x5   :  { %v1931_v10 = vld [vmem:[%s2622_s1 + $0xa0] sm:$0xff]  ;;  %v1946_v13 = vld [vmem:[%s2622_s1 + $0x98] sm:$0xff]  ;;  %v1961_v16 = vld [vmem:[%s2622_s1 + $0x90] sm:$0xff] }
   0x6   :  { %792 = vmatpush.bf16.msra.mxu0 %v1781_v3  ;;  %1826 = vmatpush.bf16.msra.mxu3 %v1781_v3  ;;  %v1936_v11 = vld [vmem:[%s2622_s1 + $0x60] sm:$0xff]  ;;  %v1951_v14 = vld [vmem:[%s2622_s1 + $0x58] sm:$0xff]  ;;  %v1966_v17 = vld [vmem:[%s2622_s1 + $0x50] sm:$0xff] }
   0x7   :  { %1842 = vmatpush.bf16.msra.mxu2 %v1901_v4  ;;  %v1776_v18 = vld [vmem:[%s2622_s1 + $0x8] sm:$0xff]  ;;  %v1775_v21 = vld [vmem:[%s2622_s1] sm:$0xff]  ;;  %v1722_v25 = vld [vmem:[%s2624_s0 + $0x18] sm:$0xf0] }
   0x8   :  { %1834 = vmatpush.bf16.msra.mxu1 %v1906_v5  ;;  %v1976_v19 = vld [vmem:[%s2622_s1 + $0x88] sm:$0xff]  ;;  %v1989_v22 = vld [vmem:[%s2622_s1 + $0x80] sm:$0xff]  ;;  %v1345_v26 = vld [vmem:[%s2624_s0 + $0x70] sm:$0xf] }
   0x9   :  { %v1981_v20 = vld [vmem:[%s2622_s1 + $0x48] sm:$0xff]  ;;  %v1994_v23 = vld [vmem:[%s2622_s1 + $0x40] sm:$0xff]  ;;  %v1353_v28 = vld [vmem:[%s2624_s0 + $0x78] sm:$0xf] }
   0xa   :  { %793 = vmatpush.bf16.msra.mxu0 %v1780_v6  ;;  %1827 = vmatpush.bf16.msra.mxu3 %v1780_v6  ;;  %v1289_v24 = vld [vmem:[%s2624_s0] sm:$0xf]  ;;  %v1736_v27 = vld [vmem:[%s2624_s0 + $0x88] sm:$0xf0]  ;;  %v1737_v29 = vld [vmem:[%s2624_s0 + $0x90] sm:$0xf0] }
   0xb   :  { %1843 = vmatpush.bf16.msra.mxu2 %v1916_v7  ;;  %v1733_v30 = vld [vmem:[%s2624_s0 + $0x74] sm:$0xf]  ;;  %v1347_v31 = vld [vmem:[%s2624_s0 + $0x8c] sm:$0xf0]  ;;  %v1806_v32 = vld [vmem:[%s2622_s1 + $0xf8] sm:$0xff]  ;;  %v1290_v33 = vor.u32 %v1722_v25, %v1289_v24  ;;  %v1346_v34 = vor.u32 %v1736_v27, %v1345_v26  ;;  %v1354_v35 = vor.u32 %v1737_v29, %v1353_v28 }
   0xc   :  { %1835 = vmatpush.bf16.msra.mxu1 %v1921_v8  ;;  %v1350_v36 = vor.u32 %v1733_v30, %v1347_v31  ;;  %v1824_v37 = vld [vmem:[%s2622_s1 + $0x188] sm:$0xff]  ;;  %v1822_v38 = vld [vmem:[%s2622_s1 + $0x178] sm:$0xff]  ;;  %v1805_v39 = vld [vmem:[%s2622_s1 + $0xf0] sm:$0xff] }
   0xd   :  { %v1821_v40 = vld [vmem:[%s2622_s1 + $0x170] sm:$0xff]  ;;  %v1804_v41 = vld [vmem:[%s2622_s1 + $0xe8] sm:$0xff]  ;;  %v1803_v43 = vld [vmem:[%s2622_s1 + $0xe0] sm:$0xff] }
   0xe   :  { %794 = vmatpush.bf16.msra.mxu0 %v1779_v9  ;;  %1828 = vmatpush.bf16.msra.mxu3 %v1779_v9  ;;  %v1820_v42 = vld [vmem:[%s2622_s1 + $0x168] sm:$0xff]  ;;  %v1317_v44 = vld [vmem:[%s2624_s0 + $0x38] sm:$0xf]  ;;  %v1729_v45 = vld [vmem:[%s2624_s0 + $0x50] sm:$0xf0] }
   0xf   :  { %1844 = vmatpush.bf16.msra.mxu2 %v1931_v10  ;;  %v1373_v46 = vld [vmem:[%s2624_s0 + $0xa8] sm:$0xf]  ;;  %v1743_v47 = vld [vmem:[%s2624_s0 + $0xc0] sm:$0xf0]  ;;  %v1381_v48 = vld [vmem:[%s2624_s0 + $0xb0] sm:$0xf]  ;;  %v1318_v53 = vor.u32 %v1729_v45, %v1317_v44 }
  0x10   :  { %1836 = vmatpush.bf16.msra.mxu1 %v1936_v11  ;;  %v1744_v49 = vld [vmem:[%s2624_s0 + $0xc8] sm:$0xf0]  ;;  %v1375_v51 = vld [vmem:[%s2624_s0 + $0xc4] sm:$0xf0]  ;;  %v1819_v52 = vld [vmem:[%s2622_s1 + $0x160] sm:$0xff]  ;;  %v1374_v54 = vor.u32 %v1743_v47, %v1373_v46 }
  0x11   :  { %v1740_v50 = vld [vmem:[%s2624_s0 + $0xac] sm:$0xf]  ;;  %v1382_v55 = vor.u32 %v1744_v49, %v1381_v48  ;;  %v1802_v57 = vld [vmem:[%s2622_s1 + $0xd8] sm:$0xff]  ;;  %v1823_v58 = vld [vmem:[%s2622_s1 + $0x180] sm:$0xff] }
  0x12   :  { %795 = vmatpush.bf16.msra.mxu0 %v1778_v12  ;;  %1829 = vmatpush.bf16.msra.mxu3 %v1778_v12  ;;  %v1378_v56 = vor.u32 %v1740_v50, %v1375_v51  ;;  %v1818_v59 = vld [vmem:[%s2622_s1 + $0x158] sm:$0xff]  ;;  %v1801_v60 = vld [vmem:[%s2622_s1 + $0xd0] sm:$0xff]  ;;  %v1401_v61 = vld [vmem:[%s2624_s0 + $0xe0] sm:$0xf] }
  0x13   :  { %1845 = vmatpush.bf16.msra.mxu2 %v1946_v13  ;;  %v1750_v62 = vld [vmem:[%s2624_s0 + $0xf8] sm:$0xf0]  ;;  %v1719_v63 = vld [vmem:[%s2624_s0 + $0x4] sm:$0xf]  ;;  %v1291_v0 = vld [vmem:[%s2624_s0 + $0x1c] sm:$0xf0] }
  0x14   :  { %1837 = vmatpush.bf16.msra.mxu1 %v1951_v14  ;;  %v1751_v3 = vld [vmem:[%s2624_s0 + $0x100] sm:$0xf0]  ;;  %v1403_v6 = vld [vmem:[%s2624_s0 + $0xfc] sm:$0xf0]  ;;  %v1294_v9 = vor.u32 %v1719_v63, %v1291_v0  ;;  %v1457_v30 = vld [vmem:[%s2624_s0 + $0x150] sm:$0xf] }
  0x15   :  { %v1799_v28 = vld [vmem:[%s2622_s1 + $0xc0] sm:$0xff]  ;;  %v1730_v46 = vld [vmem:[%s2624_s0 + $0x58] sm:$0xf0]  ;;  %v1493_v47 = vld [vmem:[%s2624_s0 + $0x190] sm:$0xf] }
  0x16   :  { %796 = vmatpush.bf16.msra.mxu0 %v1777_v15  ;;  %1830 = vmatpush.bf16.msra.mxu3 %v1777_v15  ;;  %v1800_v15 = vld [vmem:[%s2622_s1 + $0xc8] sm:$0xff]  ;;  %v1815_v29 = vld [vmem:[%s2622_s1 + $0x140] sm:$0xff]  ;;  %v1809_v51 = vld [vmem:[%s2622_s1 + $0x110] sm:$0xff] }
  0x17   :  { %1846 = vmatpush.bf16.msra.mxu2 %v1961_v16  ;;  %v1723_v31 = vld [vmem:[%s2624_s0 + $0x20] sm:$0xf0]  ;;  %v1325_v45 = vld [vmem:[%s2624_s0 + $0x40] sm:$0xf]  ;;  %v1772_v48 = vld [vmem:[%s2624_s0 + $0x1a8] sm:$0xf0] }
  0x18   :  { %1838 = vmatpush.bf16.msra.mxu1 %v1966_v17  ;;  %v1771_v44 = vld [vmem:[%s2624_s0 + $0x1a0] sm:$0xf0]  ;;  %v1768_v49 = vld [vmem:[%s2624_s0 + $0x18c] sm:$0xf]  ;;  %v1487_v50 = vld [vmem:[%s2624_s0 + $0x1a4] sm:$0xf0] }
  0x19   :  { %v1724_v63 = vld [vmem:[%s2624_s0 + $0x28] sm:$0xf0]  ;;  %v1313_v0 = vld [vmem:[%s2624_s0 + $0x18] sm:$0xf] }
  0x1a   :  { %797 = vmatpush.bf16.msra.mxu0 %v1776_v18  ;;  %1831 = vmatpush.bf16.msra.mxu3 %v1776_v18  ;;  %v1726_v18 = vld [vmem:[%s2624_s0 + $0x3c] sm:$0xf] }
  0x1b   :  { %1847 = vmatpush.bf16.msra.mxu2 %v1976_v19 }
  0x1c   :  { %1839 = vmatpush.bf16.msra.mxu1 %v1981_v20 }
  0x1e   :  { %798 = vmatpush.bf16.msra.mxu0 %v1775_v21  ;;  %1832 = vmatpush.bf16.msra.mxu3 %v1775_v21  ;;  %v1754_v21 = vld [vmem:[%s2624_s0 + $0x11c] sm:$0xf] }
  0x1f   :  { %1848 = vmatpush.bf16.msra.mxu2 %v1989_v22 }
  0x20   :  { %1840 = vmatpush.bf16.msra.mxu1 %v1994_v23 }
  0x21   :  { %799 = vmatmul.bf16.vlgmr.msra.gmra.mxu0 %v1290_v33  ;;  %809 = vmatmul.bf16.vlgmr.msra.gmra.mxu3 %v1346_v34  ;;  %v1765_v33 = vld [vmem:[%s2624_s0 + $0x170] sm:$0xf0] }
  0x22   :  { %938 = vmatpush.bf16.msrb.mxu3 %v1806_v32  ;;  %840 = vmatpush.bf16.msrb.mxu0 %v1891_v2  ;;  %v1409_v2 = vld [vmem:[%s2624_s0 + $0xe8] sm:$0xf]  ;;  %v1465_v32 = vld [vmem:[%s2624_s0 + $0x158] sm:$0xf]  ;;  %v1761_v34 = vld [vmem:[%s2624_s0 + $0x154] sm:$0xf] }
  0x23   :  { %907 = vmatmul.bf16.vlgmr.msra.gmra.mxu2 %v1354_v35  ;;  %858 = vmatmul.bf16.vlgmr.msra.gmra.mxu1 %v1350_v36  ;;  %v1459_v35 = vld [vmem:[%s2624_s0 + $0x16c] sm:$0xf0] }
  0x24   :  { %1091 = vmatpush.bf16.msrb.mxu2 %v1824_v37  ;;  %1036 = vmatpush.bf16.msrb.mxu1 %v1822_v38  ;;  %v1813_v36 = vld [vmem:[%s2622_s1 + $0x130] sm:$0xff] }
  0x26   :  { %841 = vmatpush.bf16.msrb.mxu0 %v1906_v5  ;;  %939 = vmatpush.bf16.msrb.mxu3 %v1805_v39  ;;  %v1747_v5 = vld [vmem:[%s2624_s0 + $0xe4] sm:$0xf]  ;;  %v1462_v39 = vor.u32 %v1761_v34, %v1459_v35 }
  0x27   :  { %v1406_v12 = vor.u32 %v1747_v5, %v1403_v6  ;;  %v1307_v5 = vld [vmem:[%s2624_s0 + $0x2c] sm:$0xf0] }
  0x28   :  { %1037 = vmatpush.bf16.msrb.mxu1 %v1821_v40  ;;  %1092 = vmatpush.bf16.msrb.mxu2 %v1823_v58  ;;  %v1812_v40 = vld [vmem:[%s2622_s1 + $0x128] sm:$0xff]  ;;  %v1854_v58 = vmov 0  }
  0x29   :  { %1850 = vset.pattern.permute.xlu0 %v1854_v58  ;;  %1851 = vset.pattern.permute.xlu1 %v1854_v58 }
  0x2a   :  { %842 = vmatpush.bf16.msrb.mxu0 %v1921_v8  ;;  %940 = vmatpush.bf16.msrb.mxu3 %v1804_v41  ;;  %v1402_v8 = vor.u32 %v1750_v62, %v1401_v61  ;;  %v1811_v41 = vld [vmem:[%s2622_s1 + $0x120] sm:$0xff]  ;;  %v1299_v61 = vld [vmem:[%s2624_s0 + $0x24] sm:$0xf0]  ;;  %v1305_v62 = vld [vmem:[%s2624_s0 + $0x10] sm:$0xf] }
  0x2b   :  { %1852 = vset.pattern.permute.xlu2 %v1854_v58 }
  0x2c   :  { %1038 = vmatpush.bf16.msrb.mxu1 %v1820_v42  ;;  %v1810_v42 = vld [vmem:[%s2622_s1 + $0x118] sm:$0xff] }
  0x2e   :  { %843 = vmatpush.bf16.msrb.mxu0 %v1936_v11  ;;  %941 = vmatpush.bf16.msrb.mxu3 %v1803_v43  ;;  %v1410_v11 = vor.u32 %v1751_v3, %v1409_v2  ;;  %v1485_v43 = vld [vmem:[%s2624_s0 + $0x188] sm:$0xf]  ;;  %v1725_v2 = vld [vmem:[%s2624_s0 + $0x30] sm:$0xf0] }
  0x2f   :  { %v1721_v3 = vld [vmem:[%s2624_s0 + $0x14] sm:$0xf] }
  0x30   :  { %1039 = vmatpush.bf16.msrb.mxu1 %v1819_v52  ;;  %v1486_v52 = vor.u32 %v1771_v44, %v1485_v43 }
  0x31   :  { %804 = vmatmul.bf16.gmra.mxu0 %v1318_v53  ;;  %814 = vmatmul.bf16.gmra.mxu3 %v1374_v54  ;;  %v1326_v53 = vor.u32 %v1730_v46, %v1325_v45  ;;  %v1494_v54 = vor.u32 %v1772_v48, %v1493_v47  ;;  %v1741_v45 = vld [vmem:[%s2624_s0 + $0xb4] sm:$0xf]  ;;  %v1383_v46 = vld [vmem:[%s2624_s0 + $0xcc] sm:$0xf0]  ;;  %v1389_v48 = vld [vmem:[%s2624_s0 + $0xb8] sm:$0xf] }
  0x32   :  { %844 = vmatpush.bf16.msrb.mxu0 %v1951_v14  ;;  %942 = vmatpush.bf16.msrb.mxu3 %v1802_v57  ;;  %v1817_v14 = vld [vmem:[%s2622_s1 + $0x150] sm:$0xff]  ;;  %v1150_v57 = vld [vmem:[%s2625_s3] sm:$0xff] }
  0x33   :  { %912 = vmatmul.bf16.gmra.mxu2 %v1382_v55  ;;  %863 = vmatmul.bf16.gmra.mxu1 %v1378_v56  ;;  %v1490_v55 = vor.u32 %v1768_v49, %v1487_v50  ;;  %v1808_v56 = vld [vmem:[%s2622_s1 + $0x108] sm:$0xff]  ;;  %v1156_v47 = vld [vmem:[%s2625_s3 + $0x30] sm:$0xff]  ;;  %v1397_v50 = vld [vmem:[%s2624_s0 + $0xc0] sm:$0xf] }
  0x34   :  { %1040 = vmatpush.bf16.msrb.mxu1 %v1818_v59  ;;  %v1807_v59 = vld [vmem:[%s2622_s1 + $0x100] sm:$0xff]  ;;  %1168 = vperm.xlu0 %1850, %v1150_v57   ;;  %v1745_v49 = vld [vmem:[%s2624_s0 + $0xd0] sm:$0xf0]  ;;  %v1386_v57 = vor.u32 %v1741_v45, %v1383_v46 }
  0x35   :  { %v1390_v58 = vor.u32 %v1745_v49, %v1389_v48  ;;  %v1755_v45 = vld [vmem:[%s2624_s0 + $0x124] sm:$0xf]  ;;  %v1165_v48 = vld [vmem:[%s2625_s3 + $0x78] sm:$0xff]  ;;  %v1445_v49 = vld [vmem:[%s2624_s0 + $0x128] sm:$0xf] }
  0x36   :  { %845 = vmatpush.bf16.msrb.mxu0 %v1966_v17  ;;  %943 = vmatpush.bf16.msrb.mxu3 %v1801_v60  ;;  %v1757_v17 = vld [vmem:[%s2624_s0 + $0x130] sm:$0xf0]  ;;  %v1720_v60 = vld [vmem:[%s2624_s0 + $0xc] sm:$0xf] }
  0x37   :  { %v1302_v6 = vor.u32 %v1720_v60, %v1299_v61 }
  0x38   :  { %1041 = vmatpush.bf16.msrb.mxu1 %v1817_v14  ;;  %v1727_v14 = vld [vmem:[%s2624_s0 + $0x44] sm:$0xf] }
  0x3a   :  { %846 = vmatpush.bf16.msrb.mxu0 %v1981_v20  ;;  %944 = vmatpush.bf16.msrb.mxu3 %v1800_v15  ;;  %v1758_v20 = vld [vmem:[%s2624_s0 + $0x138] sm:$0xf0]  ;;  %v1327_v15 = vld [vmem:[%s2624_s0 + $0x5c] sm:$0xf0] }
  0x3e   :  { %847 = vmatpush.bf16.msrb.mxu0 %v1994_v23  ;;  %v1431_v23 = vld [vmem:[%s2624_s0 + $0x134] sm:$0xf0]  ;;  %945 = vmatpush.bf16.msrb.mxu3 %v1799_v28 }
  0x3f   :  { %v1434_v27 = vor.u32 %v1754_v21, %v1431_v23  ;;  %v1335_v21 = vld [vmem:[%s2624_s0 + $0x64] sm:$0xf0]  ;;  %v1330_v23 = vor.u32 %v1727_v14, %v1327_v15  ;;  %v1355_v28 = vld [vmem:[%s2624_s0 + $0x94] sm:$0xf0]  ;;  %v1748_v14 = vld [vmem:[%s2624_s0 + $0xec] sm:$0xf] }
  0x41   :  { %819 = vmatmul.bf16.gmra.mxu3 %v1402_v8  ;;  %848 = vmatmul.bf16.vlgmr.msrb.gmra.mxu0 %v1294_v9  ;;  %v1306_v8 = vor.u32 %v1724_v63, %v1305_v62  ;;  %v1314_v9 = vor.u32 %v1725_v2, %v1313_v0  ;;  %v1154_v2 = vld [vmem:[%s2625_s3 + $0x20] sm:$0xff] }
  0x42   :  { %889 = vmatpush.bf16.msra.mxu0 %v1886_v1  ;;  %v1429_v1 = vld [vmem:[%s2624_s0 + $0x118] sm:$0xf]  ;;  %1188 = vperm.xlu2 %1852, %v1154_v2  }
  0x43   :  { %917 = vmatmul.bf16.gmra.mxu2 %v1410_v11  ;;  %868 = vmatmul.bf16.gmra.mxu1 %v1406_v12  ;;  %v1430_v24 = vor.u32 %v1757_v17, %v1429_v1  ;;  %v1310_v11 = vor.u32 %v1721_v3, %v1307_v5  ;;  %v1151_v12 = vld [vmem:[%s2625_s3 + $0x8] sm:$0xff]  ;;  %v1152_v1 = vld [vmem:[%s2625_s3 + $0x10] sm:$0xff]  ;;  %v1157_v3 = vld [vmem:[%s2625_s3 + $0x38] sm:$0xff] }
  0x44   :  { %1173 = vperm.xlu0 %1850, %v1151_v12   ;;  %v1333_v17 = vld [vmem:[%s2624_s0 + $0x48] sm:$0xf]  ;;  %1178 = vperm.xlu1 %1851, %v1152_v1  }
  0x45   :  { %v1411_v1 = vld [vmem:[%s2624_s0 + $0x104] sm:$0xf0] }
  0x46   :  { %890 = vmatpush.bf16.msra.mxu0 %v1901_v4  ;;  %v1319_v4 = vld [vmem:[%s2624_s0 + $0x54] sm:$0xf0] }
  0x47   :  { %v1322_v25 = vor.u32 %v1726_v18, %v1319_v4  ;;  %v1731_v18 = vld [vmem:[%s2624_s0 + $0x60] sm:$0xf0]  ;;  %v1341_v4 = vld [vmem:[%s2624_s0 + $0x50] sm:$0xf] }
  0x4a   :  { %891 = vmatpush.bf16.msra.mxu0 %v1916_v7  ;;  %v1437_v7 = vld [vmem:[%s2624_s0 + $0x120] sm:$0xf] }
  0x4b   :  { %v1438_v26 = vor.u32 %v1758_v20, %v1437_v7  ;;  %v1732_v7 = vld [vmem:[%s2624_s0 + $0x68] sm:$0xf0] }
  0x4c   :  { %v1728_v20 = vld [vmem:[%s2624_s0 + $0x4c] sm:$0xf]  ;;  %1198 = vperm.xlu0 %1850, %v1156_v47   ;;  %v1439_v47 = vld [vmem:[%s2624_s0 + $0x13c] sm:$0xf0] }
  0x4e   :  { %892 = vmatpush.bf16.msra.mxu0 %v1931_v10  ;;  %v1816_v10 = vld [vmem:[%s2622_s1 + $0x148] sm:$0xff] }
  0x4f   :  { %1042 = vmatpush.bf16.msrb.mxu1 %v1816_v10  ;;  %v1734_v10 = vld [vmem:[%s2624_s0 + $0x7c] sm:$0xf] }
  0x51   :  { %824 = vmatmul.bf16.gmra.mxu3 %v1430_v24  ;;  %853 = vmatmul.bf16.gmra.mxu0 %v1322_v25  ;;  %v1334_v24 = vor.u32 %v1731_v18, %v1333_v17  ;;  %v1342_v25 = vor.u32 %v1732_v7, %v1341_v4  ;;  %v1155_v17 = vld [vmem:[%s2625_s3 + $0x28] sm:$0xff]  ;;  %v1417_v4 = vld [vmem:[%s2624_s0 + $0xf0] sm:$0xf] }
  0x52   :  { %893 = vmatpush.bf16.msra.mxu0 %v1946_v13  ;;  %v1814_v13 = vld [vmem:[%s2622_s1 + $0x138] sm:$0xff]  ;;  %v1159_v18 = vld [vmem:[%s2625_s3 + $0x48] sm:$0xff]  ;;  %1193 = vperm.xlu2 %1852, %v1155_v17  }
  0x53   :  { %922 = vmatmul.bf16.gmra.mxu2 %v1438_v26  ;;  %873 = vmatmul.bf16.gmra.mxu1 %v1434_v27  ;;  %v1338_v26 = vor.u32 %v1728_v20, %v1335_v21  ;;  %v1153_v27 = vld [vmem:[%s2625_s3 + $0x18] sm:$0xff]  ;;  %v1752_v7 = vld [vmem:[%s2624_s0 + $0x108] sm:$0xf0]  ;;  %v1753_v21 = vld [vmem:[%s2624_s0 + $0x110] sm:$0xf0] }
  0x54   :  { %1043 = vmatpush.bf16.msrb.mxu1 %v1815_v29  ;;  %1183 = vperm.xlu1 %1851, %v1153_v27   ;;  %v1738_v29 = vld [vmem:[%s2624_s0 + $0x98] sm:$0xf0]  ;;  %v1425_v20 = vld [vmem:[%s2624_s0 + $0xf8] sm:$0xf] }
  0x55   :  { %1213 = vperm.xlu0 %1850, %v1159_v18  }
  0x56   :  { %894 = vmatpush.bf16.msra.mxu0 %v1961_v16  ;;  %v1764_v16 = vld [vmem:[%s2624_s0 + $0x168] sm:$0xf0] }
  0x57   :  { %v1458_v37 = vor.u32 %v1764_v16, %v1457_v30  ;;  %v1369_v30 = vld [vmem:[%s2624_s0 + $0x88] sm:$0xf]  ;;  %v1739_v16 = vld [vmem:[%s2624_s0 + $0xa0] sm:$0xf0] }
  0x58   :  { %v1370_v35 = vor.u32 %v1739_v16, %v1369_v30  ;;  %v1426_v30 = vor.u32 %v1753_v21, %v1425_v20 }
  0x5a   :  { %895 = vmatpush.bf16.msra.mxu0 %v1976_v19  ;;  %v1297_v19 = vld [vmem:[%s2624_s0 + $0x8] sm:$0xf] }
  0x5b   :  { %v1298_v38 = vor.u32 %v1723_v31, %v1297_v19  ;;  %v1735_v19 = vld [vmem:[%s2624_s0 + $0x84] sm:$0xf]  ;;  %v1363_v31 = vld [vmem:[%s2624_s0 + $0x9c] sm:$0xf0] }
  0x5c   :  { %1203 = vperm.xlu1 %1851, %v1157_v3  }
  0x5e   :  { %896 = vmatpush.bf16.msra.mxu0 %v1989_v22  ;;  %v1466_v22 = vor.u32 %v1765_v33, %v1465_v32  ;;  %v1358_v32 = vor.u32 %v1734_v10, %v1355_v28  ;;  %v1414_v28 = vor.u32 %v1748_v14, %v1411_v1 }
  0x61   :  { %829 = vmatmul.bf16.gmra.mxu3 %v1458_v37  ;;  %897 = vmatmul.bf16.vlgmr.msra.gmra.mxu0 %v1298_v38  ;;  %v2329_v38 = vld [vmem:[%s2623_s2] ss:$0 sm:$0xff] }
  0x62   :  { %987 = vmatpush.bf16.msrb.mxu0 %v1814_v13  ;;  %v1361_v13 = vld [vmem:[%s2624_s0 + $0x80] sm:$0xf] }
  0x63   :  { %927 = vmatmul.bf16.gmra.mxu2 %v1466_v22  ;;  %878 = vmatmul.bf16.gmra.mxu1 %v1462_v39  ;;  %v1362_v33 = vor.u32 %v1738_v29, %v1361_v13  ;;  %v1418_v13 = vor.u32 %v1752_v7, %v1417_v4 }
  0x66   :  { %988 = vmatpush.bf16.msrb.mxu0 %v1813_v36  ;;  %v1366_v36 = vor.u32 %v1735_v19, %v1363_v31 }
  0x6a   :  { %989 = vmatpush.bf16.msrb.mxu0 %v1812_v40 }
  0x6e   :  { %990 = vmatpush.bf16.msrb.mxu0 %v1811_v41 }
  0x71   :  { %834 = vmatmul.bf16.gmra.mxu3 %v1486_v52  ;;  %902 = vmatmul.bf16.gmra.mxu0 %v1326_v53  ;;  %v1742_v52 = vld [vmem:[%s2624_s0 + $0xbc] sm:$0xf]  ;;  %v1391_v53 = vld [vmem:[%s2624_s0 + $0xd4] sm:$0xf0] }
  0x72   :  { %991 = vmatpush.bf16.msrb.mxu0 %v1810_v42  ;;  %v1394_v61 = vor.u32 %v1742_v52, %v1391_v53  ;;  %v1760_v52 = vld [vmem:[%s2624_s0 + $0x148] sm:$0xf0] }
  0x73   :  { %932 = vmatmul.bf16.gmra.mxu2 %v1494_v54  ;;  %883 = vmatmul.bf16.gmra.mxu1 %v1490_v55  ;;  %v1756_v53 = vld [vmem:[%s2624_s0 + $0x12c] sm:$0xf] }
  0x76   :  { %992 = vmatpush.bf16.msrb.mxu0 %v1809_v51  ;;  %v1746_v51 = vld [vmem:[%s2624_s0 + $0xd8] sm:$0xf0] }
  0x77   :  { %v1398_v60 = vor.u32 %v1746_v51, %v1397_v50  ;;  %v1759_v50 = vld [vmem:[%s2624_s0 + $0x140] sm:$0xf0]  ;;  %v1453_v51 = vld [vmem:[%s2624_s0 + $0x130] sm:$0xf] }
  0x7a   :  { %993 = vmatpush.bf16.msrb.mxu0 %v1808_v56 }
  0x7e   :  { %994 = vmatpush.bf16.msrb.mxu0 %v1807_v59 }
  0x81   :  { %946 = vmatmul.bf16.vlgmr.msrb.gmra.mxu3 %v1302_v6  ;;  %995 = vmatmul.bf16.vlgmr.msrb.gmra.mxu0 %v1306_v8 }
  0x83   :  { %1711 = vmatmul.msk.bf16.vlgmr.msrb.gmra.mxu2 %vm766_vm0, %v1314_v9  ;;  %1044 = vmatmul.bf16.vlgmr.msrb.gmra.mxu1 %v1310_v11 }
  0x91   :  { %951 = vmatmul.bf16.gmra.mxu3 %v1330_v23  ;;  %1000 = vmatmul.bf16.gmra.mxu0 %v1334_v24  ;;  %v1749_v23 = vld [vmem:[%s2624_s0 + $0xf4] sm:$0xf]  ;;  %v1419_v24 = vld [vmem:[%s2624_s0 + $0x10c] sm:$0xf0] }
  0x92   :  { %v1422_v16 = vor.u32 %v1749_v23, %v1419_v24  ;;  %v1762_v23 = vld [vmem:[%s2624_s0 + $0x15c] sm:$0xf]  ;;  %v1467_v24 = vld [vmem:[%s2624_s0 + $0x174] sm:$0xf0] }
  0x93   :  { %1712 = vmatmul.msk.bf16.gmra.mxu2 %vm766_vm0, %v1342_v25  ;;  %1049 = vmatmul.bf16.gmra.mxu1 %v1338_v26 }
  0x9e   :  { %v2324_v34 = vpop.f32.mrf.mxu0 }
  0x9f   :  { %v801_v26 = vadd.f32 %v2329_v38, %v2324_v34  ;;  %v1162_v34 = vld [vmem:[%s2625_s3 + $0x60] sm:$0xff] }
  0xa0   :  { %v859_v37 = vpop.f32.mrf.mxu1  ;;  %1228 = vperm.xlu0 %1850, %v1162_v34  }
  0xa1   :  { %956 = vmatmul.bf16.gmra.mxu3 %v1358_v32  ;;  %1005 = vmatmul.bf16.gmra.mxu0 %v1362_v33 }
  0xa3   :  { %1713 = vmatmul.msk.bf16.gmra.mxu2 %vm766_vm0, %v1370_v35  ;;  %1054 = vmatmul.bf16.gmra.mxu1 %v1366_v36 }
  0xa4   :  { %v810_v22 = vpop.f32.mrf.mxu3 }
  0xa5   :  { %v811_v39 = vadd.f32 %v2329_v38, %v810_v22 }
  0xa6   :  { %v908_v40 = vpop.f32.mrf.mxu2  ;;  %v2333_v41 = vpop.f32.mrf.mxu0 }
  0xa7   :  { %v860_v42 = vadd.f32 %v859_v37, %v811_v39  ;;  %v803_v36 = vadd.f32 %v2329_v38, %v2333_v41  ;;  %v1160_v41 = vld [vmem:[%s2625_s3 + $0x50] sm:$0xff] }
  0xa8   :  { %v861_v43 = vpop.f32.mrf.mxu1  ;;  %1218 = vperm.xlu1 %1851, %v1160_v41   ;;  %1243 = vperm.xlu0 %1850, %v1165_v48  }
  0xa9   :  { %v2335_v44 = vadd.f32 %v908_v40, %v860_v42 }
  0xac   :  { %v812_v54 = vpop.f32.mrf.mxu3 }
  0xad   :  { %v813_v55 = vadd.f32 %v2329_v38, %v812_v54  ;;  %v1447_v54 = vld [vmem:[%s2624_s0 + $0x144] sm:$0xf0] }
  0xae   :  { %v910_v56 = vpop.f32.mrf.mxu2  ;;  %v2365_v59 = vpop.f32.mrf.mxu0  ;;  %v1450_v2 = vor.u32 %v1756_v53, %v1447_v54  ;;  %v1501_v53 = vld [vmem:[%s2624_s0 + $0x198] sm:$0xf]  ;;  %v1773_v54 = vld [vmem:[%s2624_s0 + $0x1b0] sm:$0xf0] }
  0xaf   :  { %v862_v62 = vadd.f32 %v861_v43, %v813_v55 }
  0xb0   :  { %v864_v63 = vpop.f32.mrf.mxu1 }
  0xb1   :  { %v2367_v0 = vadd.f32 %v910_v56, %v862_v62  ;;  %961 = vmatmul.bf16.gmra.mxu3 %v1386_v57  ;;  %1010 = vmatmul.bf16.gmra.mxu0 %v1390_v58  ;;  %v806_v56 = vadd.f32 %v2329_v38, %v2365_v59  ;;  %v1158_v59 = vld [vmem:[%s2625_s3 + $0x40] sm:$0xff] }
  0xb2   :  { %1208 = vperm.xlu2 %1852, %v1158_v59  }
  0xb3   :  { %1714 = vmatmul.msk.bf16.gmra.mxu2 %vm766_vm0, %v1398_v60  ;;  %1059 = vmatmul.bf16.gmra.mxu1 %v1394_v61  ;;  %v1442_v60 = vor.u32 %v1755_v45, %v1439_v47  ;;  %v1446_v61 = vor.u32 %v1759_v50, %v1445_v49 }
  0xb4   :  { %v815_v5 = vpop.f32.mrf.mxu3 }
  0xb5   :  { %v816_v6 = vadd.f32 %v2329_v38, %v815_v5 }
  0xb6   :  { %v913_v8 = vpop.f32.mrf.mxu2  ;;  %v2377_v9 = vpop.f32.mrf.mxu0 }
  0xb7   :  { %v865_v11 = vadd.f32 %v864_v63, %v816_v6  ;;  %v1454_v63 = vor.u32 %v1760_v52, %v1453_v51  ;;  %v808_v14 = vadd.f32 %v2329_v38, %v2377_v9  ;;  %v1473_v9 = vld [vmem:[%s2624_s0 + $0x160] sm:$0xf]  ;;  %v1769_v51 = vld [vmem:[%s2624_s0 + $0x194] sm:$0xf]  ;;  %v1495_v52 = vld [vmem:[%s2624_s0 + $0x1ac] sm:$0xf0] }
  0xb8   :  { %v866_v12 = vpop.f32.mrf.mxu1 }
  0xb9   :  { %v2382_v15 = vadd.f32 %v913_v8, %v865_v11  ;;  %v1163_v11 = vld [vmem:[%s2625_s3 + $0x68] sm:$0xff] }
  0xba   :  { %1233 = vperm.xlu1 %1851, %v1163_v11  }
  0xbc   :  { %v817_v25 = vpop.f32.mrf.mxu3 }
  0xbd   :  { %v818_v27 = vadd.f32 %v2329_v38, %v817_v25  ;;  %v1766_v25 = vld [vmem:[%s2624_s0 + $0x178] sm:$0xf0] }
  0xbe   :  { %v915_v10 = vpop.f32.mrf.mxu2  ;;  %v849_v29 = vpop.f32.mrf.mxu0 }
  0xbf   :  { %v867_v19 = vadd.f32 %v866_v12, %v818_v27  ;;  %v2414_v31 = vadd.f32 %v849_v29, %v801_v26  ;;  %v1481_v26 = vld [vmem:[%s2624_s0 + $0x168] sm:$0xf]  ;;  %v1767_v27 = vld [vmem:[%s2624_s0 + $0x180] sm:$0xf0] }
  0xc0   :  { %v869_v32 = vpop.f32.mrf.mxu1  ;;  %v1482_v34 = vor.u32 %v1767_v27, %v1481_v26 }
  0xc1   :  { %v2416_v33 = vadd.f32 %v915_v10, %v867_v19  ;;  %966 = vmatmul.bf16.gmra.mxu3 %v1414_v28  ;;  %1015 = vmatmul.bf16.gmra.mxu0 %v1418_v13  ;;  %v1763_v10 = vld [vmem:[%s2624_s0 + $0x164] sm:$0xf]  ;;  %v1475_v28 = vld [vmem:[%s2624_s0 + $0x17c] sm:$0xf0]  ;;  %v1474_v19 = vor.u32 %v1766_v25, %v1473_v9 }
  0xc3   :  { %1715 = vmatmul.msk.bf16.gmra.mxu2 %vm766_vm0, %v1426_v30  ;;  %1064 = vmatmul.bf16.gmra.mxu1 %v1422_v16  ;;  %v1470_v16 = vor.u32 %v1762_v23, %v1467_v24 }
  0xc4   :  { %v820_v35 = vpop.f32.mrf.mxu3 }
  0xc5   :  { %v821_v37 = vadd.f32 %v2329_v38, %v820_v35  ;;  %v1478_v35 = vor.u32 %v1763_v10, %v1475_v28 }
  0xc6   :  { %v918_v22 = vpop.f32.mrf.mxu2  ;;  %v851_v39 = vpop.f32.mrf.mxu0 }
  0xc7   :  { %v870_v40 = vadd.f32 %v869_v32, %v821_v37  ;;  %v2425_v42 = vadd.f32 %v851_v39, %v803_v36 }
  0xc8   :  { %v871_v43 = vpop.f32.mrf.mxu1 }
  0xc9   :  { %v2430_v46 = vadd.f32 %v918_v22, %v870_v40  ;;  %v1161_v40 = vld [vmem:[%s2625_s3 + $0x58] sm:$0xff] }
  0xca   :  { %1223 = vperm.xlu2 %1852, %v1161_v40  }
  0xcc   :  { %v822_v55 = vpop.f32.mrf.mxu3 }
  0xcd   :  { %v823_v57 = vadd.f32 %v2329_v38, %v822_v55  ;;  %v1774_v55 = vld [vmem:[%s2624_s0 + $0x1b8] sm:$0xf0] }
  0xce   :  { %v920_v58 = vpop.f32.mrf.mxu2  ;;  %v854_v62 = vpop.f32.mrf.mxu0 }
  0xcf   :  { %v872_v3 = vadd.f32 %v871_v43, %v823_v57  ;;  %v2462_v5 = vadd.f32 %v854_v62, %v806_v56  ;;  %v1770_v56 = vld [vmem:[%s2624_s0 + $0x19c] sm:$0xf]  ;;  %v1503_v57 = vld [vmem:[%s2624_s0 + $0x1b4] sm:$0xf0] }
  0xd0   :  { %v874_v6 = vpop.f32.mrf.mxu1  ;;  %v1506_v59 = vor.u32 %v1770_v56, %v1503_v57 }
  0xd1   :  { %v2464_v8 = vadd.f32 %v920_v58, %v872_v3  ;;  %971 = vmatmul.bf16.gmra.mxu3 %v1442_v60  ;;  %1020 = vmatmul.bf16.gmra.mxu0 %v1446_v61  ;;  %v1164_v60 = vld [vmem:[%s2625_s3 + $0x70] sm:$0xff] }
  0xd2   :  { %1238 = vperm.xlu2 %1852, %v1164_v60  }
  0xd3   :  { %1716 = vmatmul.msk.bf16.gmra.mxu2 %vm766_vm0, %v1454_v63  ;;  %1069 = vmatmul.bf16.gmra.mxu1 %v1450_v2  ;;  %v1498_v63 = vor.u32 %v1769_v51, %v1495_v52  ;;  %v1502_v2 = vor.u32 %v1773_v54, %v1501_v53 }
  0xd4   :  { %v825_v12 = vpop.f32.mrf.mxu3 }
  0xd5   :  { %v826_v1 = vadd.f32 %v2329_v38, %v825_v12 }
  0xd6   :  { %v923_v17 = vpop.f32.mrf.mxu2  ;;  %v856_v18 = vpop.f32.mrf.mxu0 }
  0xd7   :  { %v875_v4 = vadd.f32 %v874_v6, %v826_v1  ;;  %v2476_v7 = vadd.f32 %v856_v18, %v808_v14 }
  0xd8   :  { %v876_v20 = vpop.f32.mrf.mxu1 }
  0xd9   :  { %v2478_v21 = vadd.f32 %v923_v17, %v875_v4 }
  0xdc   :  { %v827_v13 = vpop.f32.mrf.mxu3 }
  0xdd   :  { %v828_v29 = vadd.f32 %v2329_v38, %v827_v13 }
  0xde   :  { %v925_v30 = vpop.f32.mrf.mxu2  ;;  %v898_v32 = vpop.f32.mrf.mxu0 }
  0xdf   :  { %v877_v36 = vadd.f32 %v876_v20, %v828_v29  ;;  %v899_v37 = vadd.f32 %v898_v32, %v2414_v31 }
  0xe0   :  { %v879_v22 = vpop.f32.mrf.mxu1 }
  0xe1   :  { %v2506_v39 = vadd.f32 %v925_v30, %v877_v36  ;;  %976 = vmatmul.bf16.gmra.mxu3 %v1470_v16  ;;  %1025 = vmatmul.bf16.gmra.mxu0 %v1474_v19 }
  0xe3   :  { %1717 = vmatmul.msk.bf16.gmra.mxu2 %vm766_vm0, %v1482_v34  ;;  %1074 = vmatmul.bf16.gmra.mxu1 %v1478_v35 }
  0xe4   :  { %v830_v43 = vpop.f32.mrf.mxu3 }
  0xe5   :  { %v831_v45 = vadd.f32 %v2329_v38, %v830_v43 }
  0xe6   :  { %v928_v47 = vpop.f32.mrf.mxu2  ;;  %v900_v41 = vpop.f32.mrf.mxu0 }
  0xe7   :  { %v880_v48 = vadd.f32 %v879_v22, %v831_v45  ;;  %v901_v31 = vadd.f32 %v900_v41, %v2425_v42  ;;  %v1509_v42 = vld [vmem:[%s2624_s0 + $0x1a0] sm:$0xf] }
  0xe8   :  { %v881_v49 = vpop.f32.mrf.mxu1  ;;  %v1510_v6 = vor.u32 %v1774_v55, %v1509_v42 }
  0xe9   :  { %v2514_v50 = vadd.f32 %v928_v47, %v880_v48 }
  0xec   :  { %v832_v58 = vpop.f32.mrf.mxu3 }
  0xed   :  { %v833_v61 = vadd.f32 %v2329_v38, %v832_v58 }
  0xee   :  { %v930_v62 = vpop.f32.mrf.mxu2  ;;  %v903_v3 = vpop.f32.mrf.mxu0 }
  0xef   :  { %v882_v11 = vadd.f32 %v881_v49, %v833_v61  ;;  %v904_v12 = vadd.f32 %v903_v3, %v2462_v5 }
  0xf0   :  { %v884_v14 = vpop.f32.mrf.mxu1 }
  0xf1   :  { %v2545_v1 = vadd.f32 %v930_v62, %v882_v11  ;;  %981 = vmatmul.bf16.gmra.mxu3 %v1498_v63  ;;  %1030 = vmatmul.bf16.gmra.mxu0 %v1502_v2 }
  0xf3   :  { %1718 = vmatmul.msk.bf16.gmra.mxu2 %vm766_vm0, %v1510_v6  ;;  %1079 = vmatmul.bf16.gmra.mxu1 %v1506_v59 }
  0xf4   :  { %v835_v17 = vpop.f32.mrf.mxu3 }
  0xf5   :  { %v836_v18 = vadd.f32 %v2329_v38, %v835_v17 }
  0xf6   :  { %v933_v4 = vpop.f32.mrf.mxu2  ;;  %v905_v20 = vpop.f32.mrf.mxu0 }
  0xf7   :  { %v885_v23 = vadd.f32 %v884_v14, %v836_v18  ;;  %v906_v24 = vadd.f32 %v905_v20, %v2476_v7  ;;  %v1169_v14 = vpop.permute.xlu0 %1168  ;;  %v1189_v18 = vpop.permute.xlu2 %1188 }
  0xf8   :  { %v886_v9 = vpop.f32.mrf.mxu1 }
  0xf9   :  { %v2550_v25 = vadd.f32 %v933_v4, %v885_v23 }
  0xfc   :  { %v837_v5 = vpop.f32.mrf.mxu3 }
  0xfd   :  { %v838_v26 = vadd.f32 %v2329_v38, %v837_v5 }
  0xfe   :  { %v935_v27 = vpop.f32.mrf.mxu2  ;;  %v996_v10 = vpop.f32.mrf.mxu0 }
  0xff   :  { %v887_v28 = vadd.f32 %v886_v9, %v838_v26 }
 0x100   :  { %v1045_v13 = vpop.f32.mrf.mxu1 }
 0x101   :  { %v2553_v29 = vadd.f32 %v935_v27, %v887_v28 }
 0x104   :  { %v947_v30 = vpop.f32.mrf.mxu3 }
 0x105   :  { %v948_v16 = vadd.f32 %v947_v30, %v899_v37 }
 0x106   :  { %v1094_v19 = vpop.f32.mrf.mxu2  ;;  %v998_v32 = vpop.f32.mrf.mxu0 }
 0x107   :  { %v997_v34 = vadd.f32 %v996_v10, %v948_v16 }
 0x108   :  { %v1047_v35 = vpop.f32.mrf.mxu1 }
 0x109   :  { %v1046_v36 = vadd.f32 %v1045_v13, %v997_v34  ;;  %v1179_v13 = vpop.permute.xlu1 %1178 }
 0x10b   :  { %v1095_v7 = vadd.f32 %v1094_v19, %v1046_v36  ;;  %v1194_v36 = vpop.permute.xlu2 %1193 }
 0x10c   :  { %v949_v22 = vpop.f32.mrf.mxu3 }
 0x10d   :  { %v950_v40 = vadd.f32 %v949_v22, %v901_v31  ;;  %v1134_v4 = vmax.f32 %v1095_v7, 0.0 }
 0x10e   :  { %v1096_v43 = vpop.f32.mrf.mxu2  ;;  %v1001_v45 = vpop.f32.mrf.mxu0 }
 0x10f   :  { %v999_v47 = vadd.f32 %v998_v32, %v950_v40  ;;  %v2557_v27 = vmul.f32 %v1169_v14, %v1134_v4  ;;  %v1174_v32 = vpop.permute.xlu0 %1173 }
 0x110   :  { %v1050_v38 = vpop.f32.mrf.mxu1 }
 0x111   :  { %v1048_v41 = vadd.f32 %v1047_v35, %v999_v47 }
 0x113   :  { %v1097_v48 = vadd.f32 %v1096_v43, %v1048_v41 }
 0x114   :  { %v952_v49 = vpop.f32.mrf.mxu3 }
 0x115   :  { %v953_v51 = vadd.f32 %v952_v49, %v904_v12  ;;  %v1135_v19 = vmax.f32 %v1097_v48, 0.0 }
 0x116   :  { %v1099_v52 = vpop.f32.mrf.mxu2  ;;  %v1003_v53 = vpop.f32.mrf.mxu0 }
 0x117   :  { %v1002_v54 = vadd.f32 %v1001_v45, %v953_v51  ;;  %v2564_v43 = vmul.f32 %v1174_v32, %v1135_v19  ;;  %v1184_v51 = vpop.permute.xlu1 %1183 }
 0x118   :  { %v1052_v37 = vpop.f32.mrf.mxu1 }
 0x119   :  { %v1051_v42 = vadd.f32 %v1050_v38, %v1002_v54  ;;  %v1199_v54 = vpop.permute.xlu0 %1198 }
 0x11b   :  { %v1100_v55 = vadd.f32 %v1099_v52, %v1051_v42 }
 0x11c   :  { %v954_v56 = vpop.f32.mrf.mxu3 }
 0x11d   :  { %v955_v57 = vadd.f32 %v954_v56, %v906_v24  ;;  %v1136_v48 = vmax.f32 %v1100_v55, 0.0 }
 0x11e   :  { %v1101_v58 = vpop.f32.mrf.mxu2  ;;  %v1006_v60 = vpop.f32.mrf.mxu0 }
 0x11f   :  { %v1004_v61 = vadd.f32 %v1003_v53, %v955_v57  ;;  %v2571_v57 = vmul.f32 %v1179_v13, %v1136_v48 }
 0x120   :  { %v1055_v31 = vpop.f32.mrf.mxu1 }
 0x121   :  { %v1053_v62 = vadd.f32 %v1052_v37, %v1004_v61 }
 0x123   :  { %v1102_v63 = vadd.f32 %v1101_v58, %v1053_v62 }
 0x124   :  { %v957_v2 = vpop.f32.mrf.mxu3 }
 0x125   :  { %v958_v3 = vadd.f32 %v957_v2, %v2335_v44  ;;  %v1137_v55 = vmax.f32 %v1102_v63, 0.0 }
 0x126   :  { %v1104_v6 = vpop.f32.mrf.mxu2  ;;  %v1008_v59 = vpop.f32.mrf.mxu0 }
 0x127   :  { %v1007_v11 = vadd.f32 %v1006_v60, %v958_v3 }
 0x128   :  { %v1057_v12 = vpop.f32.mrf.mxu1 }
 0x129   :  { %v1056_v17 = vadd.f32 %v1055_v31, %v1007_v11 }
 0x12b   :  { %v1105_v20 = vadd.f32 %v1104_v6, %v1056_v17  ;;  %v1204_v6 = vpop.permute.xlu1 %1203 }
 0x12c   :  { %v959_v23 = vpop.f32.mrf.mxu3 }
 0x12d   :  { %v1138_v24 = vmax.f32 %v1105_v20, 0.0  ;;  %v960_v9 = vadd.f32 %v959_v23, %v2367_v0 }
 0x12e   :  { %v1106_v5 = vpop.f32.mrf.mxu2  ;;  %v1011_v26 = vpop.f32.mrf.mxu0 }
 0x12f   :  { %v1009_v10 = vadd.f32 %v1008_v59, %v960_v9  ;;  %v2559_v28 = vmul.f32 %v1189_v18, %v1138_v24 }
 0x130   :  { %v1060_v44 = vpop.f32.mrf.mxu1 }
 0x131   :  { %v1058_v30 = vadd.f32 %v1057_v12, %v1009_v10  ;;  %v1262_v16 = vmax.f32 %v2557_v27, %v2559_v28 }
 0x133   :  { %v1107_v34 = vadd.f32 %v1106_v5, %v1058_v30 }
 0x134   :  { %v962_v35 = vpop.f32.mrf.mxu3 }
 0x135   :  { %v1139_v7 = vmax.f32 %v1107_v34, 0.0  ;;  %v963_v0 = vadd.f32 %v962_v35, %v2382_v15 }
 0x136   :  { %v1109_v22 = vpop.f32.mrf.mxu2  ;;  %v1013_v40 = vpop.f32.mrf.mxu0 }
 0x137   :  { %v1012_v45 = vadd.f32 %v1011_v26, %v963_v0  ;;  %v2566_v47 = vmul.f32 %v1194_v36, %v1139_v7  ;;  %v1214_v36 = vpop.permute.xlu0 %1213 }
 0x138   :  { %v1062_v38 = vpop.f32.mrf.mxu1 }
 0x139   :  { %v1061_v41 = vadd.f32 %v1060_v44, %v1012_v45  ;;  %v1263_v49 = vmax.f32 %v2564_v43, %v2566_v47 }
 0x13b   :  { %v1110_v52 = vadd.f32 %v1109_v22, %v1061_v41 }
 0x13c   :  { %v964_v53 = vpop.f32.mrf.mxu3 }
 0x13d   :  { %v1140_v37 = vmax.f32 %v1110_v52, 0.0  ;;  %v965_v15 = vadd.f32 %v964_v53, %v2416_v33  ;;  %v2577_v33 = vmul.f32 %v1184_v51, %v1137_v55  ;;  %v1209_v52 = vpop.permute.xlu2 %1208 }
 0x13e   :  { %v1111_v42 = vpop.f32.mrf.mxu2  ;;  %v1016_v56 = vpop.f32.mrf.mxu0 }
 0x13f   :  { %v1014_v58 = vadd.f32 %v1013_v40, %v965_v15  ;;  %v2573_v60 = vmul.f32 %v1199_v54, %v1140_v37  ;;  %v1219_v54 = vpop.permute.xlu1 %1218 }
 0x140   :  { %v1065_v61 = vpop.f32.mrf.mxu1 }
 0x141   :  { %v1063_v31 = vadd.f32 %v1062_v38, %v1014_v58  ;;  %v1264_v62 = vmax.f32 %v2571_v57, %v2573_v60 }
 0x143   :  { %v1112_v2 = vadd.f32 %v1111_v42, %v1063_v31 }
 0x144   :  { %v967_v3 = vpop.f32.mrf.mxu3 }
 0x145   :  { %v1141_v59 = vmax.f32 %v1112_v2, 0.0  ;;  %v968_v10 = vadd.f32 %v967_v3, %v2430_v46 }
 0x146   :  { %v1114_v11 = vpop.f32.mrf.mxu2  ;;  %v1018_v12 = vpop.f32.mrf.mxu0 }
 0x147   :  { %v2579_v14 = vmul.f32 %v1204_v6, %v1141_v59  ;;  %v1017_v30 = vadd.f32 %v1016_v56, %v968_v10 }
 0x148   :  { %v1067_v17 = vpop.f32.mrf.mxu1 }
 0x149   :  { %v1265_v18 = vmax.f32 %v2577_v33, %v2579_v14  ;;  %v1066_v35 = vadd.f32 %v1065_v61, %v1017_v30 }
 0x14b   :  { %v1115_v45 = vadd.f32 %v1114_v11, %v1066_v35 }
 0x14c   :  { %v969_v4 = vpop.f32.mrf.mxu3 }
 0x14d   :  { %v970_v32 = vadd.f32 %v969_v4, %v2464_v8  ;;  %v1142_v51 = vmax.f32 %v1115_v45, 0.0 }
 0x14e   :  { %v1116_v20 = vpop.f32.mrf.mxu2  ;;  %v1021_v23 = vpop.f32.mrf.mxu0 }
 0x14f   :  { %v1019_v40 = vadd.f32 %v1018_v12, %v970_v32  ;;  %v1254_v31 = vmul.f32 %v1209_v52, %v1142_v51  ;;  %v1234_v32 = vpop.permute.xlu1 %1233 }
 0x150   :  { %v1070_v24 = vpop.f32.mrf.mxu1 }
 0x151   :  { %v1068_v48 = vadd.f32 %v1067_v17, %v1019_v40  ;;  %v1224_v17 = vpop.permute.xlu2 %1223 }
 0x153   :  { %v1117_v58 = vadd.f32 %v1116_v20, %v1068_v48 }
 0x154   :  { %v972_v9 = vpop.f32.mrf.mxu3 }
 0x155   :  { %v973_v53 = vadd.f32 %v972_v9, %v2478_v21  ;;  %v1143_v11 = vmax.f32 %v1117_v58, 0.0 }
 0x156   :  { %v1119_v63 = vpop.f32.mrf.mxu2  ;;  %v1023_v5 = vpop.f32.mrf.mxu0 }
 0x157   :  { %v1022_v55 = vadd.f32 %v1021_v23, %v973_v53 }
 0x158   :  { %v1072_v26 = vpop.f32.mrf.mxu1 }
 0x159   :  { %v1071_v12 = vadd.f32 %v1070_v24, %v1022_v55  ;;  %v1239_v45 = vpop.permute.xlu2 %1238 }
 0x15b   :  { %v1120_v35 = vadd.f32 %v1119_v63, %v1071_v12 }
 0x15c   :  { %v974_v44 = vpop.f32.mrf.mxu3 }
 0x15d   :  { %v975_v21 = vadd.f32 %v974_v44, %v2506_v39 }
 0x15e   :  { %v2584_v13 = vpop.f32.mrf.mxu2  ;;  %v1026_v19 = vpop.f32.mrf.mxu0 }
 0x15f   :  { %v1024_v24 = vadd.f32 %v1023_v5, %v975_v21 }
 0x160   :  { %v1075_v34 = vpop.f32.mrf.mxu1 }
 0x164   :  { %v977_v7 = vpop.f32.mrf.mxu3 }
 0x165   :  { %v978_v0 = vadd.f32 %v977_v7, %v2514_v50  ;;  %v1229_v50 = vpop.permute.xlu0 %1228  ;;  %v1144_v7 = vmax.f32 %v1120_v35, 0.0 }
 0x166   :  { %v1124_v22 = vpop.f32.mrf.mxu2  ;;  %v1028_v46 = vpop.f32.mrf.mxu0 }
 0x167   :  { %v1027_v38 = vadd.f32 %v1026_v19, %v978_v0  ;;  %v1255_v19 = vmul.f32 %v1214_v36, %v1143_v11  ;;  %v1073_v0 = vadd.f32 %v1072_v26, %v1024_v24  ;;  %v1256_v48 = vmul.f32 %v1219_v54, %v1144_v7 }
 0x168   :  { %v1077_v8 = vpop.f32.mrf.mxu1 }
 0x169   :  { %v1076_v41 = vadd.f32 %v1075_v34, %v1027_v38 }
 0x16b   :  { %v1125_v37 = vadd.f32 %v1124_v22, %v1076_v41  ;;  %v1122_v41 = vadd.f32 %v2584_v13, %v1073_v0 }
 0x16c   :  { %v979_v15 = vpop.f32.mrf.mxu3 }
 0x16d   :  { %v1146_v42 = vmax.f32 %v1125_v37, 0.0  ;;  %v980_v56 = vadd.f32 %v979_v15, %v2545_v1  ;;  %v1145_v52 = vmax.f32 %v1122_v41, 0.0  ;;  %v1244_v54 = vpop.permute.xlu0 %1243 }
 0x16e   :  { %v1126_v61 = vpop.f32.mrf.mxu2  ;;  %v1031_v1 = vpop.f32.mrf.mxu0 }
 0x16f   :  { %v1258_v2 = vmul.f32 %v1229_v50, %v1146_v42  ;;  %v1029_v3 = vadd.f32 %v1028_v46, %v980_v56 }
 0x170   :  { %v1080_v34 = vpop.f32.mrf.mxu1 }
 0x171   :  { %v1266_v6 = vmax.f32 %v1254_v31, %v1258_v2  ;;  %v1078_v59 = vadd.f32 %v1077_v8, %v1029_v3  ;;  %v1257_v8 = vmul.f32 %v1224_v17, %v1145_v52 }
 0x173   :  { %v1270_v4 = vmax.f32 %v1262_v16, %v1266_v6  ;;  %v1127_v9 = vadd.f32 %v1126_v61, %v1078_v59 }
 0x174   :  { %v982_v20 = vpop.f32.mrf.mxu3 }
 0x175   :  { %v1274_v10 = vpack.c.bf16 %v1270_v4, %v1270_v4  ;;  %v1147_v30 = vmax.f32 %v1127_v9, 0.0  ;;  %v983_v23 = vadd.f32 %v982_v20, %v2550_v25 }
 0x176   :  { %v1129_v28 = vpop.f32.mrf.mxu2  ;;  %v1033_v38 = vpop.f32.mrf.mxu0 }
 0x177   :  { %1279 = vst.msk [vmem:[%s2626_s4] sm:$0xf] %vm1278_vm1, %v1274_v10  ;;  %v1259_v39 = vmul.f32 %v1234_v32, %v1147_v30  ;;  %v1032_v27 = vadd.f32 %v1031_v1, %v983_v23 }
 0x178   :  { %v1082_v43 = vpop.f32.mrf.mxu1 }
 0x179   :  { %v1267_v16 = vmax.f32 %v1255_v19, %v1259_v39  ;;  %v1081_v44 = vadd.f32 %v1080_v34, %v1032_v27 }
 0x17b   :  { %v1271_v25 = vmax.f32 %v1263_v49, %v1267_v16  ;;  %v1130_v36 = vadd.f32 %v1129_v28, %v1081_v44 }
 0x17c   :  { %v984_v22 = vpop.f32.mrf.mxu3 }
 0x17d   :  { %v1275_v63 = vpack.c.bf16 %v1271_v25, %v1271_v25  ;;  %v1148_v5 = vmax.f32 %v1130_v36, 0.0  ;;  %v985_v40 = vadd.f32 %v984_v22, %v2553_v29 }
 0x17e   :  { %v1131_v51 = vpop.f32.mrf.mxu2 }
 0x17f   :  { %1280 = vst.msk [vmem:[%s2626_s4 + $0x4] sm:$0xf] %vm1278_vm1, %v1275_v63  ;;  %v1260_v26 = vmul.f32 %v1239_v45, %v1148_v5  ;;  %v1034_v46 = vadd.f32 %v1033_v38, %v985_v40 }
 0x181   :  { %v1268_v47 = vmax.f32 %v1256_v48, %v1260_v26  ;;  %v1083_v49 = vadd.f32 %v1082_v43, %v1034_v46 }
 0x183   :  { %v1272_v29 = vmax.f32 %v1264_v62, %v1268_v47  ;;  %v1132_v53 = vadd.f32 %v1131_v51, %v1083_v49 }
 0x185   :  { %v1276_v37 = vpack.c.bf16 %v1272_v29, %v1272_v29  ;;  %v1149_v13 = vmax.f32 %v1132_v53, 0.0 }
 0x187   :  { %1281 = vst.msk [vmem:[%s2626_s4 + $0x8] sm:$0xf] %vm1278_vm1, %v1276_v37  ;;  %v1261_v15 = vmul.f32 %v1244_v54, %v1149_v13 }
 0x189   :  { %v1269_v42 = vmax.f32 %v1257_v8, %v1261_v15 }
 0x18b   :  { %v1273_v56 = vmax.f32 %v1265_v18, %v1269_v42 }
 0x18d   :  { %v1277_v58 = vpack.c.bf16 %v1273_v56, %v1273_v56 }
 0x18f   :  { %1282 = vst.msk [vmem:[%s2626_s4 + $0xc] sm:$0xf] %vm1278_vm1, %v1277_v58 }

// kernel: cnn_forward.5
= control target key start
LH: loop header
LB: loop body
LE: loop exit
PB: predicated region body
PF: predicated region fallthrough
CT: control target
= control target key end

     0   :  { %s5582_s0 = inlined_call_operand.vmem [shape: bf16[2,1024], index: 0, kind: input, shape index: {}]   ;;  %s5583_s1 = inlined_call_operand.vmem [shape: bf16[1024,512], index: 1, kind: input, shape index: {}]   ;;  %s5584_s2 = inlined_call_operand.vmem [shape: f32[1,512], index: 2, kind: input, shape index: {}]   ;;  %s5585_s3 = inlined_call_operand.vmem [shape: bf16[512,10], index: 3, kind: input, shape index: {}]   ;;  %s5586_s4 = inlined_call_operand.vmem [shape: f32[1,10], index: 4, kind: input, shape index: {}]   ;;  %s5587_s5 = inlined_call_operand.hbm [shape: f32[2,10], index: 5, kind: output, shape index: {}]  }
   0x1   :  { %v2465_v0 = vld [vmem:[%s5583_s1 + $0xe0] sm:$0xf]  ;;  %v3533_v1 = vld [vmem:[%s5583_s1 + $0xec] sm:$0xf0] }
   0x2   :  { %v2593_v2 = vld [vmem:[%s5583_s1 + $0x1e0] sm:$0xf]  ;;  %v2466_v3 = vor.u32 %v3533_v1, %v2465_v0  ;;  %v3565_v4 = vld [vmem:[%s5583_s1 + $0x1ec] sm:$0xf0] }
   0x3   :  { %v2721_v5 = vld [vmem:[%s5583_s1 + $0x2e0] sm:$0xf]  ;;  %v3597_v6 = vld [vmem:[%s5583_s1 + $0x2ec] sm:$0xf0]  ;;  %v2594_v7 = vor.u32 %v3565_v4, %v2593_v2 }
   0x4   :  { %v2722_v8 = vor.u32 %v3597_v6, %v2721_v5  ;;  %v2849_v9 = vld [vmem:[%s5583_s1 + $0x3e0] sm:$0xf]  ;;  %v3629_v10 = vld [vmem:[%s5583_s1 + $0x3ec] sm:$0xf0]  ;;  %1586 = vmatpush.bf16.msra.mxu0 %v2466_v3 }
   0x5   :  { %v2449_v11 = vld [vmem:[%s5583_s1 + $0xc0] sm:$0xf]  ;;  %v2850_v12 = vor.u32 %v3629_v10, %v2849_v9  ;;  %v3529_v13 = vld [vmem:[%s5583_s1 + $0xcc] sm:$0xf0]  ;;  %1599 = vmatpush.bf16.msra.mxu1 %v2594_v7 }
   0x6   :  { %v2577_v14 = vld [vmem:[%s5583_s1 + $0x1c0] sm:$0xf]  ;;  %v3561_v15 = vld [vmem:[%s5583_s1 + $0x1cc] sm:$0xf0]  ;;  %1612 = vmatpush.bf16.msra.mxu2 %v2722_v8  ;;  %v2450_v16 = vor.u32 %v3529_v13, %v2449_v11 }
   0x7   :  { %v2578_v17 = vor.u32 %v3561_v15, %v2577_v14  ;;  %v2705_v18 = vld [vmem:[%s5583_s1 + $0x2c0] sm:$0xf]  ;;  %v3593_v19 = vld [vmem:[%s5583_s1 + $0x2cc] sm:$0xf0]  ;;  %1625 = vmatpush.bf16.msra.mxu3 %v2850_v12 }
   0x8   :  { %v2833_v20 = vld [vmem:[%s5583_s1 + $0x3c0] sm:$0xf]  ;;  %v2706_v21 = vor.u32 %v3593_v19, %v2705_v18  ;;  %v3625_v22 = vld [vmem:[%s5583_s1 + $0x3cc] sm:$0xf0]  ;;  %1587 = vmatpush.bf16.msra.mxu0 %v2450_v16 }
   0x9   :  { %v2433_v23 = vld [vmem:[%s5583_s1 + $0xa0] sm:$0xf]  ;;  %v3525_v24 = vld [vmem:[%s5583_s1 + $0xac] sm:$0xf0]  ;;  %v2834_v25 = vor.u32 %v3625_v22, %v2833_v20  ;;  %1600 = vmatpush.bf16.msra.mxu1 %v2578_v17 }
   0xa   :  { %v2561_v26 = vld [vmem:[%s5583_s1 + $0x1a0] sm:$0xf]  ;;  %v3557_v27 = vld [vmem:[%s5583_s1 + $0x1ac] sm:$0xf0]  ;;  %v2434_v29 = vor.u32 %v3525_v24, %v2433_v23  ;;  %1613 = vmatpush.bf16.msra.mxu2 %v2706_v21 }
   0xb   :  { %v2689_v28 = vld [vmem:[%s5583_s1 + $0x2a0] sm:$0xf]  ;;  %v3589_v30 = vld [vmem:[%s5583_s1 + $0x2ac] sm:$0xf0]  ;;  %v2562_v33 = vor.u32 %v3557_v27, %v2561_v26  ;;  %1626 = vmatpush.bf16.msra.mxu3 %v2834_v25 }
   0xc   :  { %v2817_v31 = vld [vmem:[%s5583_s1 + $0x3a0] sm:$0xf]  ;;  %v3621_v32 = vld [vmem:[%s5583_s1 + $0x3ac] sm:$0xf0]  ;;  %v2690_v34 = vor.u32 %v3589_v30, %v2689_v28  ;;  %1588 = vmatpush.bf16.msra.mxu0 %v2434_v29 }
   0xd   :  { %v2417_v35 = vld [vmem:[%s5583_s1 + $0x80] sm:$0xf]  ;;  %v3521_v36 = vld [vmem:[%s5583_s1 + $0x8c] sm:$0xf0]  ;;  %v2818_v38 = vor.u32 %v3621_v32, %v2817_v31  ;;  %1601 = vmatpush.bf16.msra.mxu1 %v2562_v33 }
   0xe   :  { %v2545_v37 = vld [vmem:[%s5583_s1 + $0x180] sm:$0xf]  ;;  %v3553_v39 = vld [vmem:[%s5583_s1 + $0x18c] sm:$0xf0]  ;;  %v2418_v44 = vor.u32 %v3521_v36, %v2417_v35  ;;  %1614 = vmatpush.bf16.msra.mxu2 %v2690_v34 }
   0xf   :  { %v2673_v40 = vld [vmem:[%s5583_s1 + $0x280] sm:$0xf]  ;;  %v3585_v41 = vld [vmem:[%s5583_s1 + $0x28c] sm:$0xf0]  ;;  %v2546_v45 = vor.u32 %v3553_v39, %v2545_v37  ;;  %1627 = vmatpush.bf16.msra.mxu3 %v2818_v38 }
  0x10   :  { %v2801_v42 = vld [vmem:[%s5583_s1 + $0x380] sm:$0xf]  ;;  %v3617_v43 = vld [vmem:[%s5583_s1 + $0x38c] sm:$0xf0]  ;;  %v2674_v46 = vor.u32 %v3585_v41, %v2673_v40  ;;  %1589 = vmatpush.bf16.msra.mxu0 %v2418_v44 }
  0x11   :  { %v2401_v47 = vld [vmem:[%s5583_s1 + $0x60] sm:$0xf]  ;;  %v3517_v48 = vld [vmem:[%s5583_s1 + $0x6c] sm:$0xf0]  ;;  %v2802_v50 = vor.u32 %v3617_v43, %v2801_v42  ;;  %1602 = vmatpush.bf16.msra.mxu1 %v2546_v45 }
  0x12   :  { %v2529_v49 = vld [vmem:[%s5583_s1 + $0x160] sm:$0xf]  ;;  %v3549_v51 = vld [vmem:[%s5583_s1 + $0x16c] sm:$0xf0]  ;;  %v2402_v56 = vor.u32 %v3517_v48, %v2401_v47  ;;  %1615 = vmatpush.bf16.msra.mxu2 %v2674_v46 }
  0x13   :  { %v2657_v52 = vld [vmem:[%s5583_s1 + $0x260] sm:$0xf]  ;;  %v3581_v53 = vld [vmem:[%s5583_s1 + $0x26c] sm:$0xf0]  ;;  %v2530_v57 = vor.u32 %v3549_v51, %v2529_v49  ;;  %1628 = vmatpush.bf16.msra.mxu3 %v2802_v50 }
  0x14   :  { %v2785_v54 = vld [vmem:[%s5583_s1 + $0x360] sm:$0xf]  ;;  %v3613_v55 = vld [vmem:[%s5583_s1 + $0x36c] sm:$0xf0]  ;;  %v2658_v58 = vor.u32 %v3581_v53, %v2657_v52  ;;  %1590 = vmatpush.bf16.msra.mxu0 %v2402_v56 }
  0x15   :  { %v2385_v59 = vld [vmem:[%s5583_s1 + $0x40] sm:$0xf]  ;;  %v3513_v60 = vld [vmem:[%s5583_s1 + $0x4c] sm:$0xf0]  ;;  %v2786_v62 = vor.u32 %v3613_v55, %v2785_v54  ;;  %1603 = vmatpush.bf16.msra.mxu1 %v2530_v57 }
  0x16   :  { %v2513_v61 = vld [vmem:[%s5583_s1 + $0x140] sm:$0xf]  ;;  %v3545_v63 = vld [vmem:[%s5583_s1 + $0x14c] sm:$0xf0]  ;;  %v2386_v4 = vor.u32 %v3513_v60, %v2385_v59  ;;  %1616 = vmatpush.bf16.msra.mxu2 %v2658_v58 }
  0x17   :  { %v2641_v0 = vld [vmem:[%s5583_s1 + $0x240] sm:$0xf]  ;;  %v3577_v1 = vld [vmem:[%s5583_s1 + $0x24c] sm:$0xf0]  ;;  %v2514_v5 = vor.u32 %v3545_v63, %v2513_v61  ;;  %1629 = vmatpush.bf16.msra.mxu3 %v2786_v62 }
  0x18   :  { %v2769_v2 = vld [vmem:[%s5583_s1 + $0x340] sm:$0xf]  ;;  %v3609_v3 = vld [vmem:[%s5583_s1 + $0x34c] sm:$0xf0]  ;;  %v2642_v6 = vor.u32 %v3577_v1, %v2641_v0  ;;  %1591 = vmatpush.bf16.msra.mxu0 %v2386_v4 }
  0x19   :  { %v2369_v7 = vld [vmem:[%s5583_s1 + $0x20] sm:$0xf]  ;;  %v3509_v8 = vld [vmem:[%s5583_s1 + $0x2c] sm:$0xf0]  ;;  %v2770_v10 = vor.u32 %v3609_v3, %v2769_v2  ;;  %1604 = vmatpush.bf16.msra.mxu1 %v2514_v5 }
  0x1a   :  { %v2497_v9 = vld [vmem:[%s5583_s1 + $0x120] sm:$0xf]  ;;  %v3541_v11 = vld [vmem:[%s5583_s1 + $0x12c] sm:$0xf0]  ;;  %v2370_v16 = vor.u32 %v3509_v8, %v2369_v7  ;;  %1617 = vmatpush.bf16.msra.mxu2 %v2642_v6 }
  0x1b   :  { %v2625_v12 = vld [vmem:[%s5583_s1 + $0x220] sm:$0xf]  ;;  %v3573_v13 = vld [vmem:[%s5583_s1 + $0x22c] sm:$0xf0]  ;;  %v2498_v19 = vor.u32 %v3541_v11, %v2497_v9  ;;  %1630 = vmatpush.bf16.msra.mxu3 %v2770_v10 }
  0x1c   :  { %v2753_v14 = vld [vmem:[%s5583_s1 + $0x320] sm:$0xf]  ;;  %v3605_v15 = vld [vmem:[%s5583_s1 + $0x32c] sm:$0xf0]  ;;  %v2626_v20 = vor.u32 %v3573_v13, %v2625_v12  ;;  %1592 = vmatpush.bf16.msra.mxu0 %v2370_v16 }
  0x1d   :  { %v2353_v17 = vld [vmem:[%s5583_s1] sm:$0xf]  ;;  %v3505_v18 = vld [vmem:[%s5583_s1 + $0xc] sm:$0xf0]  ;;  %v2754_v24 = vor.u32 %v3605_v15, %v2753_v14  ;;  %1605 = vmatpush.bf16.msra.mxu1 %v2498_v19 }
  0x1e   :  { %v2481_v21 = vld [vmem:[%s5583_s1 + $0x100] sm:$0xf]  ;;  %v3537_v22 = vld [vmem:[%s5583_s1 + $0x10c] sm:$0xf0]  ;;  %v2354_v31 = vor.u32 %v3505_v18, %v2353_v17  ;;  %1618 = vmatpush.bf16.msra.mxu2 %v2626_v20 }
  0x1f   :  { %v2609_v23 = vld [vmem:[%s5583_s1 + $0x200] sm:$0xf]  ;;  %v3569_v25 = vld [vmem:[%s5583_s1 + $0x20c] sm:$0xf0]  ;;  %v2482_v35 = vor.u32 %v3537_v22, %v2481_v21  ;;  %1631 = vmatpush.bf16.msra.mxu3 %v2754_v24 }
  0x20   :  { %v2737_v26 = vld [vmem:[%s5583_s1 + $0x300] sm:$0xf]  ;;  %v3601_v27 = vld [vmem:[%s5583_s1 + $0x30c] sm:$0xf0]  ;;  %v2610_v36 = vor.u32 %v3569_v25, %v2609_v23  ;;  %1593 = vmatpush.bf16.msra.mxu0 %v2354_v31 }
  0x21   :  { %v2977_v28 = vld [vmem:[%s5583_s1 + $0x4e0] sm:$0xf]  ;;  %v3661_v29 = vld [vmem:[%s5583_s1 + $0x4ec] sm:$0xf0]  ;;  %v2738_v39 = vor.u32 %v3601_v27, %v2737_v26  ;;  %1606 = vmatpush.bf16.msra.mxu1 %v2482_v35 }
  0x22   :  { %v3105_v30 = vld [vmem:[%s5583_s1 + $0x5e0] sm:$0xf]  ;;  %v3693_v32 = vld [vmem:[%s5583_s1 + $0x5ec] sm:$0xf0]  ;;  %v2978_v40 = vor.u32 %v3661_v29, %v2977_v28  ;;  %1619 = vmatpush.bf16.msra.mxu2 %v2610_v36 }
  0x23   :  { %v3233_v33 = vld [vmem:[%s5583_s1 + $0x6e0] sm:$0xf]  ;;  %v3725_v34 = vld [vmem:[%s5583_s1 + $0x6ec] sm:$0xf0]  ;;  %v3106_v41 = vor.u32 %v3693_v32, %v3105_v30  ;;  %1632 = vmatpush.bf16.msra.mxu3 %v2738_v39 }
  0x24   :  { %v3361_v37 = vld [vmem:[%s5583_s1 + $0x7e0] sm:$0xf]  ;;  %v3757_v38 = vld [vmem:[%s5583_s1 + $0x7ec] sm:$0xf0]  ;;  %v3234_v42 = vor.u32 %v3725_v34, %v3233_v33  ;;  %1638 = vmatpush.bf16.msrb.mxu0 %v2978_v40 }
  0x25   :  { %v2961_v43 = vld [vmem:[%s5583_s1 + $0x4c0] sm:$0xf]  ;;  %v3657_v44 = vld [vmem:[%s5583_s1 + $0x4cc] sm:$0xf0]  ;;  %v3362_v46 = vor.u32 %v3757_v38, %v3361_v37  ;;  %1651 = vmatpush.bf16.msrb.mxu1 %v3106_v41 }
  0x26   :  { %v3089_v45 = vld [vmem:[%s5583_s1 + $0x5c0] sm:$0xf]  ;;  %v3689_v47 = vld [vmem:[%s5583_s1 + $0x5cc] sm:$0xf0]  ;;  %v2962_v52 = vor.u32 %v3657_v44, %v2961_v43  ;;  %1664 = vmatpush.bf16.msrb.mxu2 %v3234_v42 }
  0x27   :  { %v3217_v48 = vld [vmem:[%s5583_s1 + $0x6c0] sm:$0xf]  ;;  %v3721_v49 = vld [vmem:[%s5583_s1 + $0x6cc] sm:$0xf0]  ;;  %v3090_v53 = vor.u32 %v3689_v47, %v3089_v45  ;;  %1677 = vmatpush.bf16.msrb.mxu3 %v3362_v46 }
  0x28   :  { %v3345_v50 = vld [vmem:[%s5583_s1 + $0x7c0] sm:$0xf]  ;;  %v3753_v51 = vld [vmem:[%s5583_s1 + $0x7cc] sm:$0xf0]  ;;  %v3218_v54 = vor.u32 %v3721_v49, %v3217_v48  ;;  %1639 = vmatpush.bf16.msrb.mxu0 %v2962_v52 }
  0x29   :  { %v2945_v55 = vld [vmem:[%s5583_s1 + $0x4a0] sm:$0xf]  ;;  %v3653_v56 = vld [vmem:[%s5583_s1 + $0x4ac] sm:$0xf0]  ;;  %v3346_v58 = vor.u32 %v3753_v51, %v3345_v50  ;;  %1652 = vmatpush.bf16.msrb.mxu1 %v3090_v53 }
  0x2a   :  { %v3073_v57 = vld [vmem:[%s5583_s1 + $0x5a0] sm:$0xf]  ;;  %v3685_v59 = vld [vmem:[%s5583_s1 + $0x5ac] sm:$0xf0]  ;;  %v2946_v0 = vor.u32 %v3653_v56, %v2945_v55  ;;  %1665 = vmatpush.bf16.msrb.mxu2 %v3218_v54 }
  0x2b   :  { %v3201_v60 = vld [vmem:[%s5583_s1 + $0x6a0] sm:$0xf]  ;;  %v3717_v61 = vld [vmem:[%s5583_s1 + $0x6ac] sm:$0xf0]  ;;  %v3074_v3 = vor.u32 %v3685_v59, %v3073_v57  ;;  %1678 = vmatpush.bf16.msrb.mxu3 %v3346_v58 }
  0x2c   :  { %v3329_v62 = vld [vmem:[%s5583_s1 + $0x7a0] sm:$0xf]  ;;  %v3749_v63 = vld [vmem:[%s5583_s1 + $0x7ac] sm:$0xf0]  ;;  %v3202_v4 = vor.u32 %v3717_v61, %v3201_v60  ;;  %1640 = vmatpush.bf16.msrb.mxu0 %v2946_v0 }
  0x2d   :  { %v2929_v1 = vld [vmem:[%s5583_s1 + $0x480] sm:$0xf]  ;;  %v3649_v5 = vld [vmem:[%s5583_s1 + $0x48c] sm:$0xf0]  ;;  %v3330_v7 = vor.u32 %v3749_v63, %v3329_v62  ;;  %1653 = vmatpush.bf16.msrb.mxu1 %v3074_v3  ;;  %v3563_v3 = vld [vmem:[%s5583_s1 + $0x1e4] sm:$0xf] }
  0x2e   :  { %v21_v2 = vld [vmem:[%s5582_s0] sm:$0xff]  ;;  %v3681_v8 = vld [vmem:[%s5583_s1 + $0x58c] sm:$0xf0]  ;;  %v2930_v13 = vor.u32 %v3649_v5, %v2929_v1  ;;  %1666 = vmatpush.bf16.msrb.mxu2 %v3202_v4  ;;  %v2595_v5 = vld [vmem:[%s5583_s1 + $0x1f0] sm:$0xf0] }
  0x2f   :  { %v3057_v6 = vld [vmem:[%s5583_s1 + $0x580] sm:$0xf]  ;;  %289 = vst [vmem:[#allocation1] ss:$9 sm:$0xff] %v21_v2  ;;  %v3713_v10 = vld [vmem:[%s5583_s1 + $0x68c] sm:$0xf0]  ;;  %1679 = vmatpush.bf16.msrb.mxu3 %v3330_v7 }
  0x30   :  { %v3185_v9 = vld [vmem:[%s5583_s1 + $0x680] sm:$0xf]  ;;  %v3745_v12 = vld [vmem:[%s5583_s1 + $0x78c] sm:$0xf0]  ;;  %v3058_v14 = vor.u32 %v3681_v8, %v3057_v6  ;;  %1641 = vmatpush.bf16.msrb.mxu0 %v2930_v13  ;;  %v3531_v1 = vld [vmem:[%s5583_s1 + $0xe4] sm:$0xf] }
  0x31   :  { %v3313_v11 = vld [vmem:[%s5583_s1 + $0x780] sm:$0xf]  ;;  %v3186_v15 = vor.u32 %v3713_v10, %v3185_v9  ;;  %v3645_v17 = vld [vmem:[%s5583_s1 + $0x46c] sm:$0xf0]  ;;  %v2467_v2 = vld [vmem:[%s5583_s1 + $0xf0] sm:$0xf0] }
  0x32   :  { %v2913_v16 = vld [vmem:[%s5583_s1 + $0x460] sm:$0xf]  ;;  %v3314_v19 = vor.u32 %v3745_v12, %v3313_v11  ;;  %v3677_v20 = vld [vmem:[%s5583_s1 + $0x56c] sm:$0xf0]  ;;  %1654 = vmatpush.bf16.msrb.mxu1 %v3058_v14  ;;  %v3595_v6 = vld [vmem:[%s5583_s1 + $0x2e4] sm:$0xf]  ;;  %v2470_v13 = vor.u32 %v3531_v1, %v2467_v2  ;;  %v2598_v14 = vor.u32 %v3563_v3, %v2595_v5 }
  0x33   :  { %v3041_v18 = vld [vmem:[%s5583_s1 + $0x560] sm:$0xf]  ;;  %v3709_v22 = vld [vmem:[%s5583_s1 + $0x66c] sm:$0xf0]  ;;  %v2914_v26 = vor.u32 %v3645_v17, %v2913_v16  ;;  %1667 = vmatpush.bf16.msrb.mxu2 %v3186_v15  ;;  %v2723_v7 = vld [vmem:[%s5583_s1 + $0x2f0] sm:$0xf0] }
  0x34   :  { %v3169_v21 = vld [vmem:[%s5583_s1 + $0x660] sm:$0xf]  ;;  %v3741_v24 = vld [vmem:[%s5583_s1 + $0x76c] sm:$0xf0]  ;;  %v3042_v30 = vor.u32 %v3677_v20, %v3041_v18  ;;  %1680 = vmatpush.bf16.msrb.mxu3 %v3314_v19  ;;  %v3627_v10 = vld [vmem:[%s5583_s1 + $0x3e4] sm:$0xf]  ;;  %v2726_v15 = vor.u32 %v3595_v6, %v2723_v7 }
  0x35   :  { %v3297_v23 = vld [vmem:[%s5583_s1 + $0x760] sm:$0xf]  ;;  %v3170_v31 = vor.u32 %v3709_v22, %v3169_v21  ;;  %v3641_v32 = vld [vmem:[%s5583_s1 + $0x44c] sm:$0xf0]  ;;  %1642 = vmatpush.bf16.msrb.mxu0 %v2914_v26  ;;  %v2851_v11 = vld [vmem:[%s5583_s1 + $0x3f0] sm:$0xf0] }
  0x36   :  { %v2897_v25 = vld [vmem:[%s5583_s1 + $0x440] sm:$0xf]  ;;  %v4180_v27 = vld [vmem:[#allocation1 + $0x12] sm:$0xff]  ;;  %v4192_v34 = vld [vmem:[#allocation1 + $0x9] sm:$0xff]  ;;  %v3298_v35 = vor.u32 %v3741_v24, %v3297_v23  ;;  %1655 = vmatpush.bf16.msrb.mxu1 %v3042_v30  ;;  %v2854_v19 = vor.u32 %v3627_v10, %v2851_v11 }
  0x37   :  { %v4182_v28 = vld [vmem:[#allocation1] sm:$0xff]  ;;  %v3673_v36 = vld [vmem:[%s5583_s1 + $0x54c] sm:$0xf0]  ;;  %1620 = vmatmul.bf16.vlgmr.msra.gmra.mxu2 %v4180_v27  ;;  %v2898_v41 = vor.u32 %v3641_v32, %v2897_v25  ;;  %1607 = vmatmul.bf16.vlgmr.msra.gmra.mxu1 %v4192_v34  ;;  %v2451_v17 = vld [vmem:[%s5583_s1 + $0xd0] sm:$0xf0] }
  0x38   :  { %v4184_v29 = vld [vmem:[#allocation1 + $0x1b] sm:$0xff]  ;;  %v3705_v38 = vld [vmem:[%s5583_s1 + $0x64c] sm:$0xf0]  ;;  %1594 = vmatmul.bf16.vlgmr.msra.gmra.mxu0 %v4182_v28  ;;  %1668 = vmatpush.bf16.msrb.mxu2 %v3170_v31  ;;  %v3527_v16 = vld [vmem:[%s5583_s1 + $0xc4] sm:$0xf] }
  0x39   :  { %v3025_v33 = vld [vmem:[%s5583_s1 + $0x540] sm:$0xf]  ;;  %v3737_v40 = vld [vmem:[%s5583_s1 + $0x74c] sm:$0xf0]  ;;  %1633 = vmatmul.bf16.vlgmr.msra.gmra.mxu3 %v4184_v29  ;;  %1643 = vmatpush.bf16.msrb.mxu0 %v2898_v41  ;;  %v3559_v18 = vld [vmem:[%s5583_s1 + $0x1c4] sm:$0xf]  ;;  %v2454_v26 = vor.u32 %v3527_v16, %v2451_v17 }
  0x3a   :  { %v3153_v37 = vld [vmem:[%s5583_s1 + $0x640] sm:$0xf]  ;;  %v3026_v42 = vor.u32 %v3673_v36, %v3025_v33  ;;  %v3637_v45 = vld [vmem:[%s5583_s1 + $0x42c] sm:$0xf0]  ;;  %1681 = vmatpush.bf16.msrb.mxu3 %v3298_v35  ;;  %v2579_v20 = vld [vmem:[%s5583_s1 + $0x1d0] sm:$0xf0] }
  0x3b   :  { %v3281_v39 = vld [vmem:[%s5583_s1 + $0x740] sm:$0xf]  ;;  %v3154_v43 = vor.u32 %v3705_v38, %v3153_v37  ;;  %v3669_v48 = vld [vmem:[%s5583_s1 + $0x52c] sm:$0xf0]  ;;  %v3591_v21 = vld [vmem:[%s5583_s1 + $0x2c4] sm:$0xf]  ;;  %v2582_v33 = vor.u32 %v3559_v18, %v2579_v20 }
  0x3c   :  { %v2881_v44 = vld [vmem:[%s5583_s1 + $0x420] sm:$0xf]  ;;  %v3282_v47 = vor.u32 %v3737_v40, %v3281_v39  ;;  %v3701_v50 = vld [vmem:[%s5583_s1 + $0x62c] sm:$0xf0]  ;;  %1656 = vmatpush.bf16.msrb.mxu1 %v3026_v42  ;;  %v2707_v22 = vld [vmem:[%s5583_s1 + $0x2d0] sm:$0xf0] }
  0x3d   :  { %v3009_v46 = vld [vmem:[%s5583_s1 + $0x520] sm:$0xf]  ;;  %v3733_v52 = vld [vmem:[%s5583_s1 + $0x72c] sm:$0xf0]  ;;  %v2882_v53 = vor.u32 %v3637_v45, %v2881_v44  ;;  %1669 = vmatpush.bf16.msrb.mxu2 %v3154_v43  ;;  %v3623_v23 = vld [vmem:[%s5583_s1 + $0x3c4] sm:$0xf]  ;;  %v2710_v35 = vor.u32 %v3591_v21, %v2707_v22 }
  0x3e   :  { %v3137_v49 = vld [vmem:[%s5583_s1 + $0x620] sm:$0xf]  ;;  %v3633_v55 = vld [vmem:[%s5583_s1 + $0x40c] sm:$0xf0]  ;;  %v3010_v56 = vor.u32 %v3669_v48, %v3009_v46  ;;  %1682 = vmatpush.bf16.msrb.mxu3 %v3282_v47  ;;  %v2835_v24 = vld [vmem:[%s5583_s1 + $0x3d0] sm:$0xf0] }
  0x3f   :  { %v3265_v51 = vld [vmem:[%s5583_s1 + $0x720] sm:$0xf]  ;;  %v3138_v57 = vor.u32 %v3701_v50, %v3137_v49  ;;  %v3665_v59 = vld [vmem:[%s5583_s1 + $0x50c] sm:$0xf0]  ;;  %1644 = vmatpush.bf16.msrb.mxu0 %v2882_v53  ;;  %v4309_v25 = vld [vmem:[#allocation1 + $0x36] sm:$0xff]  ;;  %v2838_v39 = vor.u32 %v3623_v23, %v2835_v24 }
  0x40   :  { %v2865_v54 = vld [vmem:[%s5583_s1 + $0x400] sm:$0xf]  ;;  %v3266_v61 = vor.u32 %v3733_v52, %v3265_v51  ;;  %v3697_v62 = vld [vmem:[%s5583_s1 + $0x60c] sm:$0xf0]  ;;  %1657 = vmatpush.bf16.msrb.mxu1 %v3010_v56  ;;  %v3523_v30 = vld [vmem:[%s5583_s1 + $0xa4] sm:$0xf] }
  0x41   :  { %v2993_v58 = vld [vmem:[%s5583_s1 + $0x500] sm:$0xf]  ;;  %v3729_v0 = vld [vmem:[%s5583_s1 + $0x70c] sm:$0xf0]  ;;  %v2866_v4 = vor.u32 %v3633_v55, %v2865_v54  ;;  %1670 = vmatpush.bf16.msrb.mxu2 %v3138_v57  ;;  %v4314_v31 = vld [vmem:[#allocation1 + $0x24] sm:$0xff] }
  0x42   :  { %v3121_v60 = vld [vmem:[%s5583_s1 + $0x600] sm:$0xf]  ;;  %v2994_v8 = vor.u32 %v3665_v59, %v2993_v58  ;;  %1683 = vmatpush.bf16.msrb.mxu3 %v3266_v61  ;;  %v2435_v36 = vld [vmem:[%s5583_s1 + $0xb0] sm:$0xf0]  ;;  %v3555_v37 = vld [vmem:[%s5583_s1 + $0x1a4] sm:$0xf] }
  0x43   :  { %v3249_v63 = vld [vmem:[%s5583_s1 + $0x700] sm:$0xf]  ;;  %v3122_v9 = vor.u32 %v3697_v62, %v3121_v60  ;;  %1645 = vmatpush.bf16.msrb.mxu0 %v2866_v4  ;;  %v4324_v38 = vld [vmem:[#allocation1 + $0x2d] sm:$0xff]  ;;  %v3587_v41 = vld [vmem:[%s5583_s1 + $0x2a4] sm:$0xf]  ;;  %v2438_v45 = vor.u32 %v3523_v30, %v2435_v36 }
  0x44   :  { %v3250_v12 = vor.u32 %v3729_v0, %v3249_v63  ;;  %1658 = vmatpush.bf16.msrb.mxu1 %v2994_v8  ;;  %v4316_v32 = vld [vmem:[#allocation1 + $0x3f] sm:$0xff]  ;;  %v2563_v40 = vld [vmem:[%s5583_s1 + $0x1b0] sm:$0xf0] }
  0x45   :  { %1671 = vmatpush.bf16.msrb.mxu2 %v3122_v9  ;;  %v2691_v42 = vld [vmem:[%s5583_s1 + $0x2b0] sm:$0xf0]  ;;  %v3619_v43 = vld [vmem:[%s5583_s1 + $0x3a4] sm:$0xf]  ;;  %v2566_v46 = vor.u32 %v3555_v37, %v2563_v40 }
  0x46   :  { %1684 = vmatpush.bf16.msrb.mxu3 %v3250_v12  ;;  %v2819_v44 = vld [vmem:[%s5583_s1 + $0x3b0] sm:$0xf0]  ;;  %v2694_v47 = vor.u32 %v3587_v41, %v2691_v42  ;;  %v3519_v48 = vld [vmem:[%s5583_s1 + $0x84] sm:$0xf] }
  0x47   :  { %1690 = vmatpush.bf16.msra.mxu0 %v2470_v13  ;;  %1659 = vmatmul.bf16.vlgmr.msrb.gmra.mxu1 %v4324_v38  ;;  %v2419_v49 = vld [vmem:[%s5583_s1 + $0x90] sm:$0xf0]  ;;  %v3551_v50 = vld [vmem:[%s5583_s1 + $0x184] sm:$0xf]  ;;  %v2822_v51 = vor.u32 %v3619_v43, %v2819_v44 }
  0x48   :  { %1703 = vmatpush.bf16.msra.mxu1 %v2598_v14  ;;  %1672 = vmatmul.bf16.vlgmr.msrb.gmra.mxu2 %v4309_v25  ;;  %v2547_v52 = vld [vmem:[%s5583_s1 + $0x190] sm:$0xf0]  ;;  %v3583_v53 = vld [vmem:[%s5583_s1 + $0x284] sm:$0xf]  ;;  %v2422_v57 = vor.u32 %v3519_v48, %v2419_v49 }
  0x49   :  { %1716 = vmatpush.bf16.msra.mxu2 %v2726_v15  ;;  %1646 = vmatmul.bf16.vlgmr.msrb.gmra.mxu0 %v4314_v31  ;;  %v2675_v54 = vld [vmem:[%s5583_s1 + $0x290] sm:$0xf0]  ;;  %v3615_v55 = vld [vmem:[%s5583_s1 + $0x384] sm:$0xf]  ;;  %v2550_v58 = vor.u32 %v3551_v50, %v2547_v52 }
  0x4a   :  { %1729 = vmatpush.bf16.msra.mxu3 %v2854_v19  ;;  %v2803_v56 = vld [vmem:[%s5583_s1 + $0x390] sm:$0xf0]  ;;  %v2678_v59 = vor.u32 %v3583_v53, %v2675_v54  ;;  %v3515_v60 = vld [vmem:[%s5583_s1 + $0x64] sm:$0xf] }
  0x4b   :  { %1685 = vmatmul.bf16.vlgmr.msrb.gmra.mxu3 %v4316_v32  ;;  %1691 = vmatpush.bf16.msra.mxu0 %v2454_v26  ;;  %v2403_v61 = vld [vmem:[%s5583_s1 + $0x70] sm:$0xf0]  ;;  %v3547_v62 = vld [vmem:[%s5583_s1 + $0x164] sm:$0xf]  ;;  %v2806_v63 = vor.u32 %v3615_v55, %v2803_v56 }
  0x4c   :  { %1704 = vmatpush.bf16.msra.mxu1 %v2582_v33  ;;  %v2531_v0 = vld [vmem:[%s5583_s1 + $0x170] sm:$0xf0]  ;;  %v3579_v1 = vld [vmem:[%s5583_s1 + $0x264] sm:$0xf]  ;;  %v2406_v5 = vor.u32 %v3515_v60, %v2403_v61 }
  0x4d   :  { %1717 = vmatpush.bf16.msra.mxu2 %v2710_v35  ;;  %v2659_v2 = vld [vmem:[%s5583_s1 + $0x270] sm:$0xf0]  ;;  %v3611_v3 = vld [vmem:[%s5583_s1 + $0x364] sm:$0xf]  ;;  %v2534_v6 = vor.u32 %v3547_v62, %v2531_v0 }
  0x4e   :  { %1730 = vmatpush.bf16.msra.mxu3 %v2838_v39  ;;  %v2787_v4 = vld [vmem:[%s5583_s1 + $0x370] sm:$0xf0]  ;;  %v2662_v7 = vor.u32 %v3579_v1, %v2659_v2  ;;  %v3511_v8 = vld [vmem:[%s5583_s1 + $0x44] sm:$0xf] }
  0x4f   :  { %1692 = vmatpush.bf16.msra.mxu0 %v2438_v45  ;;  %v2387_v9 = vld [vmem:[%s5583_s1 + $0x50] sm:$0xf0]  ;;  %v3543_v10 = vld [vmem:[%s5583_s1 + $0x144] sm:$0xf]  ;;  %v2790_v11 = vor.u32 %v3611_v3, %v2787_v4 }
  0x50   :  { %1705 = vmatpush.bf16.msra.mxu1 %v2566_v46  ;;  %v2515_v12 = vld [vmem:[%s5583_s1 + $0x150] sm:$0xf0]  ;;  %v3575_v13 = vld [vmem:[%s5583_s1 + $0x244] sm:$0xf]  ;;  %v2390_v17 = vor.u32 %v3511_v8, %v2387_v9 }
  0x51   :  { %1718 = vmatpush.bf16.msra.mxu2 %v2694_v47  ;;  %v2643_v14 = vld [vmem:[%s5583_s1 + $0x250] sm:$0xf0]  ;;  %v3607_v15 = vld [vmem:[%s5583_s1 + $0x344] sm:$0xf]  ;;  %v2518_v18 = vor.u32 %v3543_v10, %v2515_v12 }
  0x52   :  { %1731 = vmatpush.bf16.msra.mxu3 %v2822_v51  ;;  %v2771_v16 = vld [vmem:[%s5583_s1 + $0x350] sm:$0xf0]  ;;  %v2646_v19 = vor.u32 %v3575_v13, %v2643_v14  ;;  %v3507_v20 = vld [vmem:[%s5583_s1 + $0x24] sm:$0xf] }
  0x53   :  { %1693 = vmatpush.bf16.msra.mxu0 %v2422_v57  ;;  %v2371_v21 = vld [vmem:[%s5583_s1 + $0x30] sm:$0xf0]  ;;  %v3539_v22 = vld [vmem:[%s5583_s1 + $0x124] sm:$0xf]  ;;  %v2774_v23 = vor.u32 %v3607_v15, %v2771_v16 }
  0x54   :  { %1706 = vmatpush.bf16.msra.mxu1 %v2550_v58  ;;  %v2499_v24 = vld [vmem:[%s5583_s1 + $0x130] sm:$0xf0]  ;;  %v3571_v26 = vld [vmem:[%s5583_s1 + $0x224] sm:$0xf]  ;;  %v2374_v37 = vor.u32 %v3507_v20, %v2371_v21 }
  0x55   :  { %1719 = vmatpush.bf16.msra.mxu2 %v2678_v59  ;;  %v2627_v30 = vld [vmem:[%s5583_s1 + $0x230] sm:$0xf0]  ;;  %v3603_v33 = vld [vmem:[%s5583_s1 + $0x324] sm:$0xf]  ;;  %v2502_v42 = vor.u32 %v3539_v22, %v2499_v24 }
  0x56   :  { %1732 = vmatpush.bf16.msra.mxu3 %v2806_v63  ;;  %v2755_v35 = vld [vmem:[%s5583_s1 + $0x330] sm:$0xf0]  ;;  %v3503_v36 = vld [vmem:[%s5583_s1 + $0x4] sm:$0xf]  ;;  %v2630_v43 = vor.u32 %v3571_v26, %v2627_v30 }
  0x57   :  { %1694 = vmatpush.bf16.msra.mxu0 %v2406_v5  ;;  %v2355_v39 = vld [vmem:[%s5583_s1 + $0x10] sm:$0xf0]  ;;  %v3535_v40 = vld [vmem:[%s5583_s1 + $0x104] sm:$0xf]  ;;  %v2758_v47 = vor.u32 %v3603_v33, %v2755_v35 }
  0x58   :  { %1707 = vmatpush.bf16.msra.mxu1 %v2534_v6  ;;  %v2483_v41 = vld [vmem:[%s5583_s1 + $0x110] sm:$0xf0]  ;;  %v3567_v44 = vld [vmem:[%s5583_s1 + $0x204] sm:$0xf] }
  0x59   :  { %1720 = vmatpush.bf16.msra.mxu2 %v2662_v7  ;;  %v2611_v45 = vld [vmem:[%s5583_s1 + $0x210] sm:$0xf0]  ;;  %v3599_v46 = vld [vmem:[%s5583_s1 + $0x304] sm:$0xf] }
  0x5a   :  { %1733 = vmatpush.bf16.msra.mxu3 %v2790_v11  ;;  %v2739_v48 = vld [vmem:[%s5583_s1 + $0x310] sm:$0xf0]  ;;  %v3659_v49 = vld [vmem:[%s5583_s1 + $0x4e4] sm:$0xf] }
  0x5b   :  { %1695 = vmatpush.bf16.msra.mxu0 %v2390_v17  ;;  %v2979_v50 = vld [vmem:[%s5583_s1 + $0x4f0] sm:$0xf0]  ;;  %v3691_v51 = vld [vmem:[%s5583_s1 + $0x5e4] sm:$0xf] }
  0x5c   :  { %1708 = vmatpush.bf16.msra.mxu1 %v2518_v18 }
  0x5d   :  { %1721 = vmatpush.bf16.msra.mxu2 %v2646_v19 }
  0x5e   :  { %1734 = vmatpush.bf16.msra.mxu3 %v2774_v23 }
  0x5f   :  { %10 = vsyncpa [#allocation3], 0  ;;  %1696 = vmatpush.bf16.msra.mxu0 %v2374_v37  ;;  %v2358_v52 = vor.u32 %v3503_v36, %v2355_v39  ;;  %v3107_v53 = vld [vmem:[%s5583_s1 + $0x5f0] sm:$0xf0]  ;;  %v3723_v54 = vld [vmem:[%s5583_s1 + $0x6e4] sm:$0xf]  ;;  %v2486_v56 = vor.u32 %v3535_v40, %v2483_v41  ;;  %v2614_v57 = vor.u32 %v3567_v44, %v2611_v45  ;;  %v2742_v60 = vor.u32 %v3599_v46, %v2739_v48 }
  0x60   :  { %v3235_v55 = vld [vmem:[%s5583_s1 + $0x6f0] sm:$0xf0]  ;;  %1709 = vmatpush.bf16.msra.mxu1 %v2502_v42  ;;  %v3755_v58 = vld [vmem:[%s5583_s1 + $0x7e4] sm:$0xf]  ;;  %v2982_v61 = vor.u32 %v3659_v49, %v2979_v50  ;;  %v3110_v62 = vor.u32 %v3691_v51, %v3107_v53  ;;  %vm2322_vm0 = vcmask 74752  }
  0x61   :  { %1722 = vmatpush.bf16.msra.mxu2 %v2630_v43  ;;  %v3363_v59 = vld [vmem:[%s5583_s1 + $0x7f0] sm:$0xf0]  ;;  %v3238_v63 = vor.u32 %v3723_v54, %v3235_v55  ;;  %v3655_v0 = vld [vmem:[%s5583_s1 + $0x4c4] sm:$0xf] }
  0x62   :  { %1735 = vmatpush.bf16.msra.mxu3 %v2758_v47  ;;  %v2963_v1 = vld [vmem:[%s5583_s1 + $0x4d0] sm:$0xf0]  ;;  %v3687_v2 = vld [vmem:[%s5583_s1 + $0x5c4] sm:$0xf]  ;;  %v3366_v3 = vor.u32 %v3755_v58, %v3363_v59 }
  0x63   :  { %1697 = vmatpush.bf16.msra.mxu0 %v2358_v52  ;;  %v3091_v4 = vld [vmem:[%s5583_s1 + $0x5d0] sm:$0xf0]  ;;  %v3719_v5 = vld [vmem:[%s5583_s1 + $0x6c4] sm:$0xf]  ;;  %v2966_v9 = vor.u32 %v3655_v0, %v2963_v1 }
  0x64   :  { %v3219_v6 = vld [vmem:[%s5583_s1 + $0x6d0] sm:$0xf0]  ;;  %1710 = vmatpush.bf16.msra.mxu1 %v2486_v56  ;;  %v3751_v7 = vld [vmem:[%s5583_s1 + $0x7c4] sm:$0xf]  ;;  %v3094_v10 = vor.u32 %v3687_v2, %v3091_v4 }
  0x65   :  { %1723 = vmatpush.bf16.msra.mxu2 %v2614_v57  ;;  %v3347_v8 = vld [vmem:[%s5583_s1 + $0x7d0] sm:$0xf0]  ;;  %v3222_v11 = vor.u32 %v3719_v5, %v3219_v6  ;;  %v3651_v12 = vld [vmem:[%s5583_s1 + $0x4a4] sm:$0xf] }
  0x66   :  { %1736 = vmatpush.bf16.msra.mxu3 %v2742_v60  ;;  %v2947_v13 = vld [vmem:[%s5583_s1 + $0x4b0] sm:$0xf0]  ;;  %v3683_v14 = vld [vmem:[%s5583_s1 + $0x5a4] sm:$0xf]  ;;  %v3350_v15 = vor.u32 %v3751_v7, %v3347_v8  ;;  %1698 = vmatmul.bf16.vlgmr.msra.gmra.mxu0 %v4182_v28 }
  0x67   :  { %1742 = vmatpush.bf16.msrb.mxu0 %v2982_v61  ;;  %v3075_v16 = vld [vmem:[%s5583_s1 + $0x5b0] sm:$0xf0]  ;;  %v3715_v17 = vld [vmem:[%s5583_s1 + $0x6a4] sm:$0xf]  ;;  %v2950_v21 = vor.u32 %v3651_v12, %v2947_v13  ;;  %1711 = vmatmul.bf16.vlgmr.msra.gmra.mxu1 %v4192_v34 }
  0x68   :  { %1755 = vmatpush.bf16.msrb.mxu1 %v3110_v62  ;;  %v3203_v18 = vld [vmem:[%s5583_s1 + $0x6b0] sm:$0xf0]  ;;  %1724 = vmatmul.bf16.vlgmr.msra.gmra.mxu2 %v4180_v27  ;;  %v3747_v19 = vld [vmem:[%s5583_s1 + $0x7a4] sm:$0xf]  ;;  %v3078_v22 = vor.u32 %v3683_v14, %v3075_v16 }
  0x69   :  { %1768 = vmatpush.bf16.msrb.mxu2 %v3238_v63  ;;  %v3331_v20 = vld [vmem:[%s5583_s1 + $0x7b0] sm:$0xf0]  ;;  %1737 = vmatmul.bf16.vlgmr.msra.gmra.mxu3 %v4184_v29  ;;  %v3206_v23 = vor.u32 %v3715_v17, %v3203_v18  ;;  %v3647_v24 = vld [vmem:[%s5583_s1 + $0x484] sm:$0xf] }
  0x6a   :  { %1781 = vmatpush.bf16.msrb.mxu3 %v3366_v3  ;;  %v2931_v26 = vld [vmem:[%s5583_s1 + $0x490] sm:$0xf0]  ;;  %v3679_v30 = vld [vmem:[%s5583_s1 + $0x584] sm:$0xf]  ;;  %v3334_v33 = vor.u32 %v3747_v19, %v3331_v20 }
  0x6b   :  { %1743 = vmatpush.bf16.msrb.mxu0 %v2966_v9  ;;  %v3059_v35 = vld [vmem:[%s5583_s1 + $0x590] sm:$0xf0]  ;;  %v3711_v36 = vld [vmem:[%s5583_s1 + $0x684] sm:$0xf]  ;;  %v2934_v41 = vor.u32 %v3647_v24, %v2931_v26  ;;  %v2473_v26 = vld [vmem:[%s5583_s1 + $0xe8] sm:$0xf] }
  0x6c   :  { %1756 = vmatpush.bf16.msrb.mxu1 %v3094_v10  ;;  %v3187_v37 = vld [vmem:[%s5583_s1 + $0x690] sm:$0xf0]  ;;  %v3743_v39 = vld [vmem:[%s5583_s1 + $0x784] sm:$0xf]  ;;  %v3062_v42 = vor.u32 %v3679_v30, %v3059_v35  ;;  %v3534_v30 = vld [vmem:[%s5583_s1 + $0xf4] sm:$0xf0] }
  0x6d   :  { %1769 = vmatpush.bf16.msrb.mxu2 %v3222_v11  ;;  %v3315_v40 = vld [vmem:[%s5583_s1 + $0x790] sm:$0xf0]  ;;  %v3190_v43 = vor.u32 %v3711_v36, %v3187_v37  ;;  %v3643_v44 = vld [vmem:[%s5583_s1 + $0x464] sm:$0xf]  ;;  %v3566_v36 = vld [vmem:[%s5583_s1 + $0x1f4] sm:$0xf0] }
  0x6e   :  { %1782 = vmatpush.bf16.msrb.mxu3 %v3350_v15  ;;  %v2915_v45 = vld [vmem:[%s5583_s1 + $0x470] sm:$0xf0]  ;;  %v3675_v46 = vld [vmem:[%s5583_s1 + $0x564] sm:$0xf]  ;;  %v3318_v47 = vor.u32 %v3743_v39, %v3315_v40  ;;  %v2729_v37 = vld [vmem:[%s5583_s1 + $0x2e8] sm:$0xf] }
  0x6f   :  { %1744 = vmatpush.bf16.msrb.mxu0 %v2950_v21  ;;  %v3043_v48 = vld [vmem:[%s5583_s1 + $0x570] sm:$0xf0]  ;;  %v3707_v49 = vld [vmem:[%s5583_s1 + $0x664] sm:$0xf]  ;;  %v2918_v53 = vor.u32 %v3643_v44, %v2915_v45  ;;  %v3598_v39 = vld [vmem:[%s5583_s1 + $0x2f4] sm:$0xf0]  ;;  %v2474_v45 = vor.u32 %v3534_v30, %v2473_v26 }
  0x70   :  { %1757 = vmatpush.bf16.msrb.mxu1 %v3078_v22  ;;  %v3171_v50 = vld [vmem:[%s5583_s1 + $0x670] sm:$0xf0]  ;;  %v3739_v51 = vld [vmem:[%s5583_s1 + $0x764] sm:$0xf]  ;;  %v3046_v54 = vor.u32 %v3675_v46, %v3043_v48  ;;  %v2457_v48 = vld [vmem:[%s5583_s1 + $0xc8] sm:$0xf] }
  0x71   :  { %1770 = vmatpush.bf16.msrb.mxu2 %v3206_v23  ;;  %v3299_v52 = vld [vmem:[%s5583_s1 + $0x770] sm:$0xf0]  ;;  %v3174_v55 = vor.u32 %v3707_v49, %v3171_v50  ;;  %v3639_v56 = vld [vmem:[%s5583_s1 + $0x444] sm:$0xf]  ;;  %v3530_v49 = vld [vmem:[%s5583_s1 + $0xd4] sm:$0xf0] }
  0x72   :  { %1783 = vmatpush.bf16.msrb.mxu3 %v3334_v33  ;;  %v2899_v57 = vld [vmem:[%s5583_s1 + $0x450] sm:$0xf0]  ;;  %v3671_v58 = vld [vmem:[%s5583_s1 + $0x544] sm:$0xf]  ;;  %v3302_v59 = vor.u32 %v3739_v51, %v3299_v52  ;;  %v2601_v33 = vld [vmem:[%s5583_s1 + $0x1e8] sm:$0xf] }
  0x73   :  { %1745 = vmatpush.bf16.msrb.mxu0 %v2934_v41  ;;  %v3027_v60 = vld [vmem:[%s5583_s1 + $0x550] sm:$0xf0]  ;;  %v3703_v61 = vld [vmem:[%s5583_s1 + $0x644] sm:$0xf]  ;;  %v2902_v1 = vor.u32 %v3639_v56, %v2899_v57  ;;  %v2602_v46 = vor.u32 %v3566_v36, %v2601_v33  ;;  %v2585_v50 = vld [vmem:[%s5583_s1 + $0x1c8] sm:$0xf]  ;;  %v2458_v57 = vor.u32 %v3530_v49, %v2457_v48 }
  0x74   :  { %1758 = vmatpush.bf16.msrb.mxu1 %v3062_v42  ;;  %v3155_v62 = vld [vmem:[%s5583_s1 + $0x650] sm:$0xf0]  ;;  %v3735_v63 = vld [vmem:[%s5583_s1 + $0x744] sm:$0xf]  ;;  %v3030_v2 = vor.u32 %v3671_v58, %v3027_v60  ;;  %v2857_v42 = vld [vmem:[%s5583_s1 + $0x3e8] sm:$0xf] }
  0x75   :  { %1771 = vmatpush.bf16.msrb.mxu2 %v3190_v43  ;;  %v3283_v0 = vld [vmem:[%s5583_s1 + $0x750] sm:$0xf0]  ;;  %v3158_v3 = vor.u32 %v3703_v61, %v3155_v62  ;;  %v3635_v4 = vld [vmem:[%s5583_s1 + $0x424] sm:$0xf]  ;;  %v3630_v43 = vld [vmem:[%s5583_s1 + $0x3f4] sm:$0xf0] }
  0x76   :  { %1784 = vmatpush.bf16.msrb.mxu3 %v3318_v47  ;;  %v2883_v5 = vld [vmem:[%s5583_s1 + $0x430] sm:$0xf0]  ;;  %v3667_v6 = vld [vmem:[%s5583_s1 + $0x524] sm:$0xf]  ;;  %v3286_v7 = vor.u32 %v3735_v63, %v3283_v0  ;;  %v2730_v47 = vor.u32 %v3598_v39, %v2729_v37  ;;  %v2858_v51 = vor.u32 %v3630_v43, %v2857_v42  ;;  %v3562_v52 = vld [vmem:[%s5583_s1 + $0x1d4] sm:$0xf0] }
  0x77   :  { %1746 = vmatpush.bf16.msrb.mxu0 %v2918_v53  ;;  %v3011_v8 = vld [vmem:[%s5583_s1 + $0x530] sm:$0xf0]  ;;  %v3699_v9 = vld [vmem:[%s5583_s1 + $0x624] sm:$0xf]  ;;  %v2886_v13 = vor.u32 %v3635_v4, %v2883_v5  ;;  %v2713_v53 = vld [vmem:[%s5583_s1 + $0x2c8] sm:$0xf]  ;;  %v2586_v58 = vor.u32 %v3562_v52, %v2585_v50 }
  0x78   :  { %1759 = vmatpush.bf16.msrb.mxu1 %v3046_v54  ;;  %v3139_v10 = vld [vmem:[%s5583_s1 + $0x630] sm:$0xf0]  ;;  %v3731_v11 = vld [vmem:[%s5583_s1 + $0x724] sm:$0xf]  ;;  %v3014_v16 = vor.u32 %v3667_v6, %v3011_v8  ;;  %v3594_v54 = vld [vmem:[%s5583_s1 + $0x2d4] sm:$0xf0] }
  0x79   :  { %1772 = vmatpush.bf16.msrb.mxu2 %v3174_v55  ;;  %v3267_v12 = vld [vmem:[%s5583_s1 + $0x730] sm:$0xf0]  ;;  %v3631_v14 = vld [vmem:[%s5583_s1 + $0x404] sm:$0xf]  ;;  %v3142_v17 = vor.u32 %v3699_v9, %v3139_v10  ;;  %v2841_v55 = vld [vmem:[%s5583_s1 + $0x3c8] sm:$0xf] }
  0x7a   :  { %1785 = vmatpush.bf16.msrb.mxu3 %v3302_v59  ;;  %v2867_v15 = vld [vmem:[%s5583_s1 + $0x410] sm:$0xf0]  ;;  %v3663_v18 = vld [vmem:[%s5583_s1 + $0x504] sm:$0xf]  ;;  %v3270_v21 = vor.u32 %v3731_v11, %v3267_v12  ;;  %v3626_v56 = vld [vmem:[%s5583_s1 + $0x3d4] sm:$0xf0]  ;;  %v2714_v59 = vor.u32 %v3594_v54, %v2713_v53 }
  0x7b   :  { %1747 = vmatpush.bf16.msrb.mxu0 %v2902_v1  ;;  %v2995_v19 = vld [vmem:[%s5583_s1 + $0x510] sm:$0xf0]  ;;  %v3695_v20 = vld [vmem:[%s5583_s1 + $0x604] sm:$0xf]  ;;  %v2870_v35 = vor.u32 %v3631_v14, %v2867_v15  ;;  %v2441_v60 = vld [vmem:[%s5583_s1 + $0xa8] sm:$0xf]  ;;  %v2842_v63 = vor.u32 %v3626_v56, %v2841_v55 }
  0x7c   :  { %1760 = vmatpush.bf16.msrb.mxu1 %v3030_v2  ;;  %v3123_v22 = vld [vmem:[%s5583_s1 + $0x610] sm:$0xf0]  ;;  %v3727_v23 = vld [vmem:[%s5583_s1 + $0x704] sm:$0xf]  ;;  %v2998_v40 = vor.u32 %v3663_v18, %v2995_v19  ;;  %v3526_v61 = vld [vmem:[%s5583_s1 + $0xb4] sm:$0xf0] }
  0x7d   :  { %1773 = vmatpush.bf16.msrb.mxu2 %v3158_v3  ;;  %v3251_v24 = vld [vmem:[%s5583_s1 + $0x710] sm:$0xf0]  ;;  %v3126_v41 = vor.u32 %v3695_v20, %v3123_v22  ;;  %v2569_v62 = vld [vmem:[%s5583_s1 + $0x1a8] sm:$0xf]  ;;  %v3558_v0 = vld [vmem:[%s5583_s1 + $0x1b4] sm:$0xf0]  ;;  %v2442_v4 = vor.u32 %v3526_v61, %v2441_v60 }
  0x7e   :  { %1786 = vmatpush.bf16.msrb.mxu3 %v3286_v7  ;;  %v3254_v44 = vor.u32 %v3727_v23, %v3251_v24  ;;  %v2697_v1 = vld [vmem:[%s5583_s1 + $0x2a8] sm:$0xf]  ;;  %v3590_v2 = vld [vmem:[%s5583_s1 + $0x2b4] sm:$0xf0]  ;;  %v2570_v5 = vor.u32 %v3558_v0, %v2569_v62 }
  0x7f   :  { %1748 = vmatpush.bf16.msrb.mxu0 %v2886_v13  ;;  %v2825_v3 = vld [vmem:[%s5583_s1 + $0x3a8] sm:$0xf]  ;;  %v2698_v6 = vor.u32 %v3590_v2, %v2697_v1  ;;  %v3522_v8 = vld [vmem:[%s5583_s1 + $0x94] sm:$0xf0] }
  0x80   :  { %1761 = vmatpush.bf16.msrb.mxu1 %v3014_v16  ;;  %v2425_v7 = vld [vmem:[%s5583_s1 + $0x88] sm:$0xf]  ;;  %v3586_v10 = vld [vmem:[%s5583_s1 + $0x294] sm:$0xf0] }
  0x81   :  { %1774 = vmatpush.bf16.msrb.mxu2 %v3142_v17  ;;  %v2681_v9 = vld [vmem:[%s5583_s1 + $0x288] sm:$0xf]  ;;  %v3618_v12 = vld [vmem:[%s5583_s1 + $0x394] sm:$0xf0]  ;;  %v2426_v13 = vor.u32 %v3522_v8, %v2425_v7 }
  0x82   :  { %1787 = vmatpush.bf16.msrb.mxu3 %v3270_v21  ;;  %v2809_v11 = vld [vmem:[%s5583_s1 + $0x388] sm:$0xf]  ;;  %v2682_v15 = vor.u32 %v3586_v10, %v2681_v9  ;;  %v3518_v17 = vld [vmem:[%s5583_s1 + $0x74] sm:$0xf0] }
  0x83   :  { %1749 = vmatpush.bf16.msrb.mxu0 %v2870_v35  ;;  %v2409_v16 = vld [vmem:[%s5583_s1 + $0x68] sm:$0xf]  ;;  %v2810_v19 = vor.u32 %v3618_v12, %v2809_v11  ;;  %v3550_v20 = vld [vmem:[%s5583_s1 + $0x174] sm:$0xf0] }
  0x84   :  { %1762 = vmatpush.bf16.msrb.mxu1 %v2998_v40  ;;  %v2537_v18 = vld [vmem:[%s5583_s1 + $0x168] sm:$0xf]  ;;  %v3582_v22 = vld [vmem:[%s5583_s1 + $0x274] sm:$0xf0]  ;;  %v2410_v26 = vor.u32 %v3518_v17, %v2409_v16 }
  0x85   :  { %1775 = vmatpush.bf16.msrb.mxu2 %v3126_v41  ;;  %v2665_v21 = vld [vmem:[%s5583_s1 + $0x268] sm:$0xf]  ;;  %v3614_v24 = vld [vmem:[%s5583_s1 + $0x374] sm:$0xf0]  ;;  %v2538_v30 = vor.u32 %v3550_v20, %v2537_v18 }
  0x86   :  { %1788 = vmatpush.bf16.msrb.mxu3 %v3254_v44  ;;  %1750 = vmatmul.bf16.vlgmr.msrb.gmra.mxu0 %v4314_v31  ;;  %v2553_v31 = vld [vmem:[%s5583_s1 + $0x188] sm:$0xf]  ;;  %v2666_v33 = vor.u32 %v3582_v22, %v2665_v21  ;;  %v3514_v36 = vld [vmem:[%s5583_s1 + $0x54] sm:$0xf0] }
  0x87   :  { %1794 = vmatpush.bf16.msra.mxu0 %v2474_v45  ;;  %1763 = vmatmul.bf16.vlgmr.msrb.gmra.mxu1 %v4324_v38  ;;  %v3554_v38 = vld [vmem:[%s5583_s1 + $0x194] sm:$0xf0]  ;;  %v2793_v23 = vld [vmem:[%s5583_s1 + $0x368] sm:$0xf] }
  0x88   :  { %1807 = vmatpush.bf16.msra.mxu1 %v2602_v46  ;;  %1776 = vmatmul.bf16.vlgmr.msrb.gmra.mxu2 %v4309_v25  ;;  %v3622_v25 = vld [vmem:[%s5583_s1 + $0x3b4] sm:$0xf0]  ;;  %v2554_v14 = vor.u32 %v3554_v38, %v2553_v31  ;;  %v2393_v35 = vld [vmem:[%s5583_s1 + $0x48] sm:$0xf]  ;;  %v2794_v39 = vor.u32 %v3614_v24, %v2793_v23 }
  0x89   :  { %1820 = vmatpush.bf16.msra.mxu2 %v2730_v47  ;;  %1789 = vmatmul.bf16.vlgmr.msrb.gmra.mxu3 %v4316_v32  ;;  %v2826_v32 = vor.u32 %v3622_v25, %v2825_v3  ;;  %v2521_v37 = vld [vmem:[%s5583_s1 + $0x148] sm:$0xf]  ;;  %v3546_v40 = vld [vmem:[%s5583_s1 + $0x154] sm:$0xf0]  ;;  %v2394_v45 = vor.u32 %v3514_v36, %v2393_v35 }
  0x8a   :  { %1833 = vmatpush.bf16.msra.mxu3 %v2858_v51  ;;  %v2649_v41 = vld [vmem:[%s5583_s1 + $0x248] sm:$0xf]  ;;  %v3578_v42 = vld [vmem:[%s5583_s1 + $0x254] sm:$0xf0]  ;;  %v2522_v46 = vor.u32 %v3546_v40, %v2521_v37 }
  0x8b   :  { %1795 = vmatpush.bf16.msra.mxu0 %v2458_v57  ;;  %v2777_v43 = vld [vmem:[%s5583_s1 + $0x348] sm:$0xf]  ;;  %v3610_v44 = vld [vmem:[%s5583_s1 + $0x354] sm:$0xf0]  ;;  %v2650_v47 = vor.u32 %v3578_v42, %v2649_v41 }
  0x8c   :  { %1808 = vmatpush.bf16.msra.mxu1 %v2586_v58  ;;  %v2377_v48 = vld [vmem:[%s5583_s1 + $0x28] sm:$0xf]  ;;  %v3510_v49 = vld [vmem:[%s5583_s1 + $0x34] sm:$0xf0]  ;;  %v2778_v51 = vor.u32 %v3610_v44, %v2777_v43 }
  0x8d   :  { %1821 = vmatpush.bf16.msra.mxu2 %v2714_v59  ;;  %v2505_v50 = vld [vmem:[%s5583_s1 + $0x128] sm:$0xf]  ;;  %v3542_v52 = vld [vmem:[%s5583_s1 + $0x134] sm:$0xf0]  ;;  %v2378_v57 = vor.u32 %v3510_v49, %v2377_v48 }
  0x8e   :  { %1834 = vmatpush.bf16.msra.mxu3 %v2842_v63  ;;  %v2633_v53 = vld [vmem:[%s5583_s1 + $0x228] sm:$0xf]  ;;  %v3574_v54 = vld [vmem:[%s5583_s1 + $0x234] sm:$0xf0]  ;;  %v2506_v60 = vor.u32 %v3542_v52, %v2505_v50 }
  0x8f   :  { %1796 = vmatpush.bf16.msra.mxu0 %v2442_v4  ;;  %v2761_v55 = vld [vmem:[%s5583_s1 + $0x328] sm:$0xf]  ;;  %v3606_v56 = vld [vmem:[%s5583_s1 + $0x334] sm:$0xf0]  ;;  %v2634_v61 = vor.u32 %v3574_v54, %v2633_v53 }
  0x90   :  { %1809 = vmatpush.bf16.msra.mxu1 %v2570_v5  ;;  %v2361_v58 = vld [vmem:[%s5583_s1 + $0x8] sm:$0xf]  ;;  %v3506_v59 = vld [vmem:[%s5583_s1 + $0x14] sm:$0xf0]  ;;  %v2762_v1 = vor.u32 %v3606_v56, %v2761_v55 }
  0x91   :  { %1822 = vmatpush.bf16.msra.mxu2 %v2698_v6  ;;  %v2489_v62 = vld [vmem:[%s5583_s1 + $0x108] sm:$0xf]  ;;  %v3538_v63 = vld [vmem:[%s5583_s1 + $0x114] sm:$0xf0]  ;;  %v2362_v7 = vor.u32 %v3506_v59, %v2361_v58 }
  0x92   :  { %1835 = vmatpush.bf16.msra.mxu3 %v2826_v32  ;;  %v2617_v0 = vld [vmem:[%s5583_s1 + $0x208] sm:$0xf]  ;;  %v3570_v2 = vld [vmem:[%s5583_s1 + $0x214] sm:$0xf0]  ;;  %v2490_v38 = vor.u32 %v3538_v63, %v2489_v62 }
  0x93   :  { %1797 = vmatpush.bf16.msra.mxu0 %v2426_v13  ;;  %v2745_v3 = vld [vmem:[%s5583_s1 + $0x308] sm:$0xf]  ;;  %v3602_v25 = vld [vmem:[%s5583_s1 + $0x314] sm:$0xf0]  ;;  %v2618_v9 = vor.u32 %v3570_v2, %v2617_v0 }
  0x94   :  { %1810 = vmatpush.bf16.msra.mxu1 %v2554_v14  ;;  %v2985_v4 = vld [vmem:[%s5583_s1 + $0x4e8] sm:$0xf]  ;;  %v3662_v5 = vld [vmem:[%s5583_s1 + $0x4f4] sm:$0xf0]  ;;  %v2746_v12 = vor.u32 %v3602_v25, %v2745_v3 }
  0x95   :  { %1823 = vmatpush.bf16.msra.mxu2 %v2682_v15  ;;  %v3113_v6 = vld [vmem:[%s5583_s1 + $0x5e8] sm:$0xf]  ;;  %v3694_v8 = vld [vmem:[%s5583_s1 + $0x5f4] sm:$0xf0]  ;;  %v2986_v13 = vor.u32 %v3662_v5, %v2985_v4 }
  0x96   :  { %1836 = vmatpush.bf16.msra.mxu3 %v2810_v19  ;;  %v3241_v31 = vld [vmem:[%s5583_s1 + $0x6e8] sm:$0xf]  ;;  %v3726_v32 = vld [vmem:[%s5583_s1 + $0x6f4] sm:$0xf0]  ;;  %v3114_v14 = vor.u32 %v3694_v8, %v3113_v6 }
  0x97   :  { %1798 = vmatpush.bf16.msra.mxu0 %v2410_v26  ;;  %v3369_v10 = vld [vmem:[%s5583_s1 + $0x7e8] sm:$0xf]  ;;  %v3758_v11 = vld [vmem:[%s5583_s1 + $0x7f4] sm:$0xf0]  ;;  %v3242_v15 = vor.u32 %v3726_v32, %v3241_v31  ;;  %v5002_v32 = vld [vmem:[%s5584_s2] sm:$0xf] }
  0x98   :  { %1811 = vmatpush.bf16.msra.mxu1 %v2538_v30  ;;  %v2969_v16 = vld [vmem:[%s5583_s1 + $0x4c8] sm:$0xf]  ;;  %v3658_v17 = vld [vmem:[%s5583_s1 + $0x4d4] sm:$0xf0]  ;;  %v3370_v19 = vor.u32 %v3758_v11, %v3369_v10  ;;  %s2342_s2 = sshll.u32 %s5587_s5, 4  ;;  %s2343_s2 = int_to_ptr.hbm [resolvable:$true] %s2342_s2 }
  0x99   :  { %1824 = vmatpush.bf16.msra.mxu2 %v2666_v33  ;;  %v3097_v18 = vld [vmem:[%s5583_s1 + $0x5c8] sm:$0xf]  ;;  %v3690_v20 = vld [vmem:[%s5583_s1 + $0x5d4] sm:$0xf0]  ;;  %v2970_v26 = vor.u32 %v3658_v17, %v2969_v16  ;;  %v280_v16 = vperm.slane %v5002_v32, 0 }
  0x9a   :  { %1837 = vmatpush.bf16.msra.mxu3 %v2794_v39  ;;  %v3225_v21 = vld [vmem:[%s5583_s1 + $0x6c8] sm:$0xf]  ;;  %v3722_v22 = vld [vmem:[%s5583_s1 + $0x6d4] sm:$0xf0]  ;;  %v3098_v30 = vor.u32 %v3690_v20, %v3097_v18 }
  0x9b   :  { %1799 = vmatpush.bf16.msra.mxu0 %v2394_v45  ;;  %v3353_v23 = vld [vmem:[%s5583_s1 + $0x7c8] sm:$0xf]  ;;  %v3754_v24 = vld [vmem:[%s5583_s1 + $0x7d4] sm:$0xf0]  ;;  %v3226_v33 = vor.u32 %v3722_v22, %v3225_v21 }
  0x9c   :  { %1812 = vmatpush.bf16.msra.mxu1 %v2522_v46  ;;  %v2953_v35 = vld [vmem:[%s5583_s1 + $0x4a8] sm:$0xf]  ;;  %v3654_v36 = vld [vmem:[%s5583_s1 + $0x4b4] sm:$0xf0]  ;;  %v3354_v39 = vor.u32 %v3754_v24, %v3353_v23 }
  0x9d   :  { %1825 = vmatpush.bf16.msra.mxu2 %v2650_v47  ;;  %v3081_v37 = vld [vmem:[%s5583_s1 + $0x5a8] sm:$0xf]  ;;  %v3686_v40 = vld [vmem:[%s5583_s1 + $0x5b4] sm:$0xf0]  ;;  %v2954_v45 = vor.u32 %v3654_v36, %v2953_v35 }
  0x9e   :  { %1838 = vmatpush.bf16.msra.mxu3 %v2778_v51  ;;  %v3209_v41 = vld [vmem:[%s5583_s1 + $0x6a8] sm:$0xf]  ;;  %v3718_v42 = vld [vmem:[%s5583_s1 + $0x6b4] sm:$0xf0]  ;;  %v3082_v46 = vor.u32 %v3686_v40, %v3081_v37 }
  0x9f   :  { %1800 = vmatpush.bf16.msra.mxu0 %v2378_v57  ;;  %v3337_v43 = vld [vmem:[%s5583_s1 + $0x7a8] sm:$0xf]  ;;  %v3750_v44 = vld [vmem:[%s5583_s1 + $0x7b4] sm:$0xf0] }
  0xa0   :  { %1813 = vmatpush.bf16.msra.mxu1 %v2506_v60  ;;  %v2937_v47 = vld [vmem:[%s5583_s1 + $0x488] sm:$0xf]  ;;  %v3650_v48 = vld [vmem:[%s5583_s1 + $0x494] sm:$0xf0] }
  0xa1   :  { %1826 = vmatpush.bf16.msra.mxu2 %v2634_v61  ;;  %v3193_v49 = vld [vmem:[%s5583_s1 + $0x688] sm:$0xf]  ;;  %v3714_v50 = vld [vmem:[%s5583_s1 + $0x694] sm:$0xf0]  ;;  %v2938_v53 = vor.u32 %v3650_v48, %v2937_v47  ;;  %v3564_v47 = vld [vmem:[%s5583_s1 + $0x1ec] sm:$0xf] }
  0xa2   :  { %1839 = vmatpush.bf16.msra.mxu3 %v2762_v1  ;;  %v3321_v51 = vld [vmem:[%s5583_s1 + $0x788] sm:$0xf]  ;;  %v3746_v52 = vld [vmem:[%s5583_s1 + $0x794] sm:$0xf0]  ;;  %v3194_v55 = vor.u32 %v3714_v50, %v3193_v49  ;;  %v2731_v49 = vld [vmem:[%s5583_s1 + $0x2f8] sm:$0xf0] }
  0xa3   :  { %1801 = vmatpush.bf16.msra.mxu0 %v2362_v7  ;;  %v2921_v56 = vld [vmem:[%s5583_s1 + $0x468] sm:$0xf]  ;;  %v3646_v57 = vld [vmem:[%s5583_s1 + $0x474] sm:$0xf0]  ;;  %v3322_v59 = vor.u32 %v3746_v52, %v3321_v51  ;;  %v3628_v52 = vld [vmem:[%s5583_s1 + $0x3ec] sm:$0xf] }
  0xa4   :  { %1814 = vmatpush.bf16.msra.mxu1 %v2490_v38  ;;  %v3049_v58 = vld [vmem:[%s5583_s1 + $0x568] sm:$0xf]  ;;  %v3678_v60 = vld [vmem:[%s5583_s1 + $0x574] sm:$0xf0]  ;;  %v2922_v1 = vor.u32 %v3646_v57, %v2921_v56 }
  0xa5   :  { %1827 = vmatpush.bf16.msra.mxu2 %v2618_v9  ;;  %v3177_v61 = vld [vmem:[%s5583_s1 + $0x668] sm:$0xf]  ;;  %v3710_v62 = vld [vmem:[%s5583_s1 + $0x674] sm:$0xf0]  ;;  %v3050_v3 = vor.u32 %v3678_v60, %v3049_v58 }
  0xa6   :  { %1840 = vmatpush.bf16.msra.mxu3 %v2746_v12  ;;  %1802 = vmatmul.bf16.vlgmr.msra.gmra.mxu0 %v4182_v28  ;;  %v3065_v28 = vld [vmem:[%s5583_s1 + $0x588] sm:$0xf]  ;;  %v3742_v0 = vld [vmem:[%s5583_s1 + $0x774] sm:$0xf0]  ;;  %v3178_v25 = vor.u32 %v3710_v62, %v3177_v61  ;;  %v3528_v61 = vld [vmem:[%s5583_s1 + $0xcc] sm:$0xf] }
  0xa7   :  { %1846 = vmatpush.bf16.msrb.mxu0 %v2986_v13  ;;  %1815 = vmatmul.bf16.vlgmr.msra.gmra.mxu1 %v4192_v34  ;;  %v3682_v34 = vld [vmem:[%s5583_s1 + $0x594] sm:$0xf0]  ;;  %v3305_v63 = vld [vmem:[%s5583_s1 + $0x768] sm:$0xf]  ;;  %v2459_v62 = vld [vmem:[%s5583_s1 + $0xd8] sm:$0xf0] }
  0xa8   :  { %1859 = vmatpush.bf16.msrb.mxu1 %v3114_v14  ;;  %1828 = vmatmul.bf16.vlgmr.msra.gmra.mxu2 %v4180_v27  ;;  %v3210_v27 = vor.u32 %v3718_v42, %v3209_v41  ;;  %v3066_v54 = vor.u32 %v3682_v34, %v3065_v28  ;;  %v2905_v2 = vld [vmem:[%s5583_s1 + $0x448] sm:$0xf]  ;;  %v3642_v4 = vld [vmem:[%s5583_s1 + $0x454] sm:$0xf0]  ;;  %v3306_v7 = vor.u32 %v3742_v0, %v3305_v63  ;;  %v3596_v34 = vld [vmem:[%s5583_s1 + $0x2ec] sm:$0xf] }
  0xa9   :  { %1872 = vmatpush.bf16.msrb.mxu2 %v3242_v15  ;;  %1841 = vmatmul.bf16.vlgmr.msra.gmra.mxu3 %v4184_v29  ;;  %v3338_v29 = vor.u32 %v3750_v44, %v3337_v43  ;;  %v3033_v5 = vld [vmem:[%s5583_s1 + $0x548] sm:$0xf]  ;;  %v3674_v6 = vld [vmem:[%s5583_s1 + $0x554] sm:$0xf0]  ;;  %v2906_v10 = vor.u32 %v3642_v4, %v2905_v2  ;;  %v2734_v60 = vor.u32 %v3596_v34, %v2731_v49  ;;  %v3560_v63 = vld [vmem:[%s5583_s1 + $0x1cc] sm:$0xf] }
  0xaa   :  { %1885 = vmatpush.bf16.msrb.mxu3 %v3370_v19  ;;  %v3161_v8 = vld [vmem:[%s5583_s1 + $0x648] sm:$0xf]  ;;  %v3706_v31 = vld [vmem:[%s5583_s1 + $0x654] sm:$0xf0]  ;;  %v3034_v12 = vor.u32 %v3674_v6, %v3033_v5  ;;  %v3592_v2 = vld [vmem:[%s5583_s1 + $0x2cc] sm:$0xf] }
  0xab   :  { %1847 = vmatpush.bf16.msrb.mxu0 %v2970_v26  ;;  %v3289_v38 = vld [vmem:[%s5583_s1 + $0x748] sm:$0xf]  ;;  %v3738_v9 = vld [vmem:[%s5583_s1 + $0x754] sm:$0xf0]  ;;  %v3162_v13 = vor.u32 %v3706_v31, %v3161_v8  ;;  %v3624_v5 = vld [vmem:[%s5583_s1 + $0x3cc] sm:$0xf]  ;;  %v2462_v8 = vor.u32 %v3528_v61, %v2459_v62 }
  0xac   :  { %1860 = vmatpush.bf16.msrb.mxu1 %v3098_v30  ;;  %v2889_v11 = vld [vmem:[%s5583_s1 + $0x428] sm:$0xf]  ;;  %v3638_v14 = vld [vmem:[%s5583_s1 + $0x434] sm:$0xf0]  ;;  %v3290_v17 = vor.u32 %v3738_v9, %v3289_v38  ;;  %v2843_v6 = vld [vmem:[%s5583_s1 + $0x3d8] sm:$0xf0] }
  0xad   :  { %1873 = vmatpush.bf16.msrb.mxu2 %v3226_v33  ;;  %v3017_v15 = vld [vmem:[%s5583_s1 + $0x528] sm:$0xf]  ;;  %v3670_v18 = vld [vmem:[%s5583_s1 + $0x534] sm:$0xf0]  ;;  %v2890_v23 = vor.u32 %v3638_v14, %v2889_v11  ;;  %v3524_v9 = vld [vmem:[%s5583_s1 + $0xac] sm:$0xf] }
  0xae   :  { %1886 = vmatpush.bf16.msrb.mxu3 %v3354_v39  ;;  %v3145_v19 = vld [vmem:[%s5583_s1 + $0x628] sm:$0xf]  ;;  %v3702_v20 = vld [vmem:[%s5583_s1 + $0x634] sm:$0xf0]  ;;  %v3018_v33 = vor.u32 %v3670_v18, %v3017_v15  ;;  %v3556_v11 = vld [vmem:[%s5583_s1 + $0x1ac] sm:$0xf] }
  0xaf   :  { %1848 = vmatpush.bf16.msrb.mxu0 %v2954_v45  ;;  %v3273_v21 = vld [vmem:[%s5583_s1 + $0x728] sm:$0xf]  ;;  %v3734_v22 = vld [vmem:[%s5583_s1 + $0x734] sm:$0xf0]  ;;  %v3146_v35 = vor.u32 %v3702_v20, %v3145_v19  ;;  %v2571_v14 = vld [vmem:[%s5583_s1 + $0x1b8] sm:$0xf0] }
  0xb0   :  { %1861 = vmatpush.bf16.msrb.mxu1 %v3082_v46  ;;  %v2873_v24 = vld [vmem:[%s5583_s1 + $0x408] sm:$0xf]  ;;  %v3634_v26 = vld [vmem:[%s5583_s1 + $0x414] sm:$0xf0]  ;;  %v3274_v42 = vor.u32 %v3734_v22, %v3273_v21  ;;  %v3532_v46 = vld [vmem:[%s5583_s1 + $0xec] sm:$0xf] }
  0xb1   :  { %1874 = vmatpush.bf16.msrb.mxu2 %v3210_v27  ;;  %v3001_v36 = vld [vmem:[%s5583_s1 + $0x508] sm:$0xf]  ;;  %v3666_v37 = vld [vmem:[%s5583_s1 + $0x514] sm:$0xf0]  ;;  %v2475_v27 = vld [vmem:[%s5583_s1 + $0xf8] sm:$0xf0]  ;;  %v2874_v28 = vor.u32 %v3634_v26, %v2873_v24  ;;  %v2574_v26 = vor.u32 %v3556_v11, %v2571_v14 }
  0xb2   :  { %1887 = vmatpush.bf16.msrb.mxu3 %v3338_v29  ;;  %v3129_v39 = vld [vmem:[%s5583_s1 + $0x608] sm:$0xf]  ;;  %v3698_v43 = vld [vmem:[%s5583_s1 + $0x614] sm:$0xf0]  ;;  %v2603_v29 = vld [vmem:[%s5583_s1 + $0x1f8] sm:$0xf0]  ;;  %v3002_v50 = vor.u32 %v3666_v37, %v3001_v36  ;;  %v2478_v56 = vor.u32 %v3532_v46, %v2475_v27 }
  0xb3   :  { %1849 = vmatpush.bf16.msrb.mxu0 %v2938_v53  ;;  %v3257_v44 = vld [vmem:[%s5583_s1 + $0x708] sm:$0xf]  ;;  %v3730_v45 = vld [vmem:[%s5583_s1 + $0x714] sm:$0xf0]  ;;  %v3130_v51 = vor.u32 %v3698_v43, %v3129_v39  ;;  %v2859_v53 = vld [vmem:[%s5583_s1 + $0x3f8] sm:$0xf0] }
  0xb4   :  { %1862 = vmatpush.bf16.msrb.mxu1 %v3066_v54  ;;  %v1608_v41 = vpop.f32.mrf.mxu1  ;;  %v2862_v0 = vor.u32 %v3628_v52, %v2859_v53  ;;  %v3588_v15 = vld [vmem:[%s5583_s1 + $0x2ac] sm:$0xf]  ;;  %v5131_v18 = vld [vmem:[#allocation1 + $0x3f] sm:$0xff] }
  0xb5   :  { %1875 = vmatpush.bf16.msrb.mxu2 %v3194_v55  ;;  %v1595_v30 = vpop.f32.mrf.mxu0  ;;  %v3258_v55 = vor.u32 %v3730_v45, %v3257_v44  ;;  %v3620_v19 = vld [vmem:[%s5583_s1 + $0x3ac] sm:$0xf]  ;;  %v2827_v20 = vld [vmem:[%s5583_s1 + $0x3b8] sm:$0xf0] }
  0xb6   :  { %1888 = vmatpush.bf16.msrb.mxu3 %v3322_v59  ;;  %v1596_v40 = vadd.f32 %v1595_v30, %v280_v16  ;;  %v2606_v59 = vor.u32 %v3564_v47, %v2603_v29  ;;  %v2699_v16 = vld [vmem:[%s5583_s1 + $0x2b8] sm:$0xf0]  ;;  %v5140_v22 = vld [vmem:[#allocation1 + $0x2d] sm:$0xff]  ;;  %v2830_v37 = vor.u32 %v3620_v19, %v2827_v20 }
  0xb7   :  { %1850 = vmatpush.bf16.msrb.mxu0 %v2922_v1  ;;  %v2587_v1 = vld [vmem:[%s5583_s1 + $0x1d8] sm:$0xf0]  ;;  %v2702_v30 = vor.u32 %v3588_v15, %v2699_v16  ;;  %v3552_v36 = vld [vmem:[%s5583_s1 + $0x18c] sm:$0xf] }
  0xb8   :  { %1863 = vmatpush.bf16.msrb.mxu1 %v3050_v3  ;;  %v1609_v48 = vadd.f32 %v1608_v41, %v1596_v40  ;;  %v2715_v3 = vld [vmem:[%s5583_s1 + $0x2d8] sm:$0xf0]  ;;  %v2590_v31 = vor.u32 %v3560_v63, %v2587_v1  ;;  %v3584_v40 = vld [vmem:[%s5583_s1 + $0x28c] sm:$0xf] }
  0xb9   :  { %1876 = vmatpush.bf16.msrb.mxu2 %v3178_v25  ;;  %v2718_v38 = vor.u32 %v3592_v2, %v2715_v3  ;;  %v2555_v39 = vld [vmem:[%s5583_s1 + $0x198] sm:$0xf0]  ;;  %v3516_v47 = vld [vmem:[%s5583_s1 + $0x6c] sm:$0xf] }
  0xba   :  { %1889 = vmatpush.bf16.msrb.mxu3 %v3306_v7  ;;  %v1621_v54 = vpop.f32.mrf.mxu2  ;;  %v2683_v41 = vld [vmem:[%s5583_s1 + $0x298] sm:$0xf0]  ;;  %v2558_v46 = vor.u32 %v3552_v36, %v2555_v39  ;;  %v3612_v53 = vld [vmem:[%s5583_s1 + $0x36c] sm:$0xf] }
  0xbb   :  { %1851 = vmatpush.bf16.msrb.mxu0 %v2906_v10  ;;  %v1622_v57 = vadd.f32 %v1621_v54, %v1609_v48  ;;  %v2443_v10 = vld [vmem:[%s5583_s1 + $0xb8] sm:$0xf0]  ;;  %v2686_v27 = vor.u32 %v3584_v40, %v2683_v41  ;;  %v3544_v61 = vld [vmem:[%s5583_s1 + $0x14c] sm:$0xf] }
  0xbc   :  { %1864 = vmatpush.bf16.msrb.mxu1 %v3034_v12  ;;  %v1634_v58 = vpop.f32.mrf.mxu3  ;;  %v1610_v7 = vpop.f32.mrf.mxu1  ;;  %v5116_v12 = vld [vmem:[#allocation1 + $0x36] sm:$0xff]  ;;  %v3576_v1 = vld [vmem:[%s5583_s1 + $0x24c] sm:$0xf] }
  0xbd   :  { %1877 = vmatpush.bf16.msrb.mxu2 %v3162_v13  ;;  %v1635_v25 = vadd.f32 %v1634_v58, %v1622_v57  ;;  %v1597_v4 = vpop.f32.mrf.mxu0  ;;  %v2846_v13 = vor.u32 %v3624_v5, %v2843_v6  ;;  %v2811_v43 = vld [vmem:[%s5583_s1 + $0x398] sm:$0xf0]  ;;  %v3540_v11 = vld [vmem:[%s5583_s1 + $0x12c] sm:$0xf] }
  0xbe   :  { %1890 = vmatpush.bf16.msrb.mxu3 %v3290_v17  ;;  %v5128_v17 = vld [vmem:[#allocation1 + $0x24] sm:$0xff]  ;;  %v2411_v48 = vld [vmem:[%s5583_s1 + $0x78] sm:$0xf0]  ;;  %v3608_v4 = vld [vmem:[%s5583_s1 + $0x34c] sm:$0xf] }
  0xbf   :  { %1852 = vmatpush.bf16.msrb.mxu0 %v2890_v23  ;;  %v2446_v23 = vor.u32 %v3524_v9, %v2443_v10  ;;  %v2667_v52 = vld [vmem:[%s5583_s1 + $0x278] sm:$0xf0]  ;;  %v3508_v9 = vld [vmem:[%s5583_s1 + $0x2c] sm:$0xf] }
  0xc0   :  { %1865 = vmatpush.bf16.msrb.mxu1 %v3018_v33  ;;  %v3520_v33 = vld [vmem:[%s5583_s1 + $0x8c] sm:$0xf]  ;;  %v2795_v54 = vld [vmem:[%s5583_s1 + $0x378] sm:$0xf0] }
  0xc1   :  { %1878 = vmatpush.bf16.msrb.mxu2 %v3146_v35  ;;  %v2427_v35 = vld [vmem:[%s5583_s1 + $0x98] sm:$0xf0]  ;;  %v2798_v63 = vor.u32 %v3612_v53, %v2795_v54  ;;  %v3572_v16 = vld [vmem:[%s5583_s1 + $0x22c] sm:$0xf] }
  0xc2   :  { %1891 = vmatpush.bf16.msrb.mxu3 %v3274_v42  ;;  %v1623_v21 = vpop.f32.mrf.mxu2  ;;  %v3616_v42 = vld [vmem:[%s5583_s1 + $0x38c] sm:$0xf]  ;;  %v2430_v44 = vor.u32 %v3520_v33, %v2427_v35  ;;  %v2651_v2 = vld [vmem:[%s5583_s1 + $0x258] sm:$0xf0] }
  0xc3   :  { %1853 = vmatpush.bf16.msrb.mxu0 %v2874_v28  ;;  %v3548_v28 = vld [vmem:[%s5583_s1 + $0x16c] sm:$0xf]  ;;  %v2814_v49 = vor.u32 %v3616_v42, %v2811_v43  ;;  %v2779_v5 = vld [vmem:[%s5583_s1 + $0x358] sm:$0xf0] }
  0xc4   :  { %1866 = vmatpush.bf16.msrb.mxu1 %v3002_v50  ;;  %v1636_v24 = vpop.f32.mrf.mxu3  ;;  %v1660_v34 = vpop.f32.mrf.mxu1  ;;  %v2539_v50 = vld [vmem:[%s5583_s1 + $0x178] sm:$0xf0]  ;;  %v2782_v14 = vor.u32 %v3608_v4, %v2779_v5  ;;  %v3604_v20 = vld [vmem:[%s5583_s1 + $0x32c] sm:$0xf] }
  0xc5   :  { %1879 = vmatpush.bf16.msrb.mxu2 %v3130_v51  ;;  %v3580_v51 = vld [vmem:[%s5583_s1 + $0x26c] sm:$0xf]  ;;  %v2542_v57 = vor.u32 %v3548_v28, %v2539_v50  ;;  %v2379_v10 = vld [vmem:[%s5583_s1 + $0x38] sm:$0xf0] }
  0xc6   :  { %1892 = vmatpush.bf16.msrb.mxu3 %v3258_v55  ;;  %1854 = vmatmul.bf16.vlgmr.msrb.gmra.mxu0 %v5128_v17  ;;  %v1647_v45 = vpop.f32.mrf.mxu0  ;;  %v2670_v58 = vor.u32 %v3580_v51, %v2667_v52  ;;  %v2507_v15 = vld [vmem:[%s5583_s1 + $0x138] sm:$0xf0]  ;;  %v3504_v24 = vld [vmem:[%s5583_s1 + $0xc] sm:$0xf] }
  0xc7   :  { %1898 = vmatpush.bf16.msra.mxu0 %v2478_v56  ;;  %1867 = vmatmul.bf16.vlgmr.msrb.gmra.mxu1 %v5140_v22  ;;  %v1648_v29 = vadd.f32 %v1647_v45, %v1635_v25  ;;  %v2414_v56 = vor.u32 %v3516_v47, %v2411_v48  ;;  %v2635_v19 = vld [vmem:[%s5583_s1 + $0x238] sm:$0xf0]  ;;  %v3536_v35 = vld [vmem:[%s5583_s1 + $0x10c] sm:$0xf] }
  0xc8   :  { %1911 = vmatpush.bf16.msra.mxu1 %v2606_v59  ;;  %1880 = vmatmul.bf16.vlgmr.msrb.gmra.mxu2 %v5116_v12  ;;  %v3512_v59 = vld [vmem:[%s5583_s1 + $0x4c] sm:$0xf]  ;;  %v2763_v21 = vld [vmem:[%s5583_s1 + $0x338] sm:$0xf0]  ;;  %v2638_v33 = vor.u32 %v3572_v16, %v2635_v19 }
  0xc9   :  { %1924 = vmatpush.bf16.msra.mxu2 %v2734_v60  ;;  %1893 = vmatmul.bf16.vlgmr.msrb.gmra.mxu3 %v5131_v18  ;;  %v1661_v55 = vadd.f32 %v1660_v34, %v1648_v29  ;;  %v2395_v60 = vld [vmem:[%s5583_s1 + $0x58] sm:$0xf0]  ;;  %v2766_v40 = vor.u32 %v3604_v20, %v2763_v21  ;;  %v3600_v42 = vld [vmem:[%s5583_s1 + $0x30c] sm:$0xf] }
  0xca   :  { %1937 = vmatpush.bf16.msra.mxu3 %v2862_v0  ;;  %v2523_v0 = vld [vmem:[%s5583_s1 + $0x158] sm:$0xf0]  ;;  %v2398_v6 = vor.u32 %v3512_v59, %v2395_v60  ;;  %v3660_v45 = vld [vmem:[%s5583_s1 + $0x4ec] sm:$0xf] }
  0xcb   :  { %1899 = vmatpush.bf16.msra.mxu0 %v2462_v8  ;;  %v1673_v62 = vpop.f32.mrf.mxu2  ;;  %v2491_v36 = vld [vmem:[%s5583_s1 + $0x118] sm:$0xf0]  ;;  %v3724_v28 = vld [vmem:[%s5583_s1 + $0x6ec] sm:$0xf] }
  0xcc   :  { %1912 = vmatpush.bf16.msra.mxu1 %v2590_v31  ;;  %v1674_v3 = vadd.f32 %v1673_v62, %v1661_v55  ;;  %v2526_v31 = vor.u32 %v3544_v61, %v2523_v0  ;;  %v2619_v41 = vld [vmem:[%s5583_s1 + $0x218] sm:$0xf0]  ;;  %v2494_v34 = vor.u32 %v3536_v35, %v2491_v36  ;;  %v3756_v50 = vld [vmem:[%s5583_s1 + $0x7ec] sm:$0xf] }
  0xcd   :  { %1925 = vmatpush.bf16.msra.mxu2 %v2718_v38  ;;  %v2654_v38 = vor.u32 %v3576_v1, %v2651_v2  ;;  %v2747_v43 = vld [vmem:[%s5583_s1 + $0x318] sm:$0xf0]  ;;  %v3720_v61 = vld [vmem:[%s5583_s1 + $0x6cc] sm:$0xf] }
  0xce   :  { %1938 = vmatpush.bf16.msra.mxu3 %v2846_v13  ;;  %v1686_v25 = vpop.f32.mrf.mxu3  ;;  %v1649_v8 = vpop.f32.mrf.mxu0  ;;  %v3115_v48 = vld [vmem:[%s5583_s1 + $0x5f8] sm:$0xf0]  ;;  %v2750_v52 = vor.u32 %v3600_v42, %v2747_v43  ;;  %v3684_v5 = vld [vmem:[%s5583_s1 + $0x5ac] sm:$0xf] }
  0xcf   :  { %1900 = vmatpush.bf16.msra.mxu0 %v2446_v23  ;;  %v5215_v7 = vadd.f32 %v1686_v25, %v1674_v3  ;;  %v1662_v13 = vpop.f32.mrf.mxu1  ;;  %v2382_v23 = vor.u32 %v3508_v9, %v2379_v10  ;;  %v3243_v29 = vld [vmem:[%s5583_s1 + $0x6f8] sm:$0xf0]  ;;  %v3652_v25 = vld [vmem:[%s5583_s1 + $0x4ac] sm:$0xf]  ;;  %v3801_v8 = vld [vmem:[#allocation1 + $0x12] sm:$0xff] }
  0xd0   :  { %1913 = vmatpush.bf16.msra.mxu1 %v2574_v26  ;;  %v2363_v26 = vld [vmem:[%s5583_s1 + $0x18] sm:$0xf0]  ;;  %v3246_v55 = vor.u32 %v3724_v28, %v3243_v29  ;;  %v3748_v10 = vld [vmem:[%s5583_s1 + $0x7ac] sm:$0xf]  ;;  %v3802_v13 = vld [vmem:[#allocation1] sm:$0xff] }
  0xd1   :  { %1926 = vmatpush.bf16.msra.mxu2 %v2702_v30  ;;  %v2510_v30 = vor.u32 %v3540_v11, %v2507_v15  ;;  %v2366_v47 = vor.u32 %v3504_v24, %v2363_v26  ;;  %v3371_v51 = vld [vmem:[%s5583_s1 + $0x7f8] sm:$0xf0]  ;;  %v3804_v16 = vld [vmem:[#allocation1 + $0x9] sm:$0xff] }
  0xd2   :  { %1939 = vmatpush.bf16.msra.mxu3 %v2830_v37  ;;  %v3568_v37 = vld [vmem:[%s5583_s1 + $0x20c] sm:$0xf]  ;;  %v3374_v59 = vor.u32 %v3756_v50, %v3371_v51  ;;  %v3099_v60 = vld [vmem:[%s5583_s1 + $0x5d8] sm:$0xf0] }
  0xd3   :  { %1901 = vmatpush.bf16.msra.mxu0 %v2430_v44  ;;  %v1675_v39 = vpop.f32.mrf.mxu2  ;;  %v3227_v62 = vld [vmem:[%s5583_s1 + $0x6d8] sm:$0xf0]  ;;  %v3648_v21 = vld [vmem:[%s5583_s1 + $0x48c] sm:$0xf] }
  0xd4   :  { %1914 = vmatpush.bf16.msra.mxu1 %v2558_v46  ;;  %v2987_v46 = vld [vmem:[%s5583_s1 + $0x4f8] sm:$0xf0]  ;;  %v3230_v3 = vor.u32 %v3720_v61, %v3227_v62  ;;  %v3680_v24 = vld [vmem:[%s5583_s1 + $0x58c] sm:$0xf] }
  0xd5   :  { %1927 = vmatpush.bf16.msra.mxu2 %v2686_v27  ;;  %v3692_v27 = vld [vmem:[%s5583_s1 + $0x5ec] sm:$0xf]  ;;  %v2990_v53 = vor.u32 %v3660_v45, %v2987_v46  ;;  %v3355_v0 = vld [vmem:[%s5583_s1 + $0x7d8] sm:$0xf0] }
  0xd6   :  { %1940 = vmatpush.bf16.msra.mxu3 %v2814_v49  ;;  %v1688_v44 = vpop.f32.mrf.mxu3  ;;  %v2622_v49 = vor.u32 %v3568_v37, %v2619_v41  ;;  %v3118_v54 = vor.u32 %v3692_v27, %v3115_v48  ;;  %v2955_v4 = vld [vmem:[%s5583_s1 + $0x4b8] sm:$0xf0]  ;;  %v3744_v36 = vld [vmem:[%s5583_s1 + $0x78c] sm:$0xf] }
  0xd7   :  { %1902 = vmatpush.bf16.msra.mxu0 %v2414_v56  ;;  %v3656_v56 = vld [vmem:[%s5583_s1 + $0x4cc] sm:$0xf]  ;;  %v3211_v9 = vld [vmem:[%s5583_s1 + $0x6b8] sm:$0xf0]  ;;  %v2958_v15 = vor.u32 %v3652_v25, %v2955_v4 }
  0xd8   :  { %1915 = vmatpush.bf16.msra.mxu1 %v2542_v57  ;;  %v2971_v57 = vld [vmem:[%s5583_s1 + $0x4d8] sm:$0xf0]  ;;  %v3644_v43 = vld [vmem:[%s5583_s1 + $0x46c] sm:$0xf] }
  0xd9   :  { %1928 = vmatpush.bf16.msra.mxu2 %v2670_v58  ;;  %v3688_v58 = vld [vmem:[%s5583_s1 + $0x5cc] sm:$0xf]  ;;  %v2974_v1 = vor.u32 %v3656_v56, %v2971_v57  ;;  %v3339_v11 = vld [vmem:[%s5583_s1 + $0x7b8] sm:$0xf0] }
  0xda   :  { %1941 = vmatpush.bf16.msra.mxu3 %v2798_v63  ;;  %v3752_v63 = vld [vmem:[%s5583_s1 + $0x7cc] sm:$0xf]  ;;  %v3102_v2 = vor.u32 %v3688_v58, %v3099_v60  ;;  %v3342_v26 = vor.u32 %v3748_v10, %v3339_v11  ;;  %v3195_v35 = vld [vmem:[%s5583_s1 + $0x698] sm:$0xf0]  ;;  %v281_v11 = vperm.slane %v5002_v32, 1 }
  0xdb   :  { %1903 = vmatpush.bf16.msra.mxu0 %v2398_v6  ;;  %v3358_v6 = vor.u32 %v3752_v63, %v3355_v0  ;;  %v3323_v37 = vld [vmem:[%s5583_s1 + $0x798] sm:$0xf0]  ;;  %v3676_v45 = vld [vmem:[%s5583_s1 + $0x56c] sm:$0xf] }
  0xdc   :  { %1916 = vmatpush.bf16.msra.mxu1 %v2526_v31  ;;  %v3083_v31 = vld [vmem:[%s5583_s1 + $0x5b8] sm:$0xf0]  ;;  %v3326_v27 = vor.u32 %v3744_v36, %v3323_v37  ;;  %v3708_v48 = vld [vmem:[%s5583_s1 + $0x66c] sm:$0xf] }
  0xdd   :  { %1929 = vmatpush.bf16.msra.mxu2 %v2654_v38  ;;  %v3716_v38 = vld [vmem:[%s5583_s1 + $0x6ac] sm:$0xf]  ;;  %v3086_v19 = vor.u32 %v3684_v5, %v3083_v31  ;;  %v2923_v44 = vld [vmem:[%s5583_s1 + $0x478] sm:$0xf0] }
  0xde   :  { %1942 = vmatpush.bf16.msra.mxu3 %v2782_v14  ;;  %v3803_v14 = vld [vmem:[#allocation1 + $0x1b] sm:$0xff]  ;;  %v3214_v20 = vor.u32 %v3716_v38, %v3211_v9  ;;  %v3740_v29 = vld [vmem:[%s5583_s1 + $0x76c] sm:$0xf] }
  0xdf   :  { %1904 = vmatpush.bf16.msra.mxu0 %v2382_v23  ;;  %v2939_v23 = vld [vmem:[%s5583_s1 + $0x498] sm:$0xf0]  ;;  %v3704_v58 = vld [vmem:[%s5583_s1 + $0x64c] sm:$0xf] }
  0xe0   :  { %1917 = vmatpush.bf16.msra.mxu1 %v2510_v30  ;;  %v3067_v30 = vld [vmem:[%s5583_s1 + $0x598] sm:$0xf0]  ;;  %v2942_v39 = vor.u32 %v3648_v21, %v2939_v23  ;;  %v3736_v61 = vld [vmem:[%s5583_s1 + $0x74c] sm:$0xf] }
  0xe1   :  { %1930 = vmatpush.bf16.msra.mxu2 %v2638_v33  ;;  %v3712_v33 = vld [vmem:[%s5583_s1 + $0x68c] sm:$0xf]  ;;  %v3070_v41 = vor.u32 %v3680_v24, %v3067_v30  ;;  %v3179_v28 = vld [vmem:[%s5583_s1 + $0x678] sm:$0xf0] }
  0xe2   :  { %1943 = vmatpush.bf16.msra.mxu3 %v2766_v40  ;;  %v3198_v42 = vor.u32 %v3712_v33, %v3195_v35  ;;  %v3182_v51 = vor.u32 %v3708_v48, %v3179_v28  ;;  %v3035_v57 = vld [vmem:[%s5583_s1 + $0x558] sm:$0xf0]  ;;  %v3668_v4 = vld [vmem:[%s5583_s1 + $0x52c] sm:$0xf] }
  0xe3   :  { %1905 = vmatpush.bf16.msra.mxu0 %v2366_v47  ;;  %v5361_v40 = vpop.f32.mrf.mxu0  ;;  %v3051_v47 = vld [vmem:[%s5583_s1 + $0x578] sm:$0xf0]  ;;  %v3700_v31 = vld [vmem:[%s5583_s1 + $0x62c] sm:$0xf] }
  0xe4   :  { %1918 = vmatpush.bf16.msra.mxu1 %v2494_v34  ;;  %v5372_v46 = vpop.f32.mrf.mxu1  ;;  %v3307_v34 = vld [vmem:[%s5583_s1 + $0x778] sm:$0xf0]  ;;  %v3054_v50 = vor.u32 %v3676_v45, %v3051_v47  ;;  %v3732_v9 = vld [vmem:[%s5583_s1 + $0x72c] sm:$0xf]  ;;  %v1700_v37 = vadd.f32 %v5361_v40, %v281_v11  ;;  %v3765_v40 = vld [vmem:[%s5585_s3 + $0x30] sm:$0xff] }
  0xe5   :  { %1931 = vmatpush.bf16.msra.mxu2 %v2622_v49  ;;  %v2926_v49 = vor.u32 %v3644_v43, %v2923_v44  ;;  %v3310_v56 = vor.u32 %v3740_v29, %v3307_v34  ;;  %v3291_v62 = vld [vmem:[%s5583_s1 + $0x758] sm:$0xf0]  ;;  %v3728_v35 = vld [vmem:[%s5583_s1 + $0x70c] sm:$0xf]  ;;  %v3777_v11 = vld [vmem:[%s5585_s3 + $0x90] sm:$0xff] }
  0xe6   :  { %1944 = vmatpush.bf16.msra.mxu3 %v2750_v52  ;;  %1906 = vmatmul.bf16.vlgmr.msra.gmra.mxu0 %v3802_v13  ;;  %v3640_v52 = vld [vmem:[%s5583_s1 + $0x44c] sm:$0xf]  ;;  %v2891_v25 = vld [vmem:[%s5583_s1 + $0x438] sm:$0xf0] }
  0xe7   :  { %1950 = vmatpush.bf16.msrb.mxu0 %v2990_v53  ;;  %1919 = vmatmul.bf16.vlgmr.msra.gmra.mxu1 %v3804_v16  ;;  %v2907_v53 = vld [vmem:[%s5583_s1 + $0x458] sm:$0xf0]  ;;  %v3632_v16 = vld [vmem:[%s5583_s1 + $0x40c] sm:$0xf] }
  0xe8   :  { %1963 = vmatpush.bf16.msrb.mxu1 %v3118_v54  ;;  %1932 = vmatmul.bf16.vlgmr.msra.gmra.mxu2 %v3801_v8  ;;  %v3672_v54 = vld [vmem:[%s5583_s1 + $0x54c] sm:$0xf]  ;;  %v2910_v63 = vor.u32 %v3640_v52, %v2907_v53  ;;  %v3019_v8 = vld [vmem:[%s5583_s1 + $0x538] sm:$0xf0] }
  0xe9   :  { %1976 = vmatpush.bf16.msrb.mxu2 %v3246_v55  ;;  %1945 = vmatmul.bf16.vlgmr.msra.gmra.mxu3 %v3803_v14  ;;  %v3147_v38 = vld [vmem:[%s5583_s1 + $0x638] sm:$0xf0]  ;;  %v3022_v14 = vor.u32 %v3668_v4, %v3019_v8  ;;  %v3764_v28 = vld [vmem:[%s5585_s3 + $0x28] sm:$0xff]  ;;  %v3767_v8 = vld [vmem:[%s5585_s3 + $0x40] sm:$0xff] }
  0xea   :  { %1989 = vmatpush.bf16.msrb.mxu3 %v3374_v59  ;;  %v3163_v59 = vld [vmem:[%s5583_s1 + $0x658] sm:$0xf0]  ;;  %v3772_v29 = vld [vmem:[%s5585_s3 + $0x68] sm:$0xff] }
  0xeb   :  { %1951 = vmatpush.bf16.msrb.mxu0 %v2974_v1  ;;  %v5398_v55 = vpop.f32.mrf.mxu2  ;;  %v1701_v0 = vpop.f32.mrf.mxu0  ;;  %v3038_v1 = vor.u32 %v3672_v54, %v3035_v57  ;;  %v3275_v10 = vld [vmem:[%s5583_s1 + $0x738] sm:$0xf0]  ;;  %v3761_v57 = vld [vmem:[%s5585_s3 + $0x10] sm:$0xff] }
  0xec   :  { %1964 = vmatpush.bf16.msrb.mxu1 %v3102_v2  ;;  %v5409_v60 = vpop.f32.mrf.mxu3  ;;  %v3166_v2 = vor.u32 %v3704_v58, %v3163_v59  ;;  %v1714_v5 = vpop.f32.mrf.mxu1  ;;  %v3278_v23 = vor.u32 %v3732_v9, %v3275_v10  ;;  %v3003_v24 = vld [vmem:[%s5583_s1 + $0x518] sm:$0xf0]  ;;  %v3760_v0 = vld [vmem:[%s5585_s3 + $0x8] sm:$0xff] }
  0xed   :  { %1977 = vmatpush.bf16.msrb.mxu2 %v3230_v3  ;;  %v3636_v3 = vld [vmem:[%s5583_s1 + $0x42c] sm:$0xf]  ;;  %v3131_v30 = vld [vmem:[%s5583_s1 + $0x618] sm:$0xf0]  ;;  %v3759_v5 = vld [vmem:[%s5585_s3] sm:$0xff] }
  0xee   :  { %1990 = vmatpush.bf16.msrb.mxu3 %v3358_v6  ;;  %v3294_v6 = vor.u32 %v3736_v61, %v3291_v62  ;;  %v2894_v13 = vor.u32 %v3636_v3, %v2891_v25  ;;  %v3259_v36 = vld [vmem:[%s5583_s1 + $0x718] sm:$0xf0]  ;;  %v3769_v61 = vld [vmem:[%s5585_s3 + $0x50] sm:$0xff] }
  0xef   :  { %1952 = vmatpush.bf16.msrb.mxu0 %v2958_v15  ;;  %v3150_v15 = vor.u32 %v3700_v31, %v3147_v38  ;;  %v3262_v43 = vor.u32 %v3728_v35, %v3259_v36  ;;  %v3766_v44 = vld [vmem:[%s5585_s3 + $0x38] sm:$0xff] }
  0xf0   :  { %1965 = vmatpush.bf16.msrb.mxu1 %v3086_v19  ;;  %v2875_v19 = vld [vmem:[%s5583_s1 + $0x418] sm:$0xf0] }
  0xf1   :  { %1978 = vmatpush.bf16.msrb.mxu2 %v3214_v20  ;;  %v3664_v20 = vld [vmem:[%s5583_s1 + $0x50c] sm:$0xf]  ;;  %v3774_v45 = vld [vmem:[%s5585_s3 + $0x78] sm:$0xff] }
  0xf2   :  { %1991 = vmatpush.bf16.msrb.mxu3 %v3342_v26  ;;  %v3696_v26 = vld [vmem:[%s5583_s1 + $0x60c] sm:$0xf]  ;;  %v3782_v47 = vld [vmem:[%s5585_s3 + $0xb8] sm:$0xff] }
  0xf3   :  { %1953 = vmatpush.bf16.msrb.mxu0 %v2942_v39  ;;  %v1727_v21 = vpop.f32.mrf.mxu2  ;;  %v2878_v39 = vor.u32 %v3632_v16, %v2875_v19  ;;  %v3770_v53 = vld [vmem:[%s5585_s3 + $0x58] sm:$0xff]  ;;  %v3775_v19 = vld [vmem:[%s5585_s3 + $0x80] sm:$0xff] }
  0xf4   :  { %1966 = vmatpush.bf16.msrb.mxu1 %v3070_v41  ;;  %v1740_v33 = vpop.f32.mrf.mxu3  ;;  %v3006_v41 = vor.u32 %v3664_v20, %v3003_v24  ;;  %v282_v20 = vperm.slane %v5002_v32, 2 }
  0xf5   :  { %1979 = vmatpush.bf16.msrb.mxu2 %v3198_v42  ;;  %v3134_v42 = vor.u32 %v3696_v26, %v3131_v30 }
  0xf6   :  { %1992 = vmatpush.bf16.msrb.mxu3 %v3326_v27  ;;  %v1713_v27 = vadd.f32 %v5372_v46, %v1700_v37  ;;  %v3773_v46 = vld [vmem:[%s5585_s3 + $0x70] sm:$0xff] }
  0xf7   :  { %1954 = vmatpush.bf16.msrb.mxu0 %v2926_v49 }
  0xf8   :  { %1967 = vmatpush.bf16.msrb.mxu1 %v3054_v50  ;;  %v1726_v48 = vadd.f32 %v5398_v55, %v1713_v27  ;;  %v3781_v50 = vld [vmem:[%s5585_s3 + $0xb0] sm:$0xff] }
  0xf9   :  { %1980 = vmatpush.bf16.msrb.mxu2 %v3182_v51  ;;  %v3762_v51 = vld [vmem:[%s5585_s3 + $0x18] sm:$0xff] }
  0xfa   :  { %1993 = vmatpush.bf16.msrb.mxu3 %v3310_v56  ;;  %v3780_v56 = vld [vmem:[%s5585_s3 + $0xa8] sm:$0xff] }
  0xfb   :  { %1955 = vmatpush.bf16.msrb.mxu0 %v2910_v63 }
  0xfc   :  { %1968 = vmatpush.bf16.msrb.mxu1 %v3038_v1  ;;  %v3778_v1 = vld [vmem:[%s5585_s3 + $0x98] sm:$0xff] }
  0xfd   :  { %1981 = vmatpush.bf16.msrb.mxu2 %v3166_v2  ;;  %v3768_v2 = vld [vmem:[%s5585_s3 + $0x48] sm:$0xff] }
  0xfe   :  { %1994 = vmatpush.bf16.msrb.mxu3 %v3294_v6  ;;  %v2002_v6 = vmax.f32 %v5215_v7, 0.0 }
  0xff   :  { %1956 = vmatpush.bf16.msrb.mxu0 %v2894_v13 }
 0x100   :  { %1969 = vmatpush.bf16.msrb.mxu1 %v3022_v14  ;;  %v2006_v38 = vpack.c.bf16 %v2002_v6, %v2002_v6  ;;  %v3776_v14 = vld [vmem:[%s5585_s3 + $0x88] sm:$0xff] }
 0x101   :  { %1982 = vmatpush.bf16.msrb.mxu2 %v3150_v15 }
 0x102   :  { %1995 = vmatpush.bf16.msrb.mxu3 %v3278_v23 }
 0x103   :  { %1957 = vmatpush.bf16.msrb.mxu0 %v2878_v39 }
 0x104   :  { %1970 = vmatpush.bf16.msrb.mxu1 %v3006_v41  ;;  %v1764_v49 = vpop.f32.mrf.mxu1 }
 0x105   :  { %1983 = vmatpush.bf16.msrb.mxu2 %v3134_v42 }
 0x106   :  { %1996 = vmatpush.bf16.msrb.mxu3 %v3262_v43  ;;  %1958 = vmatmul.bf16.vlgmr.msrb.gmra.mxu0 %v5128_v17  ;;  %v1739_v17 = vadd.f32 %v5409_v60, %v1726_v48  ;;  %v3779_v60 = vld [vmem:[%s5585_s3 + $0xa0] sm:$0xff] }
 0x107   :  { %2270 = vmatpush.bf16.msra.mxu0 %v3766_v44  ;;  %1971 = vmatmul.bf16.vlgmr.msrb.gmra.mxu1 %v5140_v22  ;;  %v1751_v22 = vpop.f32.mrf.mxu0  ;;  %v3790_v44 = vld [vmem:[%s5585_s3 + $0xf8] sm:$0xff] }
 0x108   :  { %2283 = vmatpush.bf16.msra.mxu1 %v3774_v45  ;;  %1984 = vmatmul.bf16.vlgmr.msrb.gmra.mxu2 %v5116_v12  ;;  %v3763_v12 = vld [vmem:[%s5585_s3 + $0x20] sm:$0xff]  ;;  %v1752_v34 = vadd.f32 %v1751_v22, %v1739_v17  ;;  %v3786_v22 = vld [vmem:[%s5585_s3 + $0xd8] sm:$0xff] }
 0x109   :  { %1997 = vmatmul.bf16.vlgmr.msrb.gmra.mxu3 %v5131_v18  ;;  %2296 = vmatpush.bf16.msra.mxu2 %v3782_v47  ;;  %v3771_v18 = vld [vmem:[%s5585_s3 + $0x60] sm:$0xff] }
 0x10a   :  { %v1765_v52 = vadd.f32 %v1764_v49, %v1752_v34  ;;  %2309 = vmatpush.bf16.msra.mxu3 %v3790_v44 }
 0x10b   :  { %2271 = vmatpush.bf16.msra.mxu0 %v3765_v40  ;;  %v1777_v54 = vpop.f32.mrf.mxu2  ;;  %v3789_v40 = vld [vmem:[%s5585_s3 + $0xf0] sm:$0xff] }
 0x10c   :  { %2284 = vmatpush.bf16.msra.mxu1 %v3773_v46  ;;  %v1790_v55 = vpop.f32.mrf.mxu3  ;;  %v1778_v58 = vadd.f32 %v1777_v54, %v1765_v52  ;;  %v1766_v62 = vpop.f32.mrf.mxu1  ;;  %v3783_v54 = vld [vmem:[%s5585_s3 + $0xc0] sm:$0xff] }
 0x10d   :  { %2297 = vmatpush.bf16.msra.mxu2 %v3781_v50  ;;  %v3784_v50 = vld [vmem:[%s5585_s3 + $0xc8] sm:$0xff] }
 0x10e   :  { %v1791_v63 = vadd.f32 %v1790_v55, %v1778_v58  ;;  %2310 = vmatpush.bf16.msra.mxu3 %v3789_v40 }
 0x10f   :  { %2272 = vmatpush.bf16.msra.mxu0 %v3764_v28  ;;  %v1753_v59 = vpop.f32.mrf.mxu0  ;;  %v3788_v28 = vld [vmem:[%s5585_s3 + $0xe8] sm:$0xff] }
 0x110   :  { %2285 = vmatpush.bf16.msra.mxu1 %v3772_v29  ;;  %v2003_v4 = vmax.f32 %v1791_v63, 0.0 }
 0x111   :  { %2298 = vmatpush.bf16.msra.mxu2 %v3780_v56  ;;  %v283_v56 = vperm.slane %v5002_v32, 3 }
 0x112   :  { %v2007_v31 = vpack.c.bf16 %v2003_v4, %v2003_v4  ;;  %2311 = vmatpush.bf16.msra.mxu3 %v3788_v28 }
 0x113   :  { %2273 = vmatpush.bf16.msra.mxu0 %v3763_v12  ;;  %v1779_v3 = vpop.f32.mrf.mxu2  ;;  %v3787_v12 = vld [vmem:[%s5585_s3 + $0xe0] sm:$0xff] }
 0x114   :  { %2286 = vmatpush.bf16.msra.mxu1 %v3771_v18  ;;  %v1792_v25 = vpop.f32.mrf.mxu3  ;;  %v3785_v18 = vld [vmem:[%s5585_s3 + $0xd0] sm:$0xff] }
 0x115   :  { %2299 = vmatpush.bf16.msra.mxu2 %v3779_v60 }
 0x116   :  { %2312 = vmatpush.bf16.msra.mxu3 %v3787_v12 }
 0x117   :  { %2274 = vmatpush.bf16.msra.mxu0 %v3762_v51 }
 0x118   :  { %2287 = vmatpush.bf16.msra.mxu1 %v3770_v53 }
 0x119   :  { %2300 = vmatpush.bf16.msra.mxu2 %v3778_v1 }
 0x11a   :  { %2313 = vmatpush.bf16.msra.mxu3 %v3786_v22 }
 0x11b   :  { %2275 = vmatpush.bf16.msra.mxu0 %v3761_v57 }
 0x11c   :  { %2288 = vmatpush.bf16.msra.mxu1 %v3769_v61 }
 0x11d   :  { %2301 = vmatpush.bf16.msra.mxu2 %v3777_v11 }
 0x11e   :  { %2314 = vmatpush.bf16.msra.mxu3 %v3785_v18 }
 0x11f   :  { %2276 = vmatpush.bf16.msra.mxu0 %v3760_v0 }
 0x120   :  { %2289 = vmatpush.bf16.msra.mxu1 %v3768_v2 }
 0x121   :  { %2302 = vmatpush.bf16.msra.mxu2 %v3776_v14 }
 0x122   :  { %2315 = vmatpush.bf16.msra.mxu3 %v3784_v50 }
 0x123   :  { %2277 = vmatpush.bf16.msra.mxu0 %v3759_v5  ;;  %v1803_v9 = vpop.f32.mrf.mxu0 }
 0x124   :  { %2290 = vmatpush.bf16.msra.mxu1 %v3767_v8  ;;  %v1816_v10 = vpop.f32.mrf.mxu1  ;;  %v1804_v24 = vadd.f32 %v1803_v9, %v282_v20 }
 0x125   :  { %2303 = vmatpush.bf16.msra.mxu2 %v3775_v19 }
 0x126   :  { %2278 = vmatmul.bf16.vlgmr.msra.gmra.mxu0 %v2006_v38  ;;  %v1817_v26 = vadd.f32 %v1816_v10, %v1804_v24  ;;  %2316 = vmatpush.bf16.msra.mxu3 %v3783_v54  ;;  %v3792_v10 = vld [vmem:[%s5586_s4] ss:$0 sm:$0xff]  ;;  %s3831_s4 = smov [#allocation2]  }
 0x127   :  { %2291 = vmatmul.bf16.vlgmr.msra.gmra.mxu1 %v2007_v31  ;;  %s2340_s10 = sshll.u32 %s3831_s4, 4  ;;  %s2341_s10 = int_to_ptr.vmem [resolvable:$true] %s2340_s10 }
 0x12b   :  { %v1829_v13 = vpop.f32.mrf.mxu2  ;;  %v1805_v15 = vpop.f32.mrf.mxu0 }
 0x12c   :  { %v1842_v7 = vpop.f32.mrf.mxu3  ;;  %v1818_v16 = vpop.f32.mrf.mxu1  ;;  %v1830_v30 = vadd.f32 %v1829_v13, %v1817_v26 }
 0x12e   :  { %v1843_v33 = vadd.f32 %v1842_v7, %v1830_v30 }
 0x133   :  { %v1831_v21 = vpop.f32.mrf.mxu2 }
 0x134   :  { %v1844_v23 = vpop.f32.mrf.mxu3 }
 0x143   :  { %v1855_v35 = vpop.f32.mrf.mxu0 }
 0x144   :  { %v1856_v36 = vadd.f32 %v1855_v35, %v1843_v33  ;;  %v1868_v37 = vpop.f32.mrf.mxu1 }
 0x146   :  { %v1869_v39 = vadd.f32 %v1868_v37, %v1856_v36 }
 0x14b   :  { %v1881_v41 = vpop.f32.mrf.mxu2  ;;  %v1857_v27 = vpop.f32.mrf.mxu0 }
 0x14c   :  { %v1882_v42 = vadd.f32 %v1881_v41, %v1869_v39  ;;  %v1894_v43 = vpop.f32.mrf.mxu3  ;;  %v1870_v47 = vpop.f32.mrf.mxu1 }
 0x14e   :  { %v1895_v45 = vadd.f32 %v1894_v43, %v1882_v42 }
 0x150   :  { %v2004_v46 = vmax.f32 %v1895_v45, 0.0 }
 0x152   :  { %v2008_v48 = vpack.c.bf16 %v2004_v46, %v2004_v46 }
 0x153   :  { %v1883_v17 = vpop.f32.mrf.mxu2 }
 0x154   :  { %2304 = vmatmul.bf16.vlgmr.msra.gmra.mxu2 %v2008_v48  ;;  %v1896_v29 = vpop.f32.mrf.mxu3 }
 0x163   :  { %v1907_v34 = vpop.f32.mrf.mxu0 }
 0x164   :  { %v1920_v49 = vpop.f32.mrf.mxu1  ;;  %v1908_v59 = vadd.f32 %v1907_v34, %v283_v56 }
 0x166   :  { %v1921_v60 = vadd.f32 %v1920_v49, %v1908_v59 }
 0x16b   :  { %v1933_v51 = vpop.f32.mrf.mxu2  ;;  %v1909_v53 = vpop.f32.mrf.mxu0 }
 0x16c   :  { %v1946_v52 = vpop.f32.mrf.mxu3  ;;  %v1922_v55 = vpop.f32.mrf.mxu1  ;;  %v1934_v61 = vadd.f32 %v1933_v51, %v1921_v60 }
 0x16e   :  { %v1947_v62 = vadd.f32 %v1946_v52, %v1934_v61 }
 0x173   :  { %v1935_v57 = vpop.f32.mrf.mxu2 }
 0x174   :  { %v1948_v58 = vpop.f32.mrf.mxu3 }
 0x183   :  { %v1959_v63 = vpop.f32.mrf.mxu0 }
 0x184   :  { %v1972_v0 = vpop.f32.mrf.mxu1  ;;  %v1960_v1 = vadd.f32 %v1959_v63, %v1947_v62 }
 0x186   :  { %v1973_v2 = vadd.f32 %v1972_v0, %v1960_v1 }
 0x18b   :  { %v1985_v3 = vpop.f32.mrf.mxu2  ;;  %v1961_v5 = vpop.f32.mrf.mxu0 }
 0x18c   :  { %v1986_v25 = vadd.f32 %v1985_v3, %v1973_v2  ;;  %v1998_v4 = vpop.f32.mrf.mxu3  ;;  %v1974_v6 = vpop.f32.mrf.mxu1 }
 0x18e   :  { %v1999_v8 = vadd.f32 %v1998_v4, %v1986_v25 }
 0x190   :  { %v2005_v31 = vmax.f32 %v1999_v8, 0.0 }
 0x192   :  { %v2009_v38 = vpack.c.bf16 %v2005_v31, %v2005_v31 }
 0x193   :  { %v1987_v9 = vpop.f32.mrf.mxu2 }
 0x194   :  { %v2000_v32 = vpop.f32.mrf.mxu3  ;;  %2317 = vmatmul.bf16.vlgmr.msra.gmra.mxu3 %v2009_v38 }
 0x1a3   :  { %v2279_v11 = vpop.f32.mrf.mxu0 }
 0x1a4   :  { %v2280_v13 = vadd.f32 %v3792_v10, %v2279_v11  ;;  %v2292_v7 = vpop.f32.mrf.mxu1 }
 0x1a6   :  { %v2293_v14 = vadd.f32 %v2292_v7, %v2280_v13 }
 0x1ab   :  { %v2281_v15 = vpop.f32.mrf.mxu0 }
 0x1ac   :  { %v2294_v16 = vpop.f32.mrf.mxu1 }
 0x1d7   :  { %v2305_v19 = vpop.f32.mrf.mxu2 }
 0x1d8   :  { %v2306_v21 = vadd.f32 %v2305_v19, %v2293_v14 }
 0x1df   :  { %v2307_v20 = vpop.f32.mrf.mxu2 }
 0x217   :  { %v2318_v23 = vpop.f32.mrf.mxu3 }
 0x218   :  { %v2319_v24 = vadd.f32 %v2318_v23, %v2306_v21 }
 0x21a   :  { %v2323_v26 = vsel %vm2322_vm0, %v2319_v24, -inf }
 0x21b   :  { %2324 = vmax.xlane.f32.xlu0 %v2323_v26 }
 0x21f   :  { %v2320_v30 = vpop.f32.mrf.mxu3 }
 0x28e   :  { %v2325_v33 = vpop.xlane.xlu0 %2324 }
 0x28f   :  { %v2326_v35 = vsub.f32 %v2319_v24, %v2325_v33 }
 0x291   :  { %v2327_v36 = vmul.f32 1.442695, %v2326_v35 }
 0x293   :  { %3793 = vpow2.f32 %v2327_v36 }
 0x299   :  { %v3794_v37 = vpop.eup %3793 }
 0x29a   :  { %v2329_v39 = vsel %vm2322_vm0, %v3794_v37, 0.0 }
 0x29b   :  { %2330 = vadd.xlane.f32.xlu0 %v2329_v39 }
 0x30e   :  { %v2331_v41 = vpop.xlane.xlu0 %2330 }
 0x30f   :  { %3795 = vrcp.f32 %v2331_v41 }
 0x315   :  { %v3796_v42 = vpop.eup %3795 }
 0x316   :  { %v2333_v43 = vmul.f32 %v3796_v42, %v3794_v37 }
 0x318   :  { %2334 = vst.msk [vmem:[#allocation2] sm:$0x3] %vm2322_vm0, %v2333_v43 }
 0x319   :  { %2345 = dma.vmem_to_hbm [thread:$0]  %s2341_s10, 32, %s2343_s2, [#allocation3]  }
 0x31a   :  { %3829 = dma.done.wait [#allocation3], 32  }
 0x31b   :  { %3830 = vsyncadd [#allocation3], 4294967264 }
 0x31c   :  { %2350 = vsyncpa [#allocation3], 1 }

</bundles_post_ra>
